<compile_context>
chip_gen: v6e
topology: v6e:2x2x1
jax: 0.10.0
libtpu: 0.0.40
codegen_flags: <defaults>
</compile_context>

<pallas_src>
import math

import jax
import jax.numpy as jnp
from jax import lax
from jax.experimental import pallas as pl
from jax.experimental.pallas import tpu as pltpu

NHEAD = 8
LN_EPS = 1e-5
_INV_SQRT2 = 0.7071067811865476
_GELU_C = math.sqrt(2.0 / math.pi)


def _layernorm(x, gamma, beta):
    mu = jnp.mean(x, axis=-1, keepdims=True)
    var = jnp.mean((x - mu) ** 2, axis=-1, keepdims=True)
    return (x - mu) * lax.rsqrt(var + LN_EPS) * gamma + beta


def _gelu_exact(x):
    # exact (erf-based) GELU, matching torch.nn.functional.gelu default (reference only)
    return 0.5 * x * (1.0 + lax.erf(x * _INV_SQRT2))


def _gelu_tanh(x):
    # tanh-approx GELU: the transcendental lowers to the EUP slot instead of a long VPU
    # erf polynomial over the (rows, 4D) tensor.  |diff vs exact| < ~3e-3 absolute.
    return 0.5 * x * (1.0 + jnp.tanh(_GELU_C * (x + 0.044715 * x * x * x)))


# ----------------------------------------------------------------------------- kernel


def _make_kernel(nb, t, d, lane_dense):
    hd = d // NHEAD
    rows = nb * t

    def kernel(x_ref,
               w_qkv_ref, b_qkv_ref,
               w_out_ref, b_out_ref,
               ln1_g_ref, ln1_b_ref,
               w1_ref, b1_ref,
               w2_ref, b2_ref,
               ln2_g_ref, ln2_b_ref,
               o_ref):
        x_f32 = x_ref[...].astype(jnp.float32).reshape(rows, d)   # residual path (f32)
        x_bf16 = x_f32.astype(jnp.bfloat16)                       # matmul operand (bf16)

        # fused QKV projection: bf16 operands, f32 accumulation on the MXU
        # (1/sqrt(hd) already folded into the Q rows of w_qkv / b_qkv host-side)
        qkv = jnp.dot(x_bf16, w_qkv_ref[...],
                      preferred_element_type=jnp.float32) + b_qkv_ref[...]   # (rows, 3D)

        # self-attention; each head's result is projected with its own (hd, D) slab of
        # w_out and accumulated, so the lane-axis concat of head outputs never exists.
        attn = jnp.zeros((rows, d), jnp.float32)
        for h in range(NHEAD):
            qh = qkv[:, h * hd:(h + 1) * hd].reshape(nb, t, hd)
            kh = qkv[:, d + h * hd:d + (h + 1) * hd].reshape(nb, t, hd)
            vh = qkv[:, 2 * d + h * hd:2 * d + (h + 1) * hd].reshape(nb, t, hd)
            s = jnp.einsum('bqd,bkd->bqk', qh, kh,
                           preferred_element_type=jnp.float32)               # (nb, T, T)
            s = s - jnp.max(s, axis=-1, keepdims=True)
            p = jnp.exp(s)
            p = p * pl.reciprocal(jnp.sum(p, axis=-1, keepdims=True), approx=True)
            oh = jnp.einsum('bqk,bkd->bqd', p, vh,
                            preferred_element_type=jnp.float32)              # (nb, T, hd)
            attn = attn + jnp.dot(oh.reshape(rows, hd).astype(jnp.bfloat16),
                                  w_out_ref[h],
                                  preferred_element_type=jnp.float32)
        attn = attn + b_out_ref[...]

        # residual + post-LN (f32)
        x1 = _layernorm(x_f32 + attn, ln1_g_ref[...], ln1_b_ref[...])

        # feed-forward (bf16 operands, f32 accumulation; GELU in f32 on the EUP)
        h1 = jnp.dot(x1.astype(jnp.bfloat16), w1_ref[...],
                     preferred_element_type=jnp.float32) + b1_ref[...]        # (rows, 4D)
        h1 = _gelu_tanh(h1)
        y = jnp.dot(h1.astype(jnp.bfloat16), w2_ref[...],
                    preferred_element_type=jnp.float32) + b2_ref[...]         # (rows, D)

        x2 = _layernorm(x1 + y, ln2_g_ref[...], ln2_b_ref[...])

        if lane_dense:
            o_ref[...] = x2.reshape(nb, t * d).astype(o_ref.dtype)
        else:
            o_ref[...] = x2.reshape(nb, t, d).astype(o_ref.dtype)

    return kernel


# ----------------------------------------------------------------------------- host-side prep


def prepare_params(p):
    """Pre-transpose matmul weights, fold the attention scale, cast matmul weights to bf16."""
    f32, bf16 = jnp.float32, jnp.bfloat16
    w_qkv = jnp.asarray(p["in_proj_w"], f32).T                       # (D, 3D)
    b_qkv = jnp.asarray(p["in_proj_b"], f32).reshape(1, -1)          # (1, 3D)
    d = w_qkv.shape[0]
    hd = d // NHEAD
    scale = 1.0 / math.sqrt(hd)
    # fold 1/sqrt(head_dim) into the Q projection (one-time, host-side)
    w_qkv = w_qkv.at[:, :d].multiply(scale)
    b_qkv = b_qkv.at[:, :d].multiply(scale)
    w_out = jnp.asarray(p["out_proj_w"], f32).T                      # (D, D), rows = concat-head feats
    return dict(
        w_qkv=w_qkv.astype(bf16),
        b_qkv=b_qkv,
        w_out=w_out.reshape(NHEAD, hd, d).astype(bf16),              # per-head slabs
        b_out=jnp.asarray(p["out_proj_b"], f32).reshape(1, -1),
        ln1_g=jnp.asarray(p["ln1_g"], f32).reshape(1, -1),
        ln1_b=jnp.asarray(p["ln1_b"], f32).reshape(1, -1),
        w1=jnp.asarray(p["lin1_w"], f32).T.astype(bf16),             # (D, 4D)
        b1=jnp.asarray(p["lin1_b"], f32).reshape(1, -1),
        w2=jnp.asarray(p["lin2_w"], f32).T.astype(bf16),             # (4D, D)
        b2=jnp.asarray(p["lin2_b"], f32).reshape(1, -1),
        ln2_g=jnp.asarray(p["ln2_g"], f32).reshape(1, -1),
        ln2_b=jnp.asarray(p["ln2_b"], f32).reshape(1, -1),
    )


def _vmem_capacity_bytes():
    try:
        return int(pltpu.get_tpu_info().vmem_capacity_bytes)
    except Exception:
        return 64 * 2 ** 20          # conservative fallback (v7x per-TC VMEM)


def _vmem_budget(T, D, x_itemsize, weight_bytes, single_buffer):
    """Returns (budget_rows, vmem_limit_bytes)."""
    usable = int(0.85 * _vmem_capacity_bytes())        # leave headroom for compiler scratch
    w_resident = weight_bytes * (1 if single_buffer else 2)
    # f32 activations + bf16 duplicates + per-head scores + double-buffered I/O, per row
    per_row = 4 * (16 * D + 4 * T) + 2 * 2 * D * x_itemsize
    budget = usable - w_resident - (4 << 20)
    budget_rows = max(T, budget // max(per_row, 1))
    return budget_rows, usable


def _choose_tiling(N, T, budget_rows):
    """Pick nb (sequences / grid step) and an even grid length; returns (nb, grid, N_padded)."""
    target_rows = 256                                   # fill a 256-wide MXU (128-256 band for v5e)
    max_nb = min(budget_rows // T, max(1, (2 * target_rows) // T))
    if N > 1:
        max_nb = min(max_nb, pl.cdiv(N, 2))             # keep >= 2 grid steps (v7x: 2 TCs)
    max_nb = max(1, min(max_nb, N))

    best = None
    for nb in range(1, max_nb + 1):
        grid = pl.cdiv(N, nb)
        rows = nb * T
        pad = nb * grid - N
        even = (grid % 2 == 0) or grid == 1
        score = (-abs(min(rows, target_rows) - target_rows), even, -pad, rows)
        if best is None or score > best[0]:
            best = (score, nb, grid)
    _, nb, grid = best
    return nb, grid, nb * grid


def _run(xf, weights, weight_bytes, N, T, D, lane_dense, single_buffer):
    x_itemsize = xf.dtype.itemsize
    budget_rows, vmem_limit = _vmem_budget(T, D, x_itemsize, weight_bytes, single_buffer)
    nb, num_blocks, n_pad = _choose_tiling(N, T, budget_rows)

    if n_pad != N:                                       # zero-pad N so the tiling divides evenly
        xf = jnp.concatenate([xf, jnp.zeros((n_pad - N, T, D), xf.dtype)], axis=0)

    if lane_dense:
        x_in = xf.reshape(n_pad, T * D)                  # lane-dense I/O slab (dense vst, no DMA pad)
        io_block = (nb, T * D)
        io_index = lambda n: (n, 0)
        out_shape = jax.ShapeDtypeStruct((n_pad, T * D), xf.dtype)
    else:
        x_in = xf
        io_block = (nb, T, D)
        io_index = lambda n: (n, 0, 0)
        out_shape = jax.ShapeDtypeStruct((n_pad, T, D), xf.dtype)

    def w_spec(a):
        nd = a.ndim
        idx = lambda n, _nd=nd: (0,) * _nd
        if single_buffer:
            # block index never changes -> single buffer, halves resident weight VMEM
            return pl.BlockSpec(a.shape, idx, pipeline_mode=pl.Buffered(1))
        return pl.BlockSpec(a.shape, idx)

    out = pl.pallas_call(
        _make_kernel(nb, T, D, lane_dense),
        out_shape=out_shape,
        grid=(num_blocks,),
        in_specs=[pl.BlockSpec(io_block, io_index)] + [w_spec(w) for w in weights],
        out_specs=pl.BlockSpec(io_block, io_index),
        compiler_params=pltpu.CompilerParams(
            dimension_semantics=("parallel",),
            vmem_limit_bytes=int(vmem_limit)),
    )(x_in, *weights)
    out = jax.block_until_ready(out)
    return out.reshape(n_pad, T, D)[:N]


def trans_conv_forward(x, params):
    B, C, T, D = x.shape
    assert D % NHEAD == 0, "d_model must be divisible by nhead=8"
    N = B * C
    xf = x.reshape(N, T, D)

    pp = prepare_params(params)
    weights = [pp["w_qkv"], pp["b_qkv"], pp["w_out"], pp["b_out"],
               pp["ln1_g"], pp["ln1_b"], pp["w1"], pp["b1"],
               pp["w2"], pp["b2"], pp["ln2_g"], pp["ln2_b"]]
    weight_bytes = sum(int(w.size) * w.dtype.itemsize for w in weights)

    lane_dense_pref = D < 128
    single_buffer_pref = hasattr(pl, "Buffered")

    configs = [(lane_dense_pref, single_buffer_pref)]
    if lane_dense_pref or single_buffer_pref:
        configs.append((False, False))                   # conservative fallback config

    last_err = None
    for lane_dense, single_buffer in configs:
        try:
            out = _run(xf, weights, weight_bytes, N, T, D, lane_dense, single_buffer)
            return out.reshape(B, C, T, D)
        except Exception as e:                           # fall back if an optional feature fails to lower
            last_err = e
    raise last_err


# ----------------------------------------------------------------------------- reference & test


def init_params(key, d_model):
    dff = 4 * d_model
    ks = jax.random.split(key, 8)

    def w(k, shape, scale=0.05):
        return (scale * jax.random.normal(k, shape)).astype(jnp.float32)

    return dict(
        in_proj_w=w(ks[0], (3 * d_model, d_model)),
        in_proj_b=w(ks[1], (1, 3 * d_model)),
        out_proj_w=w(ks[2], (d_model, d_model)),
        out_proj_b=w(ks[3], (1, d_model)),
        ln1_g=jnp.ones((1, d_model), jnp.float32),
        ln1_b=jnp.zeros((1, d_model), jnp.float32),
        lin1_w=w(ks[4], (dff, d_model)),
        lin1_b=w(ks[5], (1, dff)),
        lin2_w=w(ks[6], (d_model, dff)),
        lin2_b=w(ks[7], (1, d_model)),
        ln2_g=jnp.ones((1, d_model), jnp.float32),
        ln2_b=jnp.zeros((1, d_model), jnp.float32),
    )


def ref_forward(x, p):
    # pure-JAX f32 reference of the PyTorch TransformerEncoderLayer (eval mode)
    B, C, T, D = x.shape
    hd = D // NHEAD
    xf = x.reshape(B * C, T, D).astype(jnp.float32)

    qkv = jnp.einsum("ntd,ed->nte", xf, p["in_proj_w"]) + p["in_proj_b"][0]
    q, k, v = jnp.split(qkv, 3, axis=-1)
    q = q.reshape(-1, T, NHEAD, hd).transpose(0, 2, 1, 3) / math.sqrt(hd)
    k = k.reshape(-1, T, NHEAD, hd).transpose(0, 2, 1, 3)
    v = v.reshape(-1, T, NHEAD, hd).transpose(0, 2, 1, 3)
    s = jnp.einsum("nhtd,nhsd->nhts", q, k)
    a = jax.nn.softmax(s, axis=-1)
    o = jnp.einsum("nhts,nhsd->nhtd", a, v).transpose(0, 2, 1, 3).reshape(-1, T, D)
    o = jnp.einsum("ntd,ed->nte", o, p["out_proj_w"]) + p["out_proj_b"][0]
    x1 = _layernorm(xf + o, p["ln1_g"][0], p["ln1_b"][0])
    h = jnp.einsum("ntd,fd->ntf", x1, p["lin1_w"]) + p["lin1_b"][0]
    h = _gelu_exact(h)
    y = jnp.einsum("ntf,df->ntd", h, p["lin2_w"]) + p["lin2_b"][0]
    x2 = _layernorm(x1 + y, p["ln2_g"][0], p["ln2_b"][0])
    return x2.reshape(B, C, T, D)


if __name__ == "__main__":
    B, C, T, D = 2, 4, 8, 32  # d_model = D = 32, nhead = 8 -> head_dim = 4
    key = jax.random.PRNGKey(0)
    kx, kparam = jax.random.split(key)
    x = jax.random.normal(kx, (B, C, T, D), dtype=jnp.float32)
    params = init_params(kparam, D)

    out = jax.block_until_ready(trans_conv_forward(x, params))
    ref = jax.block_until_ready(ref_forward(x, params))

    assert out.shape == (B, C, T, D)
    # bf16 matmul operands + f32 accumulation + approx reciprocal + tanh-GELU vs. pure-f32
    # exact reference -> relaxed tolerance
    max_err = float(jnp.max(jnp.abs(out.astype(jnp.float32) - ref)))
    assert max_err < 2e-2, f"max abs err {max_err}"
    print("KERNEL_OK")
</pallas_src>

<mosaic_0001>
module attributes {stable_mosaic.version = 11 : i64} {
  func.func @kernel(%arg0: i32, %arg1: memref<4x8x32xf32, #tpu.memory_space<vmem>>, %arg2: memref<32x96xbf16, #tpu.memory_space<vmem>>, %arg3: memref<1x96xf32, #tpu.memory_space<vmem>>, %arg4: memref<8x4x32xbf16, #tpu.memory_space<vmem>>, %arg5: memref<1x32xf32, #tpu.memory_space<vmem>>, %arg6: memref<1x32xf32, #tpu.memory_space<vmem>>, %arg7: memref<1x32xf32, #tpu.memory_space<vmem>>, %arg8: memref<32x128xbf16, #tpu.memory_space<vmem>>, %arg9: memref<1x128xf32, #tpu.memory_space<vmem>>, %arg10: memref<128x32xbf16, #tpu.memory_space<vmem>>, %arg11: memref<1x32xf32, #tpu.memory_space<vmem>>, %arg12: memref<1x32xf32, #tpu.memory_space<vmem>>, %arg13: memref<1x32xf32, #tpu.memory_space<vmem>>, %arg14: memref<4x8x32xf32, #tpu.memory_space<vmem>>) attributes {dimension_semantics = [#tpu.dimension_semantics<parallel>], iteration_bounds = array<i64: 2>, scalar_prefetch = 0 : i64, scratch_operands = 0 : i64, tpu.core_type = #tpu.core_type<tc>, window_params = [{transform_indices = @transform_0, window_bounds = array<i64: 4, 8, 32>}, {pipeline_mode = #tpu.pipeline_mode<synchronous>, transform_indices = @transform_1, window_bounds = array<i64: 32, 96>}, {pipeline_mode = #tpu.pipeline_mode<synchronous>, transform_indices = @transform_2, window_bounds = array<i64: 1, 96>}, {pipeline_mode = #tpu.pipeline_mode<synchronous>, transform_indices = @transform_3, window_bounds = array<i64: 8, 4, 32>}, {pipeline_mode = #tpu.pipeline_mode<synchronous>, transform_indices = @transform_4, window_bounds = array<i64: 1, 32>}, {pipeline_mode = #tpu.pipeline_mode<synchronous>, transform_indices = @transform_5, window_bounds = array<i64: 1, 32>}, {pipeline_mode = #tpu.pipeline_mode<synchronous>, transform_indices = @transform_6, window_bounds = array<i64: 1, 32>}, {pipeline_mode = #tpu.pipeline_mode<synchronous>, transform_indices = @transform_7, window_bounds = array<i64: 32, 128>}, {pipeline_mode = #tpu.pipeline_mode<synchronous>, transform_indices = @transform_8, window_bounds = array<i64: 1, 128>}, {pipeline_mode = #tpu.pipeline_mode<synchronous>, transform_indices = @transform_9, window_bounds = array<i64: 128, 32>}, {pipeline_mode = #tpu.pipeline_mode<synchronous>, transform_indices = @transform_10, window_bounds = array<i64: 1, 32>}, {pipeline_mode = #tpu.pipeline_mode<synchronous>, transform_indices = @transform_11, window_bounds = array<i64: 1, 32>}, {pipeline_mode = #tpu.pipeline_mode<synchronous>, transform_indices = @transform_12, window_bounds = array<i64: 1, 32>}, {transform_indices = @transform_13, window_bounds = array<i64: 4, 8, 32>}]} {
    %c0 = arith.constant 0 : index
    %c0_0 = arith.constant 0 : index
    %c0_1 = arith.constant 0 : index
    %0 = vector.load %arg1[%c0, %c0_0, %c0_1] : memref<4x8x32xf32, #tpu.memory_space<vmem>>, vector<4x8x32xf32>
    %1 = vector.shape_cast %0 : vector<4x8x32xf32> to vector<32x32xf32>
    %2 = arith.truncf %1 : vector<32x32xf32> to vector<32x32xbf16>
    %c0_2 = arith.constant 0 : index
    %c0_3 = arith.constant 0 : index
    %3 = vector.load %arg2[%c0_2, %c0_3] : memref<32x96xbf16, #tpu.memory_space<vmem>>, vector<32x96xbf16>
    %cst = arith.constant dense<0.000000e+00> : vector<32x96xf32>
    %4 = tpu.matmul %2, %3, %cst {dimension_numbers = #tpu.dot_dimension_numbers<[1], [0], [0], [1], [0, 0, 1, 1], [], []>} : vector<32x32xbf16>, vector<32x96xbf16>, vector<32x96xf32> -> vector<32x96xf32>
    %c0_4 = arith.constant 0 : index
    %c0_5 = arith.constant 0 : index
    %5 = vector.load %arg3[%c0_4, %c0_5] : memref<1x96xf32, #tpu.memory_space<vmem>>, vector<1x96xf32>
    %6 = vector.broadcast %5 : vector<1x96xf32> to vector<32x96xf32>
    %7 = arith.addf %4, %6 : vector<32x96xf32>
    %cst_6 = arith.constant 0.000000e+00 : f32
    %8 = vector.broadcast %cst_6 : f32 to vector<32x32xf32>
    %9 = vector.extract_strided_slice %7 {offsets = [0, 0], sizes = [32, 4], strides = [1, 1]} : vector<32x96xf32> to vector<32x4xf32>
    %10 = vector.shape_cast %9 : vector<32x4xf32> to vector<4x8x4xf32>
    %11 = vector.extract_strided_slice %7 {offsets = [0, 32], sizes = [32, 4], strides = [1, 1]} : vector<32x96xf32> to vector<32x4xf32>
    %12 = vector.shape_cast %11 : vector<32x4xf32> to vector<4x8x4xf32>
    %13 = vector.extract_strided_slice %7 {offsets = [0, 64], sizes = [32, 4], strides = [1, 1]} : vector<32x96xf32> to vector<32x4xf32>
    %14 = vector.shape_cast %13 : vector<32x4xf32> to vector<4x8x4xf32>
    "tpu.trace_start"() <{level = 10 : i32, message = "bqd,bkd->bqk"}> : () -> ()
    %cst_7 = arith.constant dense<0.000000e+00> : vector<4x8x8xf32>
    %15 = tpu.matmul %10, %12, %cst_7 {dimension_numbers = #tpu.dot_dimension_numbers<[2], [2], [1], [1], [0, 0, 0, 1, 1, 1], [0], [0]>} : vector<4x8x4xf32>, vector<4x8x4xf32>, vector<4x8x8xf32> -> vector<4x8x8xf32>
    "tpu.trace_stop"() : () -> ()
    %cst_8 = arith.constant dense<0xFF800000> : vector<4x8xf32>
    %16 = vector.multi_reduction <maximumf>, %15, %cst_8 [2] : vector<4x8x8xf32> to vector<4x8xf32>
    %17 = vector.shape_cast %16 : vector<4x8xf32> to vector<4x8x1xf32>
    %18 = vector.broadcast %17 : vector<4x8x1xf32> to vector<4x8x8xf32>
    %19 = arith.subf %15, %18 : vector<4x8x8xf32>
    %20 = math.exp %19 : vector<4x8x8xf32>
    %cst_9 = arith.constant dense<0.000000e+00> : vector<4x8xf32>
    %21 = vector.multi_reduction <add>, %20, %cst_9 [2] : vector<4x8x8xf32> to vector<4x8xf32>
    %22 = vector.shape_cast %21 : vector<4x8xf32> to vector<4x8x1xf32>
    %23 = tpu.reciprocal %22 {approx = true} : vector<4x8x1xf32> -> vector<4x8x1xf32>
    %24 = vector.broadcast %23 : vector<4x8x1xf32> to vector<4x8x8xf32>
    %25 = arith.mulf %20, %24 : vector<4x8x8xf32>
    "tpu.trace_start"() <{level = 10 : i32, message = "bqk,bkd->bqd"}> : () -> ()
    %cst_10 = arith.constant dense<0.000000e+00> : vector<4x8x4xf32>
    %26 = tpu.matmul %25, %14, %cst_10 {dimension_numbers = #tpu.dot_dimension_numbers<[2], [1], [1], [2], [0, 0, 0, 1, 1, 2], [0], [0]>} : vector<4x8x8xf32>, vector<4x8x4xf32>, vector<4x8x4xf32> -> vector<4x8x4xf32>
    "tpu.trace_stop"() : () -> ()
    %27 = vector.shape_cast %26 : vector<4x8x4xf32> to vector<32x4xf32>
    %28 = arith.truncf %27 : vector<32x4xf32> to vector<32x4xbf16>
    %c0_11 = arith.constant 0 : index
    %c0_12 = arith.constant 0 : index
    %c0_13 = arith.constant 0 : index
    %29 = vector.load %arg4[%c0_11, %c0_12, %c0_13] : memref<8x4x32xbf16, #tpu.memory_space<vmem>>, vector<1x4x32xbf16>
    %30 = vector.shape_cast %29 : vector<1x4x32xbf16> to vector<4x32xbf16>
    %cst_14 = arith.constant dense<0.000000e+00> : vector<32x32xf32>
    %31 = tpu.matmul %28, %30, %cst_14 {dimension_numbers = #tpu.dot_dimension_numbers<[1], [0], [0], [1], [0, 0, 1, 1], [], []>} : vector<32x4xbf16>, vector<4x32xbf16>, vector<32x32xf32> -> vector<32x32xf32>
    %32 = arith.addf %8, %31 : vector<32x32xf32>
    %33 = vector.extract_strided_slice %7 {offsets = [0, 4], sizes = [32, 4], strides = [1, 1]} : vector<32x96xf32> to vector<32x4xf32>
    %34 = vector.shape_cast %33 : vector<32x4xf32> to vector<4x8x4xf32>
    %35 = vector.extract_strided_slice %7 {offsets = [0, 36], sizes = [32, 4], strides = [1, 1]} : vector<32x96xf32> to vector<32x4xf32>
    %36 = vector.shape_cast %35 : vector<32x4xf32> to vector<4x8x4xf32>
    %37 = vector.extract_strided_slice %7 {offsets = [0, 68], sizes = [32, 4], strides = [1, 1]} : vector<32x96xf32> to vector<32x4xf32>
    %38 = vector.shape_cast %37 : vector<32x4xf32> to vector<4x8x4xf32>
    "tpu.trace_start"() <{level = 10 : i32, message = "bqd,bkd->bqk"}> : () -> ()
    %cst_15 = arith.constant dense<0.000000e+00> : vector<4x8x8xf32>
    %39 = tpu.matmul %34, %36, %cst_15 {dimension_numbers = #tpu.dot_dimension_numbers<[2], [2], [1], [1], [0, 0, 0, 1, 1, 1], [0], [0]>} : vector<4x8x4xf32>, vector<4x8x4xf32>, vector<4x8x8xf32> -> vector<4x8x8xf32>
    "tpu.trace_stop"() : () -> ()
    %cst_16 = arith.constant dense<0xFF800000> : vector<4x8xf32>
    %40 = vector.multi_reduction <maximumf>, %39, %cst_16 [2] : vector<4x8x8xf32> to vector<4x8xf32>
    %41 = vector.shape_cast %40 : vector<4x8xf32> to vector<4x8x1xf32>
    %42 = vector.broadcast %41 : vector<4x8x1xf32> to vector<4x8x8xf32>
    %43 = arith.subf %39, %42 : vector<4x8x8xf32>
    %44 = math.exp %43 : vector<4x8x8xf32>
    %cst_17 = arith.constant dense<0.000000e+00> : vector<4x8xf32>
    %45 = vector.multi_reduction <add>, %44, %cst_17 [2] : vector<4x8x8xf32> to vector<4x8xf32>
    %46 = vector.shape_cast %45 : vector<4x8xf32> to vector<4x8x1xf32>
    %47 = tpu.reciprocal %46 {approx = true} : vector<4x8x1xf32> -> vector<4x8x1xf32>
    %48 = vector.broadcast %47 : vector<4x8x1xf32> to vector<4x8x8xf32>
    %49 = arith.mulf %44, %48 : vector<4x8x8xf32>
    "tpu.trace_start"() <{level = 10 : i32, message = "bqk,bkd->bqd"}> : () -> ()
    %cst_18 = arith.constant dense<0.000000e+00> : vector<4x8x4xf32>
    %50 = tpu.matmul %49, %38, %cst_18 {dimension_numbers = #tpu.dot_dimension_numbers<[2], [1], [1], [2], [0, 0, 0, 1, 1, 2], [0], [0]>} : vector<4x8x8xf32>, vector<4x8x4xf32>, vector<4x8x4xf32> -> vector<4x8x4xf32>
    "tpu.trace_stop"() : () -> ()
    %51 = vector.shape_cast %50 : vector<4x8x4xf32> to vector<32x4xf32>
    %52 = arith.truncf %51 : vector<32x4xf32> to vector<32x4xbf16>
    %c1 = arith.constant 1 : index
    %c0_19 = arith.constant 0 : index
    %c0_20 = arith.constant 0 : index
    %53 = vector.load %arg4[%c1, %c0_19, %c0_20] : memref<8x4x32xbf16, #tpu.memory_space<vmem>>, vector<1x4x32xbf16>
    %54 = vector.shape_cast %53 : vector<1x4x32xbf16> to vector<4x32xbf16>
    %cst_21 = arith.constant dense<0.000000e+00> : vector<32x32xf32>
    %55 = tpu.matmul %52, %54, %cst_21 {dimension_numbers = #tpu.dot_dimension_numbers<[1], [0], [0], [1], [0, 0, 1, 1], [], []>} : vector<32x4xbf16>, vector<4x32xbf16>, vector<32x32xf32> -> vector<32x32xf32>
    %56 = arith.addf %32, %55 : vector<32x32xf32>
    %57 = vector.extract_strided_slice %7 {offsets = [0, 8], sizes = [32, 4], strides = [1, 1]} : vector<32x96xf32> to vector<32x4xf32>
    %58 = vector.shape_cast %57 : vector<32x4xf32> to vector<4x8x4xf32>
    %59 = vector.extract_strided_slice %7 {offsets = [0, 40], sizes = [32, 4], strides = [1, 1]} : vector<32x96xf32> to vector<32x4xf32>
    %60 = vector.shape_cast %59 : vector<32x4xf32> to vector<4x8x4xf32>
    %61 = vector.extract_strided_slice %7 {offsets = [0, 72], sizes = [32, 4], strides = [1, 1]} : vector<32x96xf32> to vector<32x4xf32>
    %62 = vector.shape_cast %61 : vector<32x4xf32> to vector<4x8x4xf32>
    "tpu.trace_start"() <{level = 10 : i32, message = "bqd,bkd->bqk"}> : () -> ()
    %cst_22 = arith.constant dense<0.000000e+00> : vector<4x8x8xf32>
    %63 = tpu.matmul %58, %60, %cst_22 {dimension_numbers = #tpu.dot_dimension_numbers<[2], [2], [1], [1], [0, 0, 0, 1, 1, 1], [0], [0]>} : vector<4x8x4xf32>, vector<4x8x4xf32>, vector<4x8x8xf32> -> vector<4x8x8xf32>
    "tpu.trace_stop"() : () -> ()
    %cst_23 = arith.constant dense<0xFF800000> : vector<4x8xf32>
    %64 = vector.multi_reduction <maximumf>, %63, %cst_23 [2] : vector<4x8x8xf32> to vector<4x8xf32>
    %65 = vector.shape_cast %64 : vector<4x8xf32> to vector<4x8x1xf32>
    %66 = vector.broadcast %65 : vector<4x8x1xf32> to vector<4x8x8xf32>
    %67 = arith.subf %63, %66 : vector<4x8x8xf32>
    %68 = math.exp %67 : vector<4x8x8xf32>
    %cst_24 = arith.constant dense<0.000000e+00> : vector<4x8xf32>
    %69 = vector.multi_reduction <add>, %68, %cst_24 [2] : vector<4x8x8xf32> to vector<4x8xf32>
    %70 = vector.shape_cast %69 : vector<4x8xf32> to vector<4x8x1xf32>
    %71 = tpu.reciprocal %70 {approx = true} : vector<4x8x1xf32> -> vector<4x8x1xf32>
    %72 = vector.broadcast %71 : vector<4x8x1xf32> to vector<4x8x8xf32>
    %73 = arith.mulf %68, %72 : vector<4x8x8xf32>
    "tpu.trace_start"() <{level = 10 : i32, message = "bqk,bkd->bqd"}> : () -> ()
    %cst_25 = arith.constant dense<0.000000e+00> : vector<4x8x4xf32>
    %74 = tpu.matmul %73, %62, %cst_25 {dimension_numbers = #tpu.dot_dimension_numbers<[2], [1], [1], [2], [0, 0, 0, 1, 1, 2], [0], [0]>} : vector<4x8x8xf32>, vector<4x8x4xf32>, vector<4x8x4xf32> -> vector<4x8x4xf32>
    "tpu.trace_stop"() : () -> ()
    %75 = vector.shape_cast %74 : vector<4x8x4xf32> to vector<32x4xf32>
    %76 = arith.truncf %75 : vector<32x4xf32> to vector<32x4xbf16>
    %c2 = arith.constant 2 : index
    %c0_26 = arith.constant 0 : index
    %c0_27 = arith.constant 0 : index
    %77 = vector.load %arg4[%c2, %c0_26, %c0_27] : memref<8x4x32xbf16, #tpu.memory_space<vmem>>, vector<1x4x32xbf16>
    %78 = vector.shape_cast %77 : vector<1x4x32xbf16> to vector<4x32xbf16>
    %cst_28 = arith.constant dense<0.000000e+00> : vector<32x32xf32>
    %79 = tpu.matmul %76, %78, %cst_28 {dimension_numbers = #tpu.dot_dimension_numbers<[1], [0], [0], [1], [0, 0, 1, 1], [], []>} : vector<32x4xbf16>, vector<4x32xbf16>, vector<32x32xf32> -> vector<32x32xf32>
    %80 = arith.addf %56, %79 : vector<32x32xf32>
    %81 = vector.extract_strided_slice %7 {offsets = [0, 12], sizes = [32, 4], strides = [1, 1]} : vector<32x96xf32> to vector<32x4xf32>
    %82 = vector.shape_cast %81 : vector<32x4xf32> to vector<4x8x4xf32>
    %83 = vector.extract_strided_slice %7 {offsets = [0, 44], sizes = [32, 4], strides = [1, 1]} : vector<32x96xf32> to vector<32x4xf32>
    %84 = vector.shape_cast %83 : vector<32x4xf32> to vector<4x8x4xf32>
    %85 = vector.extract_strided_slice %7 {offsets = [0, 76], sizes = [32, 4], strides = [1, 1]} : vector<32x96xf32> to vector<32x4xf32>
    %86 = vector.shape_cast %85 : vector<32x4xf32> to vector<4x8x4xf32>
    "tpu.trace_start"() <{level = 10 : i32, message = "bqd,bkd->bqk"}> : () -> ()
    %cst_29 = arith.constant dense<0.000000e+00> : vector<4x8x8xf32>
    %87 = tpu.matmul %82, %84, %cst_29 {dimension_numbers = #tpu.dot_dimension_numbers<[2], [2], [1], [1], [0, 0, 0, 1, 1, 1], [0], [0]>} : vector<4x8x4xf32>, vector<4x8x4xf32>, vector<4x8x8xf32> -> vector<4x8x8xf32>
    "tpu.trace_stop"() : () -> ()
    %cst_30 = arith.constant dense<0xFF800000> : vector<4x8xf32>
    %88 = vector.multi_reduction <maximumf>, %87, %cst_30 [2] : vector<4x8x8xf32> to vector<4x8xf32>
    %89 = vector.shape_cast %88 : vector<4x8xf32> to vector<4x8x1xf32>
    %90 = vector.broadcast %89 : vector<4x8x1xf32> to vector<4x8x8xf32>
    %91 = arith.subf %87, %90 : vector<4x8x8xf32>
    %92 = math.exp %91 : vector<4x8x8xf32>
    %cst_31 = arith.constant dense<0.000000e+00> : vector<4x8xf32>
    %93 = vector.multi_reduction <add>, %92, %cst_31 [2] : vector<4x8x8xf32> to vector<4x8xf32>
    %94 = vector.shape_cast %93 : vector<4x8xf32> to vector<4x8x1xf32>
    %95 = tpu.reciprocal %94 {approx = true} : vector<4x8x1xf32> -> vector<4x8x1xf32>
    %96 = vector.broadcast %95 : vector<4x8x1xf32> to vector<4x8x8xf32>
    %97 = arith.mulf %92, %96 : vector<4x8x8xf32>
    "tpu.trace_start"() <{level = 10 : i32, message = "bqk,bkd->bqd"}> : () -> ()
    %cst_32 = arith.constant dense<0.000000e+00> : vector<4x8x4xf32>
    %98 = tpu.matmul %97, %86, %cst_32 {dimension_numbers = #tpu.dot_dimension_numbers<[2], [1], [1], [2], [0, 0, 0, 1, 1, 2], [0], [0]>} : vector<4x8x8xf32>, vector<4x8x4xf32>, vector<4x8x4xf32> -> vector<4x8x4xf32>
    "tpu.trace_stop"() : () -> ()
    %99 = vector.shape_cast %98 : vector<4x8x4xf32> to vector<32x4xf32>
    %100 = arith.truncf %99 : vector<32x4xf32> to vector<32x4xbf16>
    %c3 = arith.constant 3 : index
    %c0_33 = arith.constant 0 : index
    %c0_34 = arith.constant 0 : index
    %101 = vector.load %arg4[%c3, %c0_33, %c0_34] : memref<8x4x32xbf16, #tpu.memory_space<vmem>>, vector<1x4x32xbf16>
    %102 = vector.shape_cast %101 : vector<1x4x32xbf16> to vector<4x32xbf16>
    %cst_35 = arith.constant dense<0.000000e+00> : vector<32x32xf32>
    %103 = tpu.matmul %100, %102, %cst_35 {dimension_numbers = #tpu.dot_dimension_numbers<[1], [0], [0], [1], [0, 0, 1, 1], [], []>} : vector<32x4xbf16>, vector<4x32xbf16>, vector<32x32xf32> -> vector<32x32xf32>
    %104 = arith.addf %80, %103 : vector<32x32xf32>
    %105 = vector.extract_strided_slice %7 {offsets = [0, 16], sizes = [32, 4], strides = [1, 1]} : vector<32x96xf32> to vector<32x4xf32>
    %106 = vector.shape_cast %105 : vector<32x4xf32> to vector<4x8x4xf32>
    %107 = vector.extract_strided_slice %7 {offsets = [0, 48], sizes = [32, 4], strides = [1, 1]} : vector<32x96xf32> to vector<32x4xf32>
    %108 = vector.shape_cast %107 : vector<32x4xf32> to vector<4x8x4xf32>
    %109 = vector.extract_strided_slice %7 {offsets = [0, 80], sizes = [32, 4], strides = [1, 1]} : vector<32x96xf32> to vector<32x4xf32>
    %110 = vector.shape_cast %109 : vector<32x4xf32> to vector<4x8x4xf32>
    "tpu.trace_start"() <{level = 10 : i32, message = "bqd,bkd->bqk"}> : () -> ()
    %cst_36 = arith.constant dense<0.000000e+00> : vector<4x8x8xf32>
    %111 = tpu.matmul %106, %108, %cst_36 {dimension_numbers = #tpu.dot_dimension_numbers<[2], [2], [1], [1], [0, 0, 0, 1, 1, 1], [0], [0]>} : vector<4x8x4xf32>, vector<4x8x4xf32>, vector<4x8x8xf32> -> vector<4x8x8xf32>
    "tpu.trace_stop"() : () -> ()
    %cst_37 = arith.constant dense<0xFF800000> : vector<4x8xf32>
    %112 = vector.multi_reduction <maximumf>, %111, %cst_37 [2] : vector<4x8x8xf32> to vector<4x8xf32>
    %113 = vector.shape_cast %112 : vector<4x8xf32> to vector<4x8x1xf32>
    %114 = vector.broadcast %113 : vector<4x8x1xf32> to vector<4x8x8xf32>
    %115 = arith.subf %111, %114 : vector<4x8x8xf32>
    %116 = math.exp %115 : vector<4x8x8xf32>
    %cst_38 = arith.constant dense<0.000000e+00> : vector<4x8xf32>
    %117 = vector.multi_reduction <add>, %116, %cst_38 [2] : vector<4x8x8xf32> to vector<4x8xf32>
    %118 = vector.shape_cast %117 : vector<4x8xf32> to vector<4x8x1xf32>
    %119 = tpu.reciprocal %118 {approx = true} : vector<4x8x1xf32> -> vector<4x8x1xf32>
    %120 = vector.broadcast %119 : vector<4x8x1xf32> to vector<4x8x8xf32>
    %121 = arith.mulf %116, %120 : vector<4x8x8xf32>
    "tpu.trace_start"() <{level = 10 : i32, message = "bqk,bkd->bqd"}> : () -> ()
    %cst_39 = arith.constant dense<0.000000e+00> : vector<4x8x4xf32>
    %122 = tpu.matmul %121, %110, %cst_39 {dimension_numbers = #tpu.dot_dimension_numbers<[2], [1], [1], [2], [0, 0, 0, 1, 1, 2], [0], [0]>} : vector<4x8x8xf32>, vector<4x8x4xf32>, vector<4x8x4xf32> -> vector<4x8x4xf32>
    "tpu.trace_stop"() : () -> ()
    %123 = vector.shape_cast %122 : vector<4x8x4xf32> to vector<32x4xf32>
    %124 = arith.truncf %123 : vector<32x4xf32> to vector<32x4xbf16>
    %c4 = arith.constant 4 : index
    %c0_40 = arith.constant 0 : index
    %c0_41 = arith.constant 0 : index
    %125 = vector.load %arg4[%c4, %c0_40, %c0_41] : memref<8x4x32xbf16, #tpu.memory_space<vmem>>, vector<1x4x32xbf16>
    %126 = vector.shape_cast %125 : vector<1x4x32xbf16> to vector<4x32xbf16>
    %cst_42 = arith.constant dense<0.000000e+00> : vector<32x32xf32>
    %127 = tpu.matmul %124, %126, %cst_42 {dimension_numbers = #tpu.dot_dimension_numbers<[1], [0], [0], [1], [0, 0, 1, 1], [], []>} : vector<32x4xbf16>, vector<4x32xbf16>, vector<32x32xf32> -> vector<32x32xf32>
    %128 = arith.addf %104, %127 : vector<32x32xf32>
    %129 = vector.extract_strided_slice %7 {offsets = [0, 20], sizes = [32, 4], strides = [1, 1]} : vector<32x96xf32> to vector<32x4xf32>
    %130 = vector.shape_cast %129 : vector<32x4xf32> to vector<4x8x4xf32>
    %131 = vector.extract_strided_slice %7 {offsets = [0, 52], sizes = [32, 4], strides = [1, 1]} : vector<32x96xf32> to vector<32x4xf32>
    %132 = vector.shape_cast %131 : vector<32x4xf32> to vector<4x8x4xf32>
    %133 = vector.extract_strided_slice %7 {offsets = [0, 84], sizes = [32, 4], strides = [1, 1]} : vector<32x96xf32> to vector<32x4xf32>
    %134 = vector.shape_cast %133 : vector<32x4xf32> to vector<4x8x4xf32>
    "tpu.trace_start"() <{level = 10 : i32, message = "bqd,bkd->bqk"}> : () -> ()
    %cst_43 = arith.constant dense<0.000000e+00> : vector<4x8x8xf32>
    %135 = tpu.matmul %130, %132, %cst_43 {dimension_numbers = #tpu.dot_dimension_numbers<[2], [2], [1], [1], [0, 0, 0, 1, 1, 1], [0], [0]>} : vector<4x8x4xf32>, vector<4x8x4xf32>, vector<4x8x8xf32> -> vector<4x8x8xf32>
    "tpu.trace_stop"() : () -> ()
    %cst_44 = arith.constant dense<0xFF800000> : vector<4x8xf32>
    %136 = vector.multi_reduction <maximumf>, %135, %cst_44 [2] : vector<4x8x8xf32> to vector<4x8xf32>
    %137 = vector.shape_cast %136 : vector<4x8xf32> to vector<4x8x1xf32>
    %138 = vector.broadcast %137 : vector<4x8x1xf32> to vector<4x8x8xf32>
    %139 = arith.subf %135, %138 : vector<4x8x8xf32>
    %140 = math.exp %139 : vector<4x8x8xf32>
    %cst_45 = arith.constant dense<0.000000e+00> : vector<4x8xf32>
    %141 = vector.multi_reduction <add>, %140, %cst_45 [2] : vector<4x8x8xf32> to vector<4x8xf32>
    %142 = vector.shape_cast %141 : vector<4x8xf32> to vector<4x8x1xf32>
    %143 = tpu.reciprocal %142 {approx = true} : vector<4x8x1xf32> -> vector<4x8x1xf32>
    %144 = vector.broadcast %143 : vector<4x8x1xf32> to vector<4x8x8xf32>
    %145 = arith.mulf %140, %144 : vector<4x8x8xf32>
    "tpu.trace_start"() <{level = 10 : i32, message = "bqk,bkd->bqd"}> : () -> ()
    %cst_46 = arith.constant dense<0.000000e+00> : vector<4x8x4xf32>
    %146 = tpu.matmul %145, %134, %cst_46 {dimension_numbers = #tpu.dot_dimension_numbers<[2], [1], [1], [2], [0, 0, 0, 1, 1, 2], [0], [0]>} : vector<4x8x8xf32>, vector<4x8x4xf32>, vector<4x8x4xf32> -> vector<4x8x4xf32>
    "tpu.trace_stop"() : () -> ()
    %147 = vector.shape_cast %146 : vector<4x8x4xf32> to vector<32x4xf32>
    %148 = arith.truncf %147 : vector<32x4xf32> to vector<32x4xbf16>
    %c5 = arith.constant 5 : index
    %c0_47 = arith.constant 0 : index
    %c0_48 = arith.constant 0 : index
    %149 = vector.load %arg4[%c5, %c0_47, %c0_48] : memref<8x4x32xbf16, #tpu.memory_space<vmem>>, vector<1x4x32xbf16>
    %150 = vector.shape_cast %149 : vector<1x4x32xbf16> to vector<4x32xbf16>
    %cst_49 = arith.constant dense<0.000000e+00> : vector<32x32xf32>
    %151 = tpu.matmul %148, %150, %cst_49 {dimension_numbers = #tpu.dot_dimension_numbers<[1], [0], [0], [1], [0, 0, 1, 1], [], []>} : vector<32x4xbf16>, vector<4x32xbf16>, vector<32x32xf32> -> vector<32x32xf32>
    %152 = arith.addf %128, %151 : vector<32x32xf32>
    %153 = vector.extract_strided_slice %7 {offsets = [0, 24], sizes = [32, 4], strides = [1, 1]} : vector<32x96xf32> to vector<32x4xf32>
    %154 = vector.shape_cast %153 : vector<32x4xf32> to vector<4x8x4xf32>
    %155 = vector.extract_strided_slice %7 {offsets = [0, 56], sizes = [32, 4], strides = [1, 1]} : vector<32x96xf32> to vector<32x4xf32>
    %156 = vector.shape_cast %155 : vector<32x4xf32> to vector<4x8x4xf32>
    %157 = vector.extract_strided_slice %7 {offsets = [0, 88], sizes = [32, 4], strides = [1, 1]} : vector<32x96xf32> to vector<32x4xf32>
    %158 = vector.shape_cast %157 : vector<32x4xf32> to vector<4x8x4xf32>
    "tpu.trace_start"() <{level = 10 : i32, message = "bqd,bkd->bqk"}> : () -> ()
    %cst_50 = arith.constant dense<0.000000e+00> : vector<4x8x8xf32>
    %159 = tpu.matmul %154, %156, %cst_50 {dimension_numbers = #tpu.dot_dimension_numbers<[2], [2], [1], [1], [0, 0, 0, 1, 1, 1], [0], [0]>} : vector<4x8x4xf32>, vector<4x8x4xf32>, vector<4x8x8xf32> -> vector<4x8x8xf32>
    "tpu.trace_stop"() : () -> ()
    %cst_51 = arith.constant dense<0xFF800000> : vector<4x8xf32>
    %160 = vector.multi_reduction <maximumf>, %159, %cst_51 [2] : vector<4x8x8xf32> to vector<4x8xf32>
    %161 = vector.shape_cast %160 : vector<4x8xf32> to vector<4x8x1xf32>
    %162 = vector.broadcast %161 : vector<4x8x1xf32> to vector<4x8x8xf32>
    %163 = arith.subf %159, %162 : vector<4x8x8xf32>
    %164 = math.exp %163 : vector<4x8x8xf32>
    %cst_52 = arith.constant dense<0.000000e+00> : vector<4x8xf32>
    %165 = vector.multi_reduction <add>, %164, %cst_52 [2] : vector<4x8x8xf32> to vector<4x8xf32>
    %166 = vector.shape_cast %165 : vector<4x8xf32> to vector<4x8x1xf32>
    %167 = tpu.reciprocal %166 {approx = true} : vector<4x8x1xf32> -> vector<4x8x1xf32>
    %168 = vector.broadcast %167 : vector<4x8x1xf32> to vector<4x8x8xf32>
    %169 = arith.mulf %164, %168 : vector<4x8x8xf32>
    "tpu.trace_start"() <{level = 10 : i32, message = "bqk,bkd->bqd"}> : () -> ()
    %cst_53 = arith.constant dense<0.000000e+00> : vector<4x8x4xf32>
    %170 = tpu.matmul %169, %158, %cst_53 {dimension_numbers = #tpu.dot_dimension_numbers<[2], [1], [1], [2], [0, 0, 0, 1, 1, 2], [0], [0]>} : vector<4x8x8xf32>, vector<4x8x4xf32>, vector<4x8x4xf32> -> vector<4x8x4xf32>
    "tpu.trace_stop"() : () -> ()
    %171 = vector.shape_cast %170 : vector<4x8x4xf32> to vector<32x4xf32>
    %172 = arith.truncf %171 : vector<32x4xf32> to vector<32x4xbf16>
    %c6 = arith.constant 6 : index
    %c0_54 = arith.constant 0 : index
    %c0_55 = arith.constant 0 : index
    %173 = vector.load %arg4[%c6, %c0_54, %c0_55] : memref<8x4x32xbf16, #tpu.memory_space<vmem>>, vector<1x4x32xbf16>
    %174 = vector.shape_cast %173 : vector<1x4x32xbf16> to vector<4x32xbf16>
    %cst_56 = arith.constant dense<0.000000e+00> : vector<32x32xf32>
    %175 = tpu.matmul %172, %174, %cst_56 {dimension_numbers = #tpu.dot_dimension_numbers<[1], [0], [0], [1], [0, 0, 1, 1], [], []>} : vector<32x4xbf16>, vector<4x32xbf16>, vector<32x32xf32> -> vector<32x32xf32>
    %176 = arith.addf %152, %175 : vector<32x32xf32>
    %177 = vector.extract_strided_slice %7 {offsets = [0, 28], sizes = [32, 4], strides = [1, 1]} : vector<32x96xf32> to vector<32x4xf32>
    %178 = vector.shape_cast %177 : vector<32x4xf32> to vector<4x8x4xf32>
    %179 = vector.extract_strided_slice %7 {offsets = [0, 60], sizes = [32, 4], strides = [1, 1]} : vector<32x96xf32> to vector<32x4xf32>
    %180 = vector.shape_cast %179 : vector<32x4xf32> to vector<4x8x4xf32>
    %181 = vector.extract_strided_slice %7 {offsets = [0, 92], sizes = [32, 4], strides = [1, 1]} : vector<32x96xf32> to vector<32x4xf32>
    %182 = vector.shape_cast %181 : vector<32x4xf32> to vector<4x8x4xf32>
    "tpu.trace_start"() <{level = 10 : i32, message = "bqd,bkd->bqk"}> : () -> ()
    %cst_57 = arith.constant dense<0.000000e+00> : vector<4x8x8xf32>
    %183 = tpu.matmul %178, %180, %cst_57 {dimension_numbers = #tpu.dot_dimension_numbers<[2], [2], [1], [1], [0, 0, 0, 1, 1, 1], [0], [0]>} : vector<4x8x4xf32>, vector<4x8x4xf32>, vector<4x8x8xf32> -> vector<4x8x8xf32>
    "tpu.trace_stop"() : () -> ()
    %cst_58 = arith.constant dense<0xFF800000> : vector<4x8xf32>
    %184 = vector.multi_reduction <maximumf>, %183, %cst_58 [2] : vector<4x8x8xf32> to vector<4x8xf32>
    %185 = vector.shape_cast %184 : vector<4x8xf32> to vector<4x8x1xf32>
    %186 = vector.broadcast %185 : vector<4x8x1xf32> to vector<4x8x8xf32>
    %187 = arith.subf %183, %186 : vector<4x8x8xf32>
    %188 = math.exp %187 : vector<4x8x8xf32>
    %cst_59 = arith.constant dense<0.000000e+00> : vector<4x8xf32>
    %189 = vector.multi_reduction <add>, %188, %cst_59 [2] : vector<4x8x8xf32> to vector<4x8xf32>
    %190 = vector.shape_cast %189 : vector<4x8xf32> to vector<4x8x1xf32>
    %191 = tpu.reciprocal %190 {approx = true} : vector<4x8x1xf32> -> vector<4x8x1xf32>
    %192 = vector.broadcast %191 : vector<4x8x1xf32> to vector<4x8x8xf32>
    %193 = arith.mulf %188, %192 : vector<4x8x8xf32>
    "tpu.trace_start"() <{level = 10 : i32, message = "bqk,bkd->bqd"}> : () -> ()
    %cst_60 = arith.constant dense<0.000000e+00> : vector<4x8x4xf32>
    %194 = tpu.matmul %193, %182, %cst_60 {dimension_numbers = #tpu.dot_dimension_numbers<[2], [1], [1], [2], [0, 0, 0, 1, 1, 2], [0], [0]>} : vector<4x8x8xf32>, vector<4x8x4xf32>, vector<4x8x4xf32> -> vector<4x8x4xf32>
    "tpu.trace_stop"() : () -> ()
    %195 = vector.shape_cast %194 : vector<4x8x4xf32> to vector<32x4xf32>
    %196 = arith.truncf %195 : vector<32x4xf32> to vector<32x4xbf16>
    %c7 = arith.constant 7 : index
    %c0_61 = arith.constant 0 : index
    %c0_62 = arith.constant 0 : index
    %197 = vector.load %arg4[%c7, %c0_61, %c0_62] : memref<8x4x32xbf16, #tpu.memory_space<vmem>>, vector<1x4x32xbf16>
    %198 = vector.shape_cast %197 : vector<1x4x32xbf16> to vector<4x32xbf16>
    %cst_63 = arith.constant dense<0.000000e+00> : vector<32x32xf32>
    %199 = tpu.matmul %196, %198, %cst_63 {dimension_numbers = #tpu.dot_dimension_numbers<[1], [0], [0], [1], [0, 0, 1, 1], [], []>} : vector<32x4xbf16>, vector<4x32xbf16>, vector<32x32xf32> -> vector<32x32xf32>
    %200 = arith.addf %176, %199 : vector<32x32xf32>
    %c0_64 = arith.constant 0 : index
    %c0_65 = arith.constant 0 : index
    %201 = vector.load %arg5[%c0_64, %c0_65] : memref<1x32xf32, #tpu.memory_space<vmem>>, vector<1x32xf32>
    %202 = vector.broadcast %201 : vector<1x32xf32> to vector<32x32xf32>
    %203 = arith.addf %200, %202 : vector<32x32xf32>
    %204 = arith.addf %1, %203 : vector<32x32xf32>
    %c0_66 = arith.constant 0 : index
    %c0_67 = arith.constant 0 : index
    %205 = vector.load %arg6[%c0_66, %c0_67] : memref<1x32xf32, #tpu.memory_space<vmem>>, vector<1x32xf32>
    %c0_68 = arith.constant 0 : index
    %c0_69 = arith.constant 0 : index
    %206 = vector.load %arg7[%c0_68, %c0_69] : memref<1x32xf32, #tpu.memory_space<vmem>>, vector<1x32xf32>
    %cst_70 = arith.constant dense<0.000000e+00> : vector<32xf32>
    %207 = vector.multi_reduction <add>, %204, %cst_70 [1] : vector<32x32xf32> to vector<32xf32>
    %208 = vector.shape_cast %207 : vector<32xf32> to vector<32x1xf32>
    %cst_71 = arith.constant 3.200000e+01 : f32
    %209 = vector.broadcast %cst_71 : f32 to vector<32x1xf32>
    %210 = arith.divf %208, %209 : vector<32x1xf32>
    %211 = vector.broadcast %210 : vector<32x1xf32> to vector<32x32xf32>
    %212 = arith.subf %204, %211 : vector<32x32xf32>
    %213 = arith.mulf %212, %212 : vector<32x32xf32>
    %cst_72 = arith.constant dense<0.000000e+00> : vector<32xf32>
    %214 = vector.multi_reduction <add>, %213, %cst_72 [1] : vector<32x32xf32> to vector<32xf32>
    %215 = vector.shape_cast %214 : vector<32xf32> to vector<32x1xf32>
    %cst_73 = arith.constant 3.200000e+01 : f32
    %216 = vector.broadcast %cst_73 : f32 to vector<32x1xf32>
    %217 = arith.divf %215, %216 : vector<32x1xf32>
    %218 = vector.broadcast %210 : vector<32x1xf32> to vector<32x32xf32>
    %219 = arith.subf %204, %218 : vector<32x32xf32>
    %cst_74 = arith.constant 9.99999974E-6 : f32
    %220 = vector.broadcast %cst_74 : f32 to vector<32x1xf32>
    %221 = arith.addf %217, %220 : vector<32x1xf32>
    %222 = math.rsqrt %221 : vector<32x1xf32>
    %223 = vector.broadcast %222 : vector<32x1xf32> to vector<32x32xf32>
    %224 = arith.mulf %219, %223 : vector<32x32xf32>
    %225 = vector.broadcast %205 : vector<1x32xf32> to vector<32x32xf32>
    %226 = arith.mulf %224, %225 : vector<32x32xf32>
    %227 = vector.broadcast %206 : vector<1x32xf32> to vector<32x32xf32>
    %228 = arith.addf %226, %227 : vector<32x32xf32>
    %229 = arith.truncf %228 : vector<32x32xf32> to vector<32x32xbf16>
    %c0_75 = arith.constant 0 : index
    %c0_76 = arith.constant 0 : index
    %230 = vector.load %arg8[%c0_75, %c0_76] : memref<32x128xbf16, #tpu.memory_space<vmem>>, vector<32x128xbf16>
    %cst_77 = arith.constant dense<0.000000e+00> : vector<32x128xf32>
    %231 = tpu.matmul %229, %230, %cst_77 {dimension_numbers = #tpu.dot_dimension_numbers<[1], [0], [0], [1], [0, 0, 1, 1], [], []>} : vector<32x32xbf16>, vector<32x128xbf16>, vector<32x128xf32> -> vector<32x128xf32>
    %c0_78 = arith.constant 0 : index
    %c0_79 = arith.constant 0 : index
    %232 = vector.load %arg9[%c0_78, %c0_79] : memref<1x128xf32, #tpu.memory_space<vmem>>, vector<1x128xf32>
    %233 = vector.broadcast %232 : vector<1x128xf32> to vector<32x128xf32>
    %234 = arith.addf %231, %233 : vector<32x128xf32>
    %cst_80 = arith.constant 5.000000e-01 : f32
    %235 = vector.broadcast %cst_80 : f32 to vector<32x128xf32>
    %236 = arith.mulf %235, %234 : vector<32x128xf32>
    %cst_81 = arith.constant 4.471500e-02 : f32
    %237 = vector.broadcast %cst_81 : f32 to vector<32x128xf32>
    %238 = arith.mulf %237, %234 : vector<32x128xf32>
    %239 = arith.mulf %238, %234 : vector<32x128xf32>
    %240 = arith.mulf %239, %234 : vector<32x128xf32>
    %241 = arith.addf %234, %240 : vector<32x128xf32>
    %cst_82 = arith.constant 0.797884583 : f32
    %242 = vector.broadcast %cst_82 : f32 to vector<32x128xf32>
    %243 = arith.mulf %242, %241 : vector<32x128xf32>
    %244 = math.tanh %243 : vector<32x128xf32>
    %cst_83 = arith.constant 1.000000e+00 : f32
    %245 = vector.broadcast %cst_83 : f32 to vector<32x128xf32>
    %246 = arith.addf %245, %244 : vector<32x128xf32>
    %247 = arith.mulf %236, %246 : vector<32x128xf32>
    %248 = arith.truncf %247 : vector<32x128xf32> to vector<32x128xbf16>
    %c0_84 = arith.constant 0 : index
    %c0_85 = arith.constant 0 : index
    %249 = vector.load %arg10[%c0_84, %c0_85] : memref<128x32xbf16, #tpu.memory_space<vmem>>, vector<128x32xbf16>
    %cst_86 = arith.constant dense<0.000000e+00> : vector<32x32xf32>
    %250 = tpu.matmul %248, %249, %cst_86 {dimension_numbers = #tpu.dot_dimension_numbers<[1], [0], [0], [1], [0, 0, 1, 1], [], []>} : vector<32x128xbf16>, vector<128x32xbf16>, vector<32x32xf32> -> vector<32x32xf32>
    %c0_87 = arith.constant 0 : index
    %c0_88 = arith.constant 0 : index
    %251 = vector.load %arg11[%c0_87, %c0_88] : memref<1x32xf32, #tpu.memory_space<vmem>>, vector<1x32xf32>
    %252 = vector.broadcast %251 : vector<1x32xf32> to vector<32x32xf32>
    %253 = arith.addf %250, %252 : vector<32x32xf32>
    %254 = arith.addf %228, %253 : vector<32x32xf32>
    %c0_89 = arith.constant 0 : index
    %c0_90 = arith.constant 0 : index
    %255 = vector.load %arg12[%c0_89, %c0_90] : memref<1x32xf32, #tpu.memory_space<vmem>>, vector<1x32xf32>
    %c0_91 = arith.constant 0 : index
    %c0_92 = arith.constant 0 : index
    %256 = vector.load %arg13[%c0_91, %c0_92] : memref<1x32xf32, #tpu.memory_space<vmem>>, vector<1x32xf32>
    %cst_93 = arith.constant dense<0.000000e+00> : vector<32xf32>
    %257 = vector.multi_reduction <add>, %254, %cst_93 [1] : vector<32x32xf32> to vector<32xf32>
    %258 = vector.shape_cast %257 : vector<32xf32> to vector<32x1xf32>
    %cst_94 = arith.constant 3.200000e+01 : f32
    %259 = vector.broadcast %cst_94 : f32 to vector<32x1xf32>
    %260 = arith.divf %258, %259 : vector<32x1xf32>
    %261 = vector.broadcast %260 : vector<32x1xf32> to vector<32x32xf32>
    %262 = arith.subf %254, %261 : vector<32x32xf32>
    %263 = arith.mulf %262, %262 : vector<32x32xf32>
    %cst_95 = arith.constant dense<0.000000e+00> : vector<32xf32>
    %264 = vector.multi_reduction <add>, %263, %cst_95 [1] : vector<32x32xf32> to vector<32xf32>
    %265 = vector.shape_cast %264 : vector<32xf32> to vector<32x1xf32>
    %cst_96 = arith.constant 3.200000e+01 : f32
    %266 = vector.broadcast %cst_96 : f32 to vector<32x1xf32>
    %267 = arith.divf %265, %266 : vector<32x1xf32>
    %268 = vector.broadcast %260 : vector<32x1xf32> to vector<32x32xf32>
    %269 = arith.subf %254, %268 : vector<32x32xf32>
    %cst_97 = arith.constant 9.99999974E-6 : f32
    %270 = vector.broadcast %cst_97 : f32 to vector<32x1xf32>
    %271 = arith.addf %267, %270 : vector<32x1xf32>
    %272 = math.rsqrt %271 : vector<32x1xf32>
    %273 = vector.broadcast %272 : vector<32x1xf32> to vector<32x32xf32>
    %274 = arith.mulf %269, %273 : vector<32x32xf32>
    %275 = vector.broadcast %255 : vector<1x32xf32> to vector<32x32xf32>
    %276 = arith.mulf %274, %275 : vector<32x32xf32>
    %277 = vector.broadcast %256 : vector<1x32xf32> to vector<32x32xf32>
    %278 = arith.addf %276, %277 : vector<32x32xf32>
    %279 = vector.shape_cast %278 : vector<32x32xf32> to vector<4x8x32xf32>
    %c0_98 = arith.constant 0 : index
    %c0_99 = arith.constant 0 : index
    %c0_100 = arith.constant 0 : index
    %280 = vector.load %arg14[%c0_98, %c0_99, %c0_100] : memref<4x8x32xf32, #tpu.memory_space<vmem>>, vector<4x8x32xf32>
    tpu.vector_store %arg14[%c0_98, %c0_99, %c0_100], %279 {strides = array<i32>} : memref<4x8x32xf32, #tpu.memory_space<vmem>>, vector<4x8x32xf32>,
    return
  }
  func.func @transform_0(%arg0: i32) -> (i32, i32, i32) {
    %c0_i32 = arith.constant 0 : i32
    %c0_i32_0 = arith.constant 0 : i32
    %c0_i32_1 = arith.constant 0 : i32
    return %arg0, %c0_i32, %c0_i32_0 : i32, i32, i32
  }
  func.func @transform_1(%arg0: i32) -> (i32, i32) {
    %c0_i32 = arith.constant 0 : i32
    %c0_i32_0 = arith.constant 0 : i32
    %c0_i32_1 = arith.constant 0 : i32
    return %c0_i32, %c0_i32_0 : i32, i32
  }
  func.func @transform_2(%arg0: i32) -> (i32, i32) {
    %c0_i32 = arith.constant 0 : i32
    %c0_i32_0 = arith.constant 0 : i32
    %c0_i32_1 = arith.constant 0 : i32
    return %c0_i32, %c0_i32_0 : i32, i32
  }
  func.func @transform_3(%arg0: i32) -> (i32, i32, i32) {
    %c0_i32 = arith.constant 0 : i32
    %c0_i32_0 = arith.constant 0 : i32
    %c0_i32_1 = arith.constant 0 : i32
    %c0_i32_2 = arith.constant 0 : i32
    return %c0_i32, %c0_i32_0, %c0_i32_1 : i32, i32, i32
  }
  func.func @transform_4(%arg0: i32) -> (i32, i32) {
    %c0_i32 = arith.constant 0 : i32
    %c0_i32_0 = arith.constant 0 : i32
    %c0_i32_1 = arith.constant 0 : i32
    return %c0_i32, %c0_i32_0 : i32, i32
  }
  func.func @transform_5(%arg0: i32) -> (i32, i32) {
    %c0_i32 = arith.constant 0 : i32
    %c0_i32_0 = arith.constant 0 : i32
    %c0_i32_1 = arith.constant 0 : i32
    return %c0_i32, %c0_i32_0 : i32, i32
  }
  func.func @transform_6(%arg0: i32) -> (i32, i32) {
    %c0_i32 = arith.constant 0 : i32
    %c0_i32_0 = arith.constant 0 : i32
    %c0_i32_1 = arith.constant 0 : i32
    return %c0_i32, %c0_i32_0 : i32, i32
  }
  func.func @transform_7(%arg0: i32) -> (i32, i32) {
    %c0_i32 = arith.constant 0 : i32
    %c0_i32_0 = arith.constant 0 : i32
    %c0_i32_1 = arith.constant 0 : i32
    return %c0_i32, %c0_i32_0 : i32, i32
  }
  func.func @transform_8(%arg0: i32) -> (i32, i32) {
    %c0_i32 = arith.constant 0 : i32
    %c0_i32_0 = arith.constant 0 : i32
    %c0_i32_1 = arith.constant 0 : i32
    return %c0_i32, %c0_i32_0 : i32, i32
  }
  func.func @transform_9(%arg0: i32) -> (i32, i32) {
    %c0_i32 = arith.constant 0 : i32
    %c0_i32_0 = arith.constant 0 : i32
    %c0_i32_1 = arith.constant 0 : i32
    return %c0_i32, %c0_i32_0 : i32, i32
  }
  func.func @transform_10(%arg0: i32) -> (i32, i32) {
    %c0_i32 = arith.constant 0 : i32
    %c0_i32_0 = arith.constant 0 : i32
    %c0_i32_1 = arith.constant 0 : i32
    return %c0_i32, %c0_i32_0 : i32, i32
  }
  func.func @transform_11(%arg0: i32) -> (i32, i32) {
    %c0_i32 = arith.constant 0 : i32
    %c0_i32_0 = arith.constant 0 : i32
    %c0_i32_1 = arith.constant 0 : i32
    return %c0_i32, %c0_i32_0 : i32, i32
  }
  func.func @transform_12(%arg0: i32) -> (i32, i32) {
    %c0_i32 = arith.constant 0 : i32
    %c0_i32_0 = arith.constant 0 : i32
    %c0_i32_1 = arith.constant 0 : i32
    return %c0_i32, %c0_i32_0 : i32, i32
  }
  func.func @transform_13(%arg0: i32) -> (i32, i32, i32) {
    %c0_i32 = arith.constant 0 : i32
    %c0_i32_0 = arith.constant 0 : i32
    %c0_i32_1 = arith.constant 0 : i32
    return %arg0, %c0_i32, %c0_i32_0 : i32, i32, i32
  }
}

</mosaic_0001>

<bundles_post_ra>
// kernel: tpu_custom_call.1
= control target key start
LH: loop header
LB: loop body
LE: loop exit
PB: predicated region body
PF: predicated region fallthrough
CT: control target
= control target key end

     0   :  { %18 = vsyncpa [#allocation3], 0  ;;  %s9290_s0 = inlined_call_operand.vmem [shape: f32[8,8,32], index: 0, kind: input, shape index: {}]   ;;  %s9291_s1 = inlined_call_operand.vmem [shape: bf16[32,96], index: 1, kind: input, shape index: {}]   ;;  %s9292_s2 = inlined_call_operand.hbm [shape: f32[1,96], index: 2, kind: input, shape index: {}]   ;;  %s9293_s3 = inlined_call_operand.hbm [shape: bf16[8,4,32], index: 3, kind: input, shape index: {}]   ;;  %s9294_s4 = inlined_call_operand.hbm [shape: f32[1,32], index: 4, kind: input, shape index: {}]   ;;  %s9295_s5 = inlined_call_operand.hbm [shape: f32[1,32], index: 5, kind: input, shape index: {}]   ;;  %s9296_s6 = inlined_call_operand.hbm [shape: f32[1,32], index: 6, kind: input, shape index: {}]   ;;  %s9297_s7 = inlined_call_operand.hbm [shape: bf16[32,128], index: 7, kind: input, shape index: {}]   ;;  %s9298_s8 = inlined_call_operand.hbm [shape: f32[1,128], index: 8, kind: input, shape index: {}]   ;;  %s9299_s9 = inlined_call_operand.vmem [shape: bf16[128,32], index: 9, kind: input, shape index: {}]   ;;  %s9300_s10 = inlined_call_operand.vmem [shape: f32[1,32], index: 10, kind: input, shape index: {}]   ;;  %s9301_s11 = inlined_call_operand.vmem [shape: f32[1,32], index: 11, kind: input, shape index: {}]   ;;  %s9302_s12 = inlined_call_operand.vmem [shape: f32[1,32], index: 12, kind: input, shape index: {}]   ;;  %s9303_s13 = inlined_call_operand.hbm [shape: f32[8,8,32], index: 13, kind: output, shape index: {}]  }
   0x1   :  { %19 = vsyncpa [#allocation6], 0 }
   0x2   :  { %20 = vsyncpa [#allocation9], 0 }
   0x3   :  { %21 = vsyncpa [#allocation12], 0 }
   0x4   :  { %22 = vsyncpa [#allocation4], 0 }
   0x5   :  { %24 = vsyncpa [#allocation4 + $0x1], 0  ;;  %s8396_s25 = smov 0   ;;  %s8398_s26 = smov 0  }
   0x6   :  { %s8400_s27 = smov 0   ;;  %s8402_s28 = smov 0  }
   0x7 LB: > { %9313 = sst [smem:[#allocation20_spill]] %s8273_s25  ;;  %s8417_s29 = sadd.s32 4294967295, %s8285_s28   ;;  %s8285_s28 = sphi %s8402_s28, %s9338_s28   ;;  %s8281_s27 = sphi %s8400_s27, %s9340_s27   ;;  %s8277_s26 = sphi %s8398_s26, %s9342_s26   ;;  %s8273_s25 = sphi %s8396_s25, %s9341_s25  }
   0x8   : > { %9314 = sst [smem:[#allocation21_spill]] %s8281_s27  ;;  %s6973_s30 = sadd.s32 4294967294, %s8285_s28  }
   0x9   : > { %9315 = sst [smem:[#allocation22_spill]] %s8285_s28  ;;  %s8421_s14 = sadd.s32 1, %s8285_s28  }
   0xa   : > { %9316 = sst [smem:[#allocation23_spill]] %s8421_s14  ;;  %s315_s15 = sadd.s32 1, %s8281_s27 }
   0xb   : > { %s312_s16 = ssub.s32 %s8285_s28, %s8421_s14  ;;  %p325_p0 = scmp.ne.s32.totalorder %s8281_s27, %s8277_s26 }
   0xc   : > { %p313_p1 = scmp.eq.s32.totalorder %s312_s16, 0  ;;  %p326_p2 = scmp.eq.s32.totalorder %s8417_s29, 1 }
   0xd   : > { %p331_p3 = scmp.ne.s32.totalorder %s8277_s26, %s8273_s25  ;;  %p332_p4 = scmp.eq.s32.totalorder %s6973_s30, 1 }
   0xe   : > { %s8432_s17 = scalar_select %p313_p1, %s8281_s27, %s315_s15  }
   0xf   : > { %p8434_p5 = por %p326_p2, %p325_p0  ;;  %p8438_p6 = por %p332_p4, %p331_p3 }
  0x10   : > { %9317 = sst [smem:[#allocation24_spill]] %s8432_s17  ;;  %p6974_p7 = scmp.ge.s32.totalorder %s8285_s28, 1 }
  0x11   : > { %s9318_s18 = scalar_select %p8434_p5, 1, 0 }
  0x12   : > { %s9319_s19 = scalar_select %p8438_p6, 1, 0 }
  0x13   : > { %p339_p8 = scmp.lt.s32.totalorder %s8285_s28, 3  ;;  %p9308_p9 = scmp.eq.s32.totalorder %s8417_s29, 0 }
  0x14   : > { %9320 = sst [smem:[#allocation25_spill]] %s9319_s19  ;;  %s8287_s21 = smov [#allocation5]  }
  0x15   : > { %p8445_p10 = pnand %p6974_p7, %p339_p8  ;;  %s365_s22 = sshll.u32 %s8287_s21, 4  ;;  %s366_s22 = int_to_ptr.vmem [resolvable:$true] %s365_s22 }
  0x16   : > { %s8288_s24 = smov [#allocation8]   ;;  %s8289_s15 = smov [#allocation11]  }
  0x17   : > { %s9321_s20 = scalar_select %p8445_p10, 1, 0 }
  0x18   : > { %p7748_p11 = pneg %p8445_p10  ;;  %s390_s30 = sshll.u32 %s8288_s24, 4  ;;  %s391_s30 = int_to_ptr.vmem [resolvable:$true] %s390_s30 }
  0x19   : > { %s411_s16 = sshll.u32 %s8289_s15, 4  ;;  %s8038_s21 = scalar_lea.vmem %s366_s22, 256  ;;  %s412_s16 = int_to_ptr.vmem [resolvable:$true] %s411_s16 }
  0x1a   : > { %p8453_p12 = pnand %p9308_p9, %p7748_p11  ;;  %p8039_p0 = scmp.ne.s32.totalorder %s366_s22, %s8038_s21 }
  0x1b   : > { %p8046_p3 = scmp.lt.s32.totalorder %s366_s22, %s366_s22  ;;  %p8047_p4 = scmp.lt.s32.totalorder %s8038_s21, %s8038_s21 }
  0x1c   : > { %p8459_p13 = pneg %p8453_p12 }
  0x1d   : > { %p8048_p7 = por %p8047_p4, %p8046_p3 }
  0x1e   : > { %p8041_p1 = pnand %p8039_p0, %p8459_p13 }
  0x20   : > { %p8042_p2 = pneg %p8041_p1 }
  0x22   : > { %p8049_p8 = pnand %p8048_p7, %p8042_p2 }
  0x24   : > { %8052 = shalt.err (!%p8049_p8)
}
  0x25   : > { %s8290_s24 = smov 32   ;;  %s8291_s15 = smov 2  }
  0x26   : > { %7754 = dma.hbm_to_vmem [thread:$0]  (!%p8453_p12), %s9293_s3, 256, %s366_s22, [#allocation6], %s8290_s24, %s8290_s24, %s8291_s15  }
  0x27   : > { %s8064_s19 = scalar_lea.vmem %s391_s30, 16  ;;  %s8071_s25 = scalar_lea.vmem %s391_s30, 32 }
  0x28   : > { %p8065_p11 = scmp.ne.s32.totalorder %s391_s30, %s8064_s19  ;;  %p8072_p1 = scmp.lt.s32.totalorder %s391_s30, %s391_s30 }
  0x29   : > { %p8073_p6 = scmp.lt.s32.totalorder %s8071_s25, %s8064_s19 }
  0x2a   : > { %p8067_p9 = pnand %p8065_p11, %p8459_p13 }
  0x2b   : > { %p8074_p3 = por %p8073_p6, %p8072_p1 }
  0x2c   : > { %p8068_p0 = pneg %p8067_p9 }
  0x2e   : > { %p8075_p2 = pnand %p8074_p3, %p8068_p0 }
  0x30   : > { %8078 = shalt.err (!%p8075_p2)
}
  0x31   : > { %7760 = dma.hbm_to_vmem [thread:$0]  (!%p8453_p12), %s9295_s5, 16, %s391_s30, [#allocation9]  }
  0x32   : > { %s8090_s27 = scalar_lea.vmem %s412_s16, 256  ;;  %p8098_p9 = scmp.lt.s32.totalorder %s412_s16, %s412_s16 }
  0x33   : > { %p8091_p4 = scmp.ne.s32.totalorder %s412_s16, %s8090_s27  ;;  %p8099_p11 = scmp.lt.s32.totalorder %s8090_s27, %s8090_s27 }
  0x35   : > { %p8093_p7 = pnand %p8091_p4, %p8459_p13  ;;  %p8100_p5 = por %p8099_p11, %p8098_p9 }
  0x37   : > { %p8094_p8 = pneg %p8093_p7 }
  0x39   : > { %p8101_p10 = pnand %p8100_p5, %p8094_p8 }
  0x3b   : > { %8104 = shalt.err (!%p8101_p10)
}
  0x3c   : > { %s8292_s25 = smov 64   ;;  %s8293_s14 = smov 4  }
  0x3d   : > { %7766 = dma.hbm_to_vmem [thread:$0]  (!%p8453_p12), %s9297_s7, 256, %s412_s16, [#allocation12], %s8292_s25, %s8292_s25, %s8293_s14  }
  0x3e   : > { %s8294_s22 = smov [#allocation2]   ;;  %s8295_s24 = smov [#allocation7]  }
  0x3f   : > { %s355_s30 = sshll.u32 %s8294_s22, 4  ;;  %s379_s15 = sshll.u32 %s8295_s24, 4  ;;  %s356_s30 = int_to_ptr.vmem [resolvable:$true] %s355_s30  ;;  %s380_s15 = int_to_ptr.vmem [resolvable:$true] %s379_s15 }
  0x40   : > { %s8116_s21 = scalar_lea.vmem %s356_s30, 16  ;;  %s8123_s27 = scalar_lea.vmem %s356_s30, 32 }
  0x41   : > { %p8117_p6 = scmp.ne.s32.totalorder %s356_s30, %s8116_s21  ;;  %p8124_p10 = scmp.lt.s32.totalorder %s356_s30, %s356_s30 }
  0x42   : > { %p8125_p1 = scmp.lt.s32.totalorder %s8123_s27, %s8116_s21 }
  0x43   : > { %p8119_p0 = pnand %p8117_p6, %p8459_p13 }
  0x44   : > { %p8126_p3 = por %p8125_p1, %p8124_p10 }
  0x45   : > { %p8120_p5 = pneg %p8119_p0 }
  0x47   : > { %p8127_p2 = pnand %p8126_p3, %p8120_p5 }
  0x49   : > { %8130 = shalt.err (!%p8127_p2)
}
  0x4a   : > { %7751 = dma.hbm_to_vmem [thread:$0]  (!%p8453_p12), %s9292_s2, 16, %s356_s30, [#allocation3]  }
  0x4b   : > { %s8142_s25 = scalar_lea.vmem %s380_s15, 16  ;;  %s8149_s14 = scalar_lea.vmem %s380_s15, 32 }
  0x4c   : > { %p8143_p4 = scmp.ne.s32.totalorder %s380_s15, %s8142_s25  ;;  %p8150_p9 = scmp.lt.s32.totalorder %s380_s15, %s380_s15 }
  0x4d   : > { %p8151_p11 = scmp.lt.s32.totalorder %s8149_s14, %s8142_s25 }
  0x4e   : > { %p8145_p7 = pnand %p8143_p4, %p8459_p13 }
  0x4f   : > { %p8152_p6 = por %p8151_p11, %p8150_p9 }
  0x50   : > { %p8146_p8 = pneg %p8145_p7 }
  0x52   : > { %p8153_p0 = pnand %p8152_p6, %p8146_p8 }
  0x54   : > { %8156 = shalt.err (!%p8153_p0)
}
  0x55   : > { %7757 = dma.hbm_to_vmem [thread:$0]  (!%p8453_p12), %s9294_s4, 16, %s380_s15, [#allocation6]  }
  0x56   : > { %s8296_s30 = smov [#allocation10]   ;;  %s8297_s21 = smov [#allocation13]  }
  0x57   : > { %s401_s24 = sshll.u32 %s8296_s30, 4  ;;  %s425_s27 = sshll.u32 %s8297_s21, 4  ;;  %s402_s24 = int_to_ptr.vmem [resolvable:$true] %s401_s24  ;;  %s426_s27 = int_to_ptr.vmem [resolvable:$true] %s425_s27 }
  0x58   : > { %s8168_s19 = scalar_lea.vmem %s402_s24, 16  ;;  %s8175_s16 = scalar_lea.vmem %s402_s24, 32 }
  0x59   : > { %p8169_p5 = scmp.ne.s32.totalorder %s402_s24, %s8168_s19  ;;  %p8176_p3 = scmp.lt.s32.totalorder %s402_s24, %s402_s24 }
  0x5a   : > { %p8177_p2 = scmp.lt.s32.totalorder %s8175_s16, %s8168_s19 }
  0x5b   : > { %p8171_p10 = pnand %p8169_p5, %p8459_p13 }
  0x5c   : > { %p8178_p4 = por %p8177_p2, %p8176_p3 }
  0x5d   : > { %p8172_p1 = pneg %p8171_p10 }
  0x5f   : > { %p8179_p7 = pnand %p8178_p4, %p8172_p1 }
  0x61   : > { %8182 = shalt.err (!%p8179_p7)
}
  0x62   : > { %7763 = dma.hbm_to_vmem [thread:$0]  (!%p8453_p12), %s9296_s6, 16, %s402_s24, [#allocation9]  }
  0x63   : > { %s8194_s14 = scalar_lea.vmem %s426_s27, 16  ;;  %s8201_s28 = scalar_lea.vmem %s426_s27, 32 }
  0x64   : > { %p8195_p8 = scmp.ne.s32.totalorder %s426_s27, %s8194_s14  ;;  %p8202_p6 = scmp.lt.s32.totalorder %s426_s27, %s426_s27 }
  0x65   : > { %p8203_p0 = scmp.lt.s32.totalorder %s8201_s28, %s8194_s14 }
  0x66   : > { %p8197_p9 = pnand %p8195_p8, %p8459_p13 }
  0x67   : > { %p8204_p5 = por %p8203_p0, %p8202_p6 }
  0x68   : > { %p8198_p11 = pneg %p8197_p9 }
  0x6a   : > { %p8205_p10 = pnand %p8204_p5, %p8198_p11 }
  0x6c   : > { %8208 = shalt.err (!%p8205_p10)
}
  0x6d   : > { %7769 = dma.hbm_to_vmem [thread:$0]  (!%p8453_p12), %s9298_s8, 16, %s426_s27, [#allocation12]  }
  0x6e   : > { %p9324_p1 = scmp.ne.s32.totalorder %s9321_s20, 0 }
  0x6f   : > { %p9325_p3 = scmp.eq.s32.totalorder (!%p9324_p1), %s8417_s29, 0 }
  0x70   : > { %459 = sbr.rel (%p9324_p1) target bundleno = 7286 (0x1c76), region = 72 }
  0x75   : > { %8252 = dma.done.wait (%p9325_p3), [#allocation3], 16   ;;  %p9326_p13 = pmov %p9325_p3 }
  0x76   : > { %p9327_p2 = pmov %p9325_p3 }
  0x77   : > { %8254 = vsyncadd (%p9326_p13), [#allocation3], 4294967280 }
  0x78   : > { %8256 = dma.done.wait (%p9327_p2), [#allocation6], 272   ;;  %p9328_p4 = pmov %p9327_p2 }
  0x79   : > { %p9329_p7 = pmov %p9327_p2 }
  0x7a   : > { %8258 = vsyncadd (%p9328_p4), [#allocation6], 4294967024 }
  0x7b   : > { %8260 = dma.done.wait (%p9329_p7), [#allocation9], 32   ;;  %p9330_p12 = pmov %p9327_p2 }
  0x7c   : > { %p9331_p8 = pmov %p9327_p2 }
  0x7d   : > { %8262 = vsyncadd (%p9330_p12), [#allocation9], 4294967264 }
  0x7e   : > { %8264 = dma.done.wait (%p9331_p8), [#allocation12], 272   ;;  %p9332_p9 = pmov %p9327_p2 }
  0x7f   : > { %s6992_s17 = sshll.u32 %s8417_s29, 2  ;;  %v7859_v0 = vld [vmem:[%s9291_s1 + $0x8] sm:$0xff]   ;;  %v7860_v1 = vld [vmem:[%s9291_s1] sm:$0xff]   ;;  %vm564_vm0 = vcmask 261120   ;;  %v8298_v8 = vmov 0.0   ;;  %vm8299_vm1 = vmmov 0  }
  0x80   : > { %8266 = vsyncadd (%p9332_p9), [#allocation12], 4294967024  ;;  %p528_p11 = scmp.lt.s32.totalorder %s6992_s17, 7  ;;  %7306 = vmatprep.subr.bf16.mxu0 %v7859_v0  ;;  %7319 = vmatprep.subr.mxu1 %v8298_v8  ;;  %v6994_v9 = vld [vmem:[#allocation2] ss:$0 sm:$0xff]  ;;  %s8300_s15 = smov 96  }
  0x81   : > { %7307 = vmatpush3.bf16.msra.mxu0 %v7859_v0  ;;  %7321 = vmatprep.mubr.msk.f32.mxu1 %vm8299_vm1, %v8298_v8  ;;  %vm623_vm2 = vcmask 31744   ;;  %vm929_vm3 = vcmask 64512   ;;  %s8301_s14 = smov 64   ;;  %s8302_s28 = smov 92   ;;  %vm1951_vm4 = vcmask 1041408  }
  0x82   : > { %s9344_s17 = smov (!%p528_p11, %s6992_s17), 7  ;;  %7308 = vmatprep.subr.bf16.mxu0 %v7860_v1  ;;  %s8303_s22 = smov 124  }
  0x83   : > { %s6993_s20 = sshll.u32 %s9344_s17, 3  ;;  %s8304_s30 = smov 60  }
  0x84   : > { %s8534_s21 = scalar_lea.vmem %s9290_s0, %s6993_s20  ;;  %s8305_s17 = smov 88  }
  0x85   : > { %v535_v2 = vld [vmem:[%s8534_s21] sm:$0xff]  ;;  %v536_v3 = vld [vmem:[%s8534_s21 + $0x8] sm:$0xff]  ;;  %v537_v4 = vld [vmem:[%s8534_s21 + $0x10] sm:$0xff]  ;;  %7309 = vmatpush3.bf16.msra.mxu0 %v7860_v1  ;;  %s8306_s20 = smov 120   ;;  %s8307_s23 = smov 56  }
  0x86   : > { %v539_v5 = vpack.c.bf16 %v536_v3, %v535_v2  ;;  %v538_v6 = vld [vmem:[%s8534_s21 + $0x18] sm:$0xff]  ;;  %7314 = vmatprep.subr.mxu0 %v8298_v8  ;;  %s8308_s24 = smov 116   ;;  %s8309_s27 = smov 84  }
  0x87   : > { %v540_v7 = vpack.c.bf16 %v538_v6, %v537_v4  ;;  %s8310_s19 = smov 52   ;;  %s8311_s16 = smov 112  }
  0x88   : > { %7310 = vmatprep.mubr.msk.bf16.mxu0 %vm564_vm0, %v539_v5  ;;  %s8312_s25 = smov 80   ;;  %p9333_p0 = scmp.ne.s32.totalorder %s9318_s18, 0 }
  0x89   : > { %7311 = vmatmul.mubr.msk.bf16.vlgmr.msra.gmra.mxu0 %vm564_vm0, %v540_v7 }
  0x8a   : > { %7316 = vmatprep.mubr.msk.f32.mxu0 %vm8299_vm1, %v8298_v8 }
 0x149   : > { %v7312_v10 = vpop.f32.mrf.mxu0 }
 0x14a   : > { %v8554_v11 = vadd.f32 %v7312_v10, %v6994_v9 }
 0x14b   : > { %v605_v12 = vpop.f32.mrf.mxu0 }
 0x14c   : > { %v8556_v13 = vadd.f32 %v6994_v9, %v605_v12  ;;  %776 = vrot.lane.b32.xlu1 %v8554_v11, %s8300_s15 }
 0x14d   : > { %v7313_v14 = vpop.f32.mrf.mxu0 }
 0x14e   : > { %v8559_v15 = vadd.f32 %v7313_v14, %v6994_v9  ;;  %621 = vrot.lane.b32.xlu0 %v8556_v13, %s8300_s15 }
 0x14f   : > { %v608_v16 = vpop.f32.mrf.mxu0 }
 0x150   : > { %v8562_v17 = vadd.f32 %v6994_v9, %v608_v16  ;;  %853 = vrot.lane.b32.xlu1 %v8559_v15, %s8300_s15 }
 0x152   : > { %699 = vrot.lane.b32.xlu0 %v8562_v17, %s8300_s15  ;;  %s8313_s15 = smov 48  }
 0x1be   : > { %v777_v18 = vpop.permute.xlu1 %776 }
 0x1c0   : > { %v622_v19 = vpop.permute.xlu0 %621 }
 0x1c1   : > { %7315 = vmatpush3.xpose.msk.msra.mxu0 %vm623_vm2, %v622_v19 }
 0x1c2   : > { %7329 = vmatprep.subr.mxu0 %v8298_v8  ;;  %v854_v20 = vpop.permute.xlu1 %853 }
 0x1c4   : > { %7317 = vmatmul.mubr.msk.f32.vlgmr.msra.gmra.mxu0 %vm623_vm2, %v8556_v13  ;;  %v700_v21 = vpop.permute.xlu0 %699 }
 0x1c5   : > { %7320 = vmatpush3.xpose.msk.msra.mxu1 %vm623_vm2, %v700_v21  ;;  %7330 = vmatpush3.xpose.msk.msra.mxu0 %vm623_vm2, %v854_v20 }
 0x1c6   : > { %7331 = vmatprep.mubr.msk.f32.mxu0 %vm8299_vm1, %v8298_v8  ;;  %7324 = vmatprep.subr.mxu1 %v8298_v8 }
 0x1c7   : > { %7339 = vmatprep.subr.mxu0 %v8298_v8 }
 0x1c8   : > { %7322 = vmatmul.mubr.msk.f32.vlgmr.msra.gmra.mxu1 %vm623_vm2, %v8562_v17  ;;  %7332 = vmatmul.mubr.msk.f32.vlgmr.msra.gmra.mxu0 %vm623_vm2, %v8559_v15 }
 0x1c9   : > { %7325 = vmatpush3.xpose.msk.msra.mxu1 %vm623_vm2, %v777_v18  ;;  %7326 = vmatprep.mubr.msk.f32.mxu1 %vm8299_vm1, %v8298_v8 }
 0x1ca   : > { %7334 = vmatprep.subr.mxu1 %v8298_v8  ;;  %7341 = vmatprep.mubr.msk.f32.mxu0 %vm8299_vm1, %v8298_v8 }
 0x1cc   : > { %7327 = vmatmul.mubr.msk.f32.vlgmr.msra.gmra.mxu1 %vm623_vm2, %v8554_v11 }
 0x1cd   : > { %7336 = vmatprep.mubr.msk.f32.mxu1 %vm8299_vm1, %v8298_v8 }
 0x284   : > { %v694_v22 = vpop.f32.mrf.mxu0 }
 0x285   : > { %v930_v23 = vsel %vm929_vm3, %v694_v22, -inf }
 0x286   : > { %931 = vmax.xlane.f32.xlu0 %v930_v23  ;;  %v7318_v24 = vpop.f32.mrf.mxu0 }
 0x288   : > { %v771_v25 = vpop.f32.mrf.mxu1  ;;  %v925_v26 = vpop.f32.mrf.mxu0 }
 0x289   : > { %v933_v27 = vsel %vm929_vm3, %v771_v25, -inf  ;;  %v939_v33 = vsel %vm929_vm3, %v925_v26, -inf }
 0x28a   : > { %v7333_v28 = vpop.f32.mrf.mxu0  ;;  %934 = vmax.xlane.f32.xlu1 %v933_v27  ;;  %v7323_v29 = vpop.f32.mrf.mxu1 }
 0x28c   : > { %v848_v30 = vpop.f32.mrf.mxu1 }
 0x28d   : > { %v936_v31 = vsel %vm929_vm3, %v848_v30, -inf }
 0x28e   : > { %937 = vmax.xlane.f32.xlu0 %v936_v31  ;;  %v7328_v32 = vpop.f32.mrf.mxu1 }
 0x292   : > { %940 = vmax.xlane.f32.xlu0 %v939_v33 }
 0x29b   : > { %974 = vrot.lane.b32.xlu1 %v8556_v13, %s8301_s14 }
 0x29f   : > { %1126 = vrot.lane.b32.xlu1 %v8554_v11, %s8301_s14 }
 0x2a3   : > { %1202 = vrot.lane.b32.xlu1 %v8559_v15, %s8301_s14 }
 0x2a7   : > { %1361 = vrot.lane.b32.xlu1 %v8562_v17, %s8302_s28 }
 0x2a8   : > { %1050 = vrot.lane.b32.xlu0 %v8562_v17, %s8301_s14  ;;  %s8314_s14 = smov 108  }
 0x2ac   : > { %1283 = vrot.lane.b32.xlu0 %v8556_v13, %s8302_s28 }
 0x30f   : > { %v932_v34 = vpop.xlane.xlu0 %931 }
 0x310   : > { %v942_v35 = vsub.f32 %v694_v22, %v932_v34 }
 0x312   : > { %v946_v36 = vmul.f32 1.442695, %v942_v35 }
 0x313   : > { %v935_v37 = vpop.xlane.xlu1 %934 }
 0x314   : > { %7871 = vpow2.f32 %v946_v36  ;;  %v943_v38 = vsub.f32 %v771_v25, %v935_v37 }
 0x316   : > { %v948_v39 = vmul.f32 1.442695, %v943_v38 }
 0x317   : > { %v975_v40 = vpop.permute.xlu1 %974  ;;  %v938_v41 = vpop.xlane.xlu0 %937 }
 0x318   : > { %7873 = vpow2.f32 %v948_v39  ;;  %7335 = vmatpush3.msra.mxu1 %v975_v40  ;;  %v944_v52 = vsub.f32 %v848_v30, %v938_v41 }
 0x319   : > { %7344 = vmatprep.subr.mxu1 %v8298_v8 }
 0x31a   : > { %v950_v53 = vmul.f32 1.442695, %v944_v52 }
 0x31b   : > { %v941_v42 = vpop.xlane.xlu0 %940  ;;  %v1127_v56 = vpop.permute.xlu1 %1126 }
 0x31c   : > { %v945_v43 = vsub.f32 %v925_v26, %v941_v42 }
 0x31e   : > { %v952_v44 = vmul.f32 1.442695, %v945_v43 }
 0x31f   : > { %v1051_v45 = vpop.permute.xlu0 %1050  ;;  %v1203_v57 = vpop.permute.xlu1 %1202 }
 0x320   : > { %7875 = vpow2.f32 %v952_v44  ;;  %7340 = vmatpush3.msra.mxu0 %v1051_v45 }
 0x321   : > { %v7872_v46 = vpop.eup %7871  ;;  %7349 = vmatprep.subr.mxu0 %v8298_v8  ;;  %7877 = vpow2.f32 %v950_v53 }
 0x322   : > { %v954_v47 = vsel %vm929_vm3, %v7872_v46, 0.0 }
 0x323   : > { %955 = vadd.xlane.f32.xlu1 %v954_v47  ;;  %v1362_v58 = vpop.permute.xlu1 %1361  ;;  %v1284_v59 = vpop.permute.xlu0 %1283 }
 0x325   : > { %v7874_v48 = vpop.eup %7873 }
 0x326   : > { %v957_v49 = vsel %vm929_vm3, %v7874_v48, 0.0 }
 0x327   : > { %958 = vadd.xlane.f32.xlu0 %v957_v49 }
 0x32d   : > { %v7876_v50 = vpop.eup %7875 }
 0x32e   : > { %v963_v51 = vsel %vm929_vm3, %v7876_v50, 0.0  ;;  %v7878_v54 = vpop.eup %7877 }
 0x32f   : > { %964 = vadd.xlane.f32.xlu0 %v963_v51  ;;  %v960_v55 = vsel %vm929_vm3, %v7878_v54, 0.0 }
 0x334   : > { %1359 = vrot.lane.b32.xlu1 %v8562_v17, %s8303_s22 }
 0x338   : > { %1517 = vrot.lane.b32.xlu1 %v8559_v15, %s8302_s28 }
 0x345   : > { %1281 = vrot.lane.b32.xlu0 %v8556_v13, %s8303_s22 }
 0x349   : > { %1439 = vrot.lane.b32.xlu0 %v8554_v11, %s8302_s28  ;;  %s8315_s28 = smov 76  }
 0x34d   : > { %1437 = vrot.lane.b32.xlu0 %v8554_v11, %s8303_s22 }
 0x35c   : > { %961 = vadd.xlane.f32.xlu1 %v960_v55 }
 0x36d   : > { %1515 = vrot.lane.b32.xlu1 %v8559_v15, %s8303_s22  ;;  %s8316_s22 = smov 44  }
 0x3ac   : > { %v956_v60 = vpop.xlane.xlu1 %955 }
 0x3ad   : > { %7879 = vrcp.f32 %v956_v60 }
 0x3b0   : > { %v959_v61 = vpop.xlane.xlu0 %958  ;;  %v1360_v4 = vpop.permute.xlu1 %1359 }
 0x3b1   : > { %7881 = vrcp.f32 %v959_v61 }
 0x3b4   : > { %v1518_v6 = vpop.permute.xlu1 %1517 }
 0x3b8   : > { %v965_v62 = vpop.xlane.xlu0 %964 }
 0x3b9   : > { %7883 = vrcp.f32 %v965_v62 }
 0x3ba   : > { %v7880_v63 = vpop.eup %7879 }
 0x3bb   : > { %v970_v0 = vmul.f32 %v7880_v63, %v7872_v46 }
 0x3bc   : > { %v1282_v10 = vpop.permute.xlu0 %1281 }
 0x3bd   : > { %7337 = vmatmul.mubr.msk.f32.vlgmr.msra.gmra.mxu1 %vm929_vm3, %v970_v0 }
 0x3be   : > { %v7882_v1 = vpop.eup %7881  ;;  %7345 = vmatpush3.msra.mxu1 %v1127_v56  ;;  %7346 = vmatprep.mubr.msk.f32.mxu1 %vm8299_vm1, %v8298_v8 }
 0x3bf   : > { %v971_v2 = vmul.f32 %v7882_v1, %v7874_v48  ;;  %7354 = vmatprep.subr.mxu1 %v8298_v8 }
 0x3c0   : > { %v1440_v16 = vpop.permute.xlu0 %1439 }
 0x3c1   : > { %7342 = vmatmul.mubr.msk.f32.vlgmr.msra.gmra.mxu0 %vm929_vm3, %v971_v2 }
 0x3c2   : > { %7350 = vmatpush3.msra.mxu0 %v1203_v57  ;;  %7351 = vmatprep.mubr.msk.f32.mxu0 %vm8299_vm1, %v8298_v8 }
 0x3c3   : > { %7359 = vmatprep.subr.mxu0 %v8298_v8 }
 0x3c4   : > { %v1438_v18 = vpop.permute.xlu0 %1437 }
 0x3c6   : > { %v7884_v3 = vpop.eup %7883 }
 0x3c7   : > { %v973_v5 = vmul.f32 %v7884_v3, %v7876_v50 }
 0x3c9   : > { %7352 = vmatmul.mubr.msk.f32.vlgmr.msra.gmra.mxu0 %vm929_vm3, %v973_v5 }
 0x3ca   : > { %7360 = vmatpush3.xpose.msk.msra.mxu0 %vm623_vm2, %v1362_v58  ;;  %7361 = vmatprep.mubr.msk.f32.mxu0 %vm8299_vm1, %v8298_v8 }
 0x3cb   : > { %7369 = vmatprep.subr.mxu0 %v8298_v8 }
 0x3cd   : > { %7362 = vmatmul.mubr.msk.f32.vlgmr.msra.gmra.mxu0 %vm623_vm2, %v1360_v4 }
 0x3ce   : > { %7370 = vmatpush3.xpose.msk.msra.mxu0 %vm623_vm2, %v1518_v6  ;;  %7371 = vmatprep.mubr.msk.f32.mxu0 %vm8299_vm1, %v8298_v8 }
 0x3cf   : > { %7379 = vmatprep.subr.mxu0 %v8298_v8 }
 0x3e5   : > { %v962_v7 = vpop.xlane.xlu1 %961 }
 0x3e6   : > { %7885 = vrcp.f32 %v962_v7 }
 0x3e9   : > { %v1516_v9 = vpop.permute.xlu1 %1515 }
 0x3ea   : > { %7372 = vmatmul.mubr.msk.f32.vlgmr.msra.gmra.mxu0 %vm623_vm2, %v1516_v9 }
 0x3eb   : > { %7381 = vmatprep.mubr.msk.f32.mxu0 %vm8299_vm1, %v8298_v8 }
 0x3f3   : > { %v7886_v12 = vpop.eup %7885 }
 0x3f4   : > { %v972_v14 = vmul.f32 %v7886_v12, %v7878_v54 }
 0x3f6   : > { %7347 = vmatmul.mubr.msk.f32.vlgmr.msra.gmra.mxu1 %vm929_vm3, %v972_v14 }
 0x3f7   : > { %7355 = vmatpush3.xpose.msk.msra.mxu1 %vm623_vm2, %v1284_v59  ;;  %7356 = vmatprep.mubr.msk.f32.mxu1 %vm8299_vm1, %v8298_v8 }
 0x3f8   : > { %7364 = vmatprep.subr.mxu1 %v8298_v8 }
 0x3fa   : > { %7357 = vmatmul.mubr.msk.f32.vlgmr.msra.gmra.mxu1 %vm623_vm2, %v1282_v10 }
 0x3fb   : > { %7365 = vmatpush3.xpose.msk.msra.mxu1 %vm623_vm2, %v1440_v16  ;;  %7366 = vmatprep.mubr.msk.f32.mxu1 %vm8299_vm1, %v8298_v8 }
 0x3fc   : > { %7374 = vmatprep.subr.mxu1 %v8298_v8 }
 0x3fe   : > { %7367 = vmatmul.mubr.msk.f32.vlgmr.msra.gmra.mxu1 %vm623_vm2, %v1438_v18 }
 0x3ff   : > { %7376 = vmatprep.mubr.msk.f32.mxu1 %vm8299_vm1, %v8298_v8 }
 0x47d   : > { %v8650_v19 = vpop.f32.mrf.mxu1 }
 0x47f   : > { %v7338_v20 = vpop.f32.mrf.mxu1 }
 0x481   : > { %v8652_v21 = vpop.f32.mrf.mxu0 }
 0x482   : > { %v1278_v22 = vpack.c.bf16 %v8652_v21, %v8650_v19 }
 0x483   : > { %v7343_v23 = vpop.f32.mrf.mxu0 }
 0x489   : > { %v8656_v24 = vpop.f32.mrf.mxu0 }
 0x48b   : > { %v7353_v25 = vpop.f32.mrf.mxu0 }
 0x48d   : > { %v1433_v26 = vpop.f32.mrf.mxu0 }
 0x48e   : > { %v1596_v27 = vsel %vm929_vm3, %v1433_v26, -inf }
 0x48f   : > { %1597 = vmax.xlane.f32.xlu1 %v1596_v27  ;;  %v7363_v28 = vpop.f32.mrf.mxu0 }
 0x490   : > { %v1280_v28 = vld [vmem:[#allocation5] sm:$0x3] }
 0x4a0   : > { %1637 = vrot.lane.b32.xlu1 %v8556_v13, %s8304_s30 }
 0x4aa   : > { %v1589_v29 = vpop.f32.mrf.mxu0 }
 0x4ab   : > { %v1602_v40 = vsel %vm929_vm3, %v1589_v29, -inf }
 0x4ac   : > { %v7373_v30 = vpop.f32.mrf.mxu0 }
 0x4b6   : > { %v8661_v31 = vpop.f32.mrf.mxu1 }
 0x4b7   : > { %v1279_v32 = vpack.c.bf16 %v8656_v24, %v8661_v31 }
 0x4b8   : > { %v7348_v33 = vpop.f32.mrf.mxu1 }
 0x4ba   : > { %v1355_v34 = vpop.f32.mrf.mxu1 }
 0x4bb   : > { %v1593_v35 = vsel %vm929_vm3, %v1355_v34, -inf }
 0x4bc   : > { %1594 = vmax.xlane.f32.xlu0 %v1593_v35  ;;  %v7358_v36 = vpop.f32.mrf.mxu1 }
 0x4be   : > { %v1511_v37 = vpop.f32.mrf.mxu1 }
 0x4bf   : > { %v1599_v38 = vsel %vm929_vm3, %v1511_v37, -inf }
 0x4c0   : > { %1600 = vmax.xlane.f32.xlu0 %v1599_v38  ;;  %v7368_v39 = vpop.f32.mrf.mxu1 }
 0x4c4   : > { %1603 = vmax.xlane.f32.xlu0 %v1602_v40 }
 0x518   : > { %v1598_v41 = vpop.xlane.xlu1 %1597 }
 0x519   : > { %v1606_v42 = vsub.f32 %v1433_v26, %v1598_v41  ;;  %v1944_v26 = vld [vmem:[#allocation5 + $0x2] sm:$0x3] }
 0x51a   : > { %v1953_v27 = vsel %vm1951_vm4, %v1944_v26, 0 }
 0x51b   : > { %v1611_v43 = vmul.f32 1.442695, %v1606_v42  ;;  %v2011_v42 = vsel %vm1951_vm4, %v1280_v28, 0 }
 0x51c   : > { %v1638_v44 = vpop.permute.xlu1 %1637 }
 0x51d   : > { %7887 = vpow2.f32 %v1611_v43  ;;  %7375 = vmatpush3.msra.mxu1 %v1638_v44 }
 0x51e   : > { %7384 = vmatprep.subr.mxu1 %v8298_v8 }
 0x52a   : > { %v7888_v45 = vpop.eup %7887 }
 0x52b   : > { %v1620_v46 = vsel %vm929_vm3, %v7888_v45, 0.0 }
 0x52c   : > { %1621 = vadd.xlane.f32.xlu0 %v1620_v46 }
 0x545   : > { %v1595_v47 = vpop.xlane.xlu0 %1594 }
 0x546   : > { %v1605_v48 = vsub.f32 %v1355_v34, %v1595_v47 }
 0x548   : > { %v1609_v49 = vmul.f32 1.442695, %v1605_v48 }
 0x549   : > { %v1601_v50 = vpop.xlane.xlu0 %1600 }
 0x54a   : > { %7889 = vpow2.f32 %v1609_v49  ;;  %v1607_v51 = vsub.f32 %v1511_v37, %v1601_v50 }
 0x54c   : > { %v1613_v52 = vmul.f32 1.442695, %v1607_v51 }
 0x54d   : > { %v1604_v53 = vpop.xlane.xlu0 %1603 }
 0x54e   : > { %7891 = vpow2.f32 %v1613_v52  ;;  %v1608_v54 = vsub.f32 %v1589_v29, %v1604_v53 }
 0x550   : > { %v1615_v55 = vmul.f32 1.442695, %v1608_v54 }
 0x552   : > { %7893 = vpow2.f32 %v1615_v55 }
 0x557   : > { %v7890_v56 = vpop.eup %7889 }
 0x558   : > { %v1617_v57 = vsel %vm929_vm3, %v7890_v56, 0.0 }
 0x559   : > { %1618 = vadd.xlane.f32.xlu1 %v1617_v57 }
 0x55b   : > { %v7892_v58 = vpop.eup %7891 }
 0x55c   : > { %v1623_v59 = vsel %vm929_vm3, %v7892_v58, 0.0 }
 0x55d   : > { %1624 = vadd.xlane.f32.xlu1 %v1623_v59 }
 0x55f   : > { %v7894_v60 = vpop.eup %7893 }
 0x560   : > { %v1626_v61 = vsel %vm929_vm3, %v7894_v60, 0.0 }
 0x561   : > { %1627 = vadd.xlane.f32.xlu0 %v1626_v61 }
 0x56e   : > { %1789 = vrot.lane.b32.xlu1 %v8554_v11, %s8304_s30 }
 0x572   : > { %1865 = vrot.lane.b32.xlu1 %v8559_v15, %s8304_s30 }
 0x576   : > { %2142 = vrot.lane.b32.xlu1 %v8562_v17, %s8305_s17 }
 0x577   : > { %1713 = vrot.lane.b32.xlu0 %v8562_v17, %s8304_s30  ;;  %s8317_s30 = smov 104  }
 0x57a   : > { %2140 = vrot.lane.b32.xlu1 %v8562_v17, %s8306_s20 }
 0x57b   : > { %2064 = vrot.lane.b32.xlu0 %v8556_v13, %s8305_s17 }
 0x57e   : > { %2298 = vrot.lane.b32.xlu1 %v8559_v15, %s8305_s17 }
 0x57f   : > { %2062 = vrot.lane.b32.xlu0 %v8556_v13, %s8306_s20 }
 0x582   : > { %2296 = vrot.lane.b32.xlu1 %v8559_v15, %s8306_s20 }
 0x583   : > { %2220 = vrot.lane.b32.xlu0 %v8554_v11, %s8305_s17  ;;  %s8318_s17 = smov 72  }
 0x587   : > { %2218 = vrot.lane.b32.xlu0 %v8554_v11, %s8306_s20  ;;  %s8319_s20 = smov 40  }
 0x5b5   : > { %v1622_v62 = vpop.xlane.xlu0 %1621 }
 0x5b6   : > { %7895 = vrcp.f32 %v1622_v62 }
 0x5c3   : > { %v7896_v3 = vpop.eup %7895 }
 0x5c4   : > { %v1634_v5 = vmul.f32 %v7896_v3, %v7888_v45 }
 0x5e2   : > { %v1619_v63 = vpop.xlane.xlu1 %1618 }
 0x5e3   : > { %7897 = vrcp.f32 %v1619_v63 }
 0x5e6   : > { %v1625_v0 = vpop.xlane.xlu1 %1624 }
 0x5e7   : > { %7899 = vrcp.f32 %v1625_v0 }
 0x5ea   : > { %v1790_v1 = vpop.permute.xlu1 %1789  ;;  %v1628_v2 = vpop.xlane.xlu0 %1627 }
 0x5eb   : > { %7901 = vrcp.f32 %v1628_v2 }
 0x5ee   : > { %v1714_v4 = vpop.permute.xlu0 %1713  ;;  %v1866_v7 = vpop.permute.xlu1 %1865 }
 0x5ef   : > { %7380 = vmatpush3.msra.mxu0 %v1714_v4 }
 0x5f0   : > { %v7898_v6 = vpop.eup %7897  ;;  %7382 = vmatmul.mubr.msk.f32.vlgmr.msra.gmra.mxu0 %vm929_vm3, %v1634_v5  ;;  %7389 = vmatprep.subr.mxu0 %v8298_v8 }
 0x5f1   : > { %7390 = vmatpush3.msra.mxu0 %v1866_v7  ;;  %v1633_v9 = vmul.f32 %v7898_v6, %v7890_v56  ;;  %7391 = vmatprep.mubr.msk.f32.mxu0 %vm8299_vm1, %v8298_v8 }
 0x5f2   : > { %v2065_v10 = vpop.permute.xlu0 %2064  ;;  %7710 = vmatprep.subr.msk.bf16.mxu0 %vm1951_vm4, %v1944_v26  ;;  %v2143_v45 = vpop.permute.xlu1 %2142 }
 0x5f3   : > { %7377 = vmatmul.mubr.msk.f32.vlgmr.msra.gmra.mxu1 %vm929_vm3, %v1633_v9 }
 0x5f4   : > { %v7900_v12 = vpop.eup %7899  ;;  %7385 = vmatpush3.msra.mxu1 %v1790_v1  ;;  %7386 = vmatprep.mubr.msk.f32.mxu1 %vm8299_vm1, %v8298_v8 }
 0x5f5   : > { %7406 = vmatprep.subr.mxu1 %v8298_v8  ;;  %v1635_v14 = vmul.f32 %v7900_v12, %v7892_v58 }
 0x5f6   : > { %v2063_v16 = vpop.permute.xlu0 %2062  ;;  %v2141_v49 = vpop.permute.xlu1 %2140 }
 0x5f7   : > { %7387 = vmatmul.mubr.msk.f32.vlgmr.msra.gmra.mxu1 %vm929_vm3, %v1635_v14 }
 0x5f8   : > { %v7902_v18 = vpop.eup %7901  ;;  %7407 = vmatpush3.xpose.msk.msra.mxu1 %vm623_vm2, %v2065_v10  ;;  %7408 = vmatprep.mubr.msk.f32.mxu1 %vm8299_vm1, %v8298_v8 }
 0x5f9   : > { %7416 = vmatprep.subr.mxu1 %v8298_v8  ;;  %v1636_v20 = vmul.f32 %v7902_v18, %v7894_v60 }
 0x5fa   : > { %v2221_v23 = vpop.permute.xlu0 %2220  ;;  %v2299_v19 = vpop.permute.xlu1 %2298 }
 0x5fb   : > { %7392 = vmatmul.mubr.msk.f32.vlgmr.msra.gmra.mxu0 %vm929_vm3, %v1636_v20  ;;  %7409 = vmatmul.mubr.msk.f32.vlgmr.msra.gmra.mxu1 %vm623_vm2, %v2063_v16 }
 0x5fc   : > { %7417 = vmatpush3.xpose.msk.msra.mxu1 %vm623_vm2, %v2221_v23  ;;  %7418 = vmatprep.mubr.msk.f32.mxu1 %vm8299_vm1, %v8298_v8 }
 0x5fd   : > { %7426 = vmatprep.subr.mxu1 %v8298_v8  ;;  %7395 = vmatpush3.bf16.msra.mxu0 %v1953_v27 }
 0x5fe   : > { %v2219_v25 = vpop.permute.xlu0 %2218  ;;  %7711 = vmatprep.subr.msk.bf16.mxu0 %vm1951_vm4, %v1280_v28  ;;  %v2297_v21 = vpop.permute.xlu1 %2296 }
 0x5ff   : > { %7419 = vmatmul.mubr.msk.f32.vlgmr.msra.gmra.mxu1 %vm623_vm2, %v2219_v25 }
 0x600   : > { %7428 = vmatprep.mubr.msk.f32.mxu1 %vm8299_vm1, %v8298_v8 }
 0x6b0   : > { %v1785_v29 = vpop.f32.mrf.mxu0 }
 0x6b2   : > { %v7383_v30 = vpop.f32.mrf.mxu0 }
 0x6b3   : > { %v1709_v33 = vpop.f32.mrf.mxu1 }
 0x6b4   : > { %v1941_v34 = vpack.c.bf16 %v1785_v29, %v1709_v33 }
 0x6b5   : > { %v7378_v35 = vpop.f32.mrf.mxu1 }
 0x6b6   : > { %7396 = vmatprep.mubr.msk.bf16.mxu0 %vm623_vm2, %v1941_v34 }
 0x6b7   : > { %v1861_v36 = vpop.f32.mrf.mxu1 }
 0x6b9   : > { %v7388_v37 = vpop.f32.mrf.mxu1 }
 0x6bb   : > { %v1937_v38 = vpop.f32.mrf.mxu0  ;;  %v2136_v39 = vpop.f32.mrf.mxu1 }
 0x6bc   : > { %v1942_v40 = vpack.c.bf16 %v1937_v38, %v1861_v36  ;;  %v2374_v41 = vsel %vm929_vm3, %v2136_v39, -inf }
 0x6bd   : > { %v7393_v43 = vpop.f32.mrf.mxu0  ;;  %2375 = vmax.xlane.f32.xlu0 %v2374_v41  ;;  %v7410_v44 = vpop.f32.mrf.mxu1 }
 0x6be   : > { %7397 = vmatmul.mubr.msk.bf16.vlgmr.msra.gmra.mxu0 %vm623_vm2, %v1942_v40 }
 0x6bf   : > { %7402 = vmatprep.mubr.msk.bf16.mxu0 %vm623_vm2, %v1278_v22  ;;  %v2292_v46 = vpop.f32.mrf.mxu1  ;;  %7401 = vmatpush3.bf16.msra.mxu0 %v2011_v42 }
 0x6c0   : > { %v2380_v47 = vsel %vm929_vm3, %v2292_v46, -inf  ;;  %7411 = vmatprep.subr.mxu0 %v8298_v8 }
 0x6c1   : > { %2381 = vmax.xlane.f32.xlu0 %v2380_v47  ;;  %v7420_v48 = vpop.f32.mrf.mxu1 }
 0x6c6   : > { %7403 = vmatmul.mubr.msk.bf16.vlgmr.msra.gmra.mxu0 %vm623_vm2, %v1279_v32 }
 0x6c7   : > { %7412 = vmatpush3.xpose.msk.msra.mxu0 %vm623_vm2, %v2143_v45  ;;  %7413 = vmatprep.mubr.msk.f32.mxu0 %vm8299_vm1, %v8298_v8 }
 0x6c8   : > { %7421 = vmatprep.subr.mxu0 %v8298_v8 }
 0x6ce   : > { %7414 = vmatmul.mubr.msk.f32.vlgmr.msra.gmra.mxu0 %vm623_vm2, %v2141_v49 }
 0x6cf   : > { %7422 = vmatpush3.xpose.msk.msra.mxu0 %vm623_vm2, %v2299_v19  ;;  %7423 = vmatprep.mubr.msk.f32.mxu0 %vm8299_vm1, %v8298_v8 }
 0x6d0   : > { %7431 = vmatprep.subr.mxu0 %v8298_v8 }
 0x6d2   : > { %7424 = vmatmul.mubr.msk.f32.vlgmr.msra.gmra.mxu0 %vm623_vm2, %v2297_v21 }
 0x6d3   : > { %7433 = vmatprep.mubr.msk.f32.mxu0 %vm8299_vm1, %v8298_v8 }
 0x746   : > { %v2376_v22 = vpop.xlane.xlu0 %2375 }
 0x747   : > { %v2386_v24 = vsub.f32 %v2136_v39, %v2376_v22 }
 0x749   : > { %v2390_v50 = vmul.f32 1.442695, %v2386_v24 }
 0x74a   : > { %v2382_v31 = vpop.xlane.xlu0 %2381 }
 0x74b   : > { %v2388_v51 = vsub.f32 %v2292_v46, %v2382_v31  ;;  %7903 = vpow2.f32 %v2390_v50 }
 0x74d   : > { %v2394_v54 = vmul.f32 1.442695, %v2388_v51  ;;  %v2725_v51 = vld [vmem:[#allocation5 + $0x4] sm:$0x3] }
 0x74f   : > { %7905 = vpow2.f32 %v2394_v54 }
 0x758   : > { %v7904_v2 = vpop.eup %7903 }
 0x759   : > { %v2398_v6 = vsel %vm929_vm3, %v7904_v2, 0.0 }
 0x75c   : > { %v7906_v7 = vpop.eup %7905 }
 0x75d   : > { %v2404_v10 = vsel %vm929_vm3, %v7906_v7, 0.0 }
 0x77e   : > { %v7398_v32 = vpop.f32.mrf.mxu0 }
 0x780   : > { %v1989_v52 = vpop.f32.mrf.mxu0 }
 0x782   : > { %v7399_v53 = vpop.f32.mrf.mxu0 }
 0x784   : > { %v1992_v55 = vpop.f32.mrf.mxu0 }
 0x786   : > { %v7404_v56 = vpop.f32.mrf.mxu0 }
 0x787   : > { %v8738_v57 = vadd.f32 %v7404_v56, %v7398_v32 }
 0x788   : > { %v2047_v58 = vpop.f32.mrf.mxu0 }
 0x789   : > { %v8740_v59 = vadd.f32 %v2047_v58, %v1989_v52  ;;  %v2733_v52 = vsel %vm1951_vm4, %v2725_v51, 0 }
 0x78a   : > { %v7405_v60 = vpop.f32.mrf.mxu0 }
 0x78b   : > { %v8742_v61 = vadd.f32 %v7405_v60, %v7399_v53 }
 0x78c   : > { %v2050_v62 = vpop.f32.mrf.mxu0 }
 0x78d   : > { %v8744_v63 = vadd.f32 %v2050_v62, %v1992_v55 }
 0x78e   : > { %v2214_v0 = vpop.f32.mrf.mxu0 }
 0x78f   : > { %v2377_v1 = vsel %vm929_vm3, %v2214_v0, -inf }
 0x790   : > { %2378 = vmax.xlane.f32.xlu1 %v2377_v1  ;;  %v7415_v3 = vpop.f32.mrf.mxu0 }
 0x792   : > { %v2370_v4 = vpop.f32.mrf.mxu0 }
 0x793   : > { %v2383_v5 = vsel %vm929_vm3, %v2370_v4, -inf }
 0x794   : > { %v7425_v9 = vpop.f32.mrf.mxu0  ;;  %2384 = vmax.xlane.f32.xlu0 %v2383_v5  ;;  %2399 = vadd.xlane.f32.xlu1 %v2398_v6 }
 0x798   : > { %2405 = vadd.xlane.f32.xlu1 %v2404_v10 }
 0x7a9   : > { %2418 = vrot.lane.b32.xlu1 %v8556_v13, %s8307_s23 }
 0x7ad   : > { %2570 = vrot.lane.b32.xlu1 %v8554_v11, %s8307_s23 }
 0x7b1   : > { %2646 = vrot.lane.b32.xlu1 %v8559_v15, %s8307_s23 }
 0x7b5   : > { %2788 = vrot.lane.b32.xlu1 %v8556_v13, %s8308_s24 }
 0x7b9   : > { %2866 = vrot.lane.b32.xlu1 %v8562_v17, %s8308_s24 }
 0x7bd   : > { %3024 = vrot.lane.b32.xlu1 %v8559_v15, %s8309_s27 }
 0x7c1   : > { %3022 = vrot.lane.b32.xlu1 %v8559_v15, %s8308_s24 }
 0x819   : > { %v2379_v12 = vpop.xlane.xlu1 %2378 }
 0x81a   : > { %v2387_v14 = vsub.f32 %v2214_v0, %v2379_v12 }
 0x81c   : > { %v2392_v16 = vmul.f32 1.442695, %v2387_v14 }
 0x81d   : > { %v2400_v18 = vpop.xlane.xlu1 %2399  ;;  %v2385_v20 = vpop.xlane.xlu0 %2384 }
 0x81e   : > { %7907 = vpow2.f32 %v2392_v16  ;;  %v2389_v23 = vsub.f32 %v2370_v4, %v2385_v20 }
 0x81f   : > { %7909 = vrcp.f32 %v2400_v18 }
 0x820   : > { %v2396_v25 = vmul.f32 1.442695, %v2389_v23 }
 0x821   : > { %v2406_v26 = vpop.xlane.xlu1 %2405 }
 0x822   : > { %7911 = vpow2.f32 %v2396_v25 }
 0x823   : > { %7913 = vrcp.f32 %v2406_v26 }
 0x825   : > { %v2419_v27 = vpop.permute.xlu1 %2418 }
 0x826   : > { %7427 = vmatpush3.msra.mxu1 %v2419_v27 }
 0x827   : > { %7436 = vmatprep.subr.mxu1 %v8298_v8 }
 0x829   : > { %v2571_v35 = vpop.permute.xlu1 %2570 }
 0x82b   : > { %v7908_v28 = vpop.eup %7907 }
 0x82c   : > { %v7910_v29 = vpop.eup %7909  ;;  %v2401_v30 = vsel %vm929_vm3, %v7908_v28, 0.0 }
 0x82d   : > { %2402 = vadd.xlane.f32.xlu0 %v2401_v30  ;;  %v2414_v33 = vmul.f32 %v7910_v29, %v7904_v2  ;;  %v2647_v41 = vpop.permute.xlu1 %2646 }
 0x82f   : > { %v7912_v34 = vpop.eup %7911  ;;  %7429 = vmatmul.mubr.msk.f32.vlgmr.msra.gmra.mxu1 %vm929_vm3, %v2414_v33 }
 0x830   : > { %v7914_v36 = vpop.eup %7913  ;;  %7437 = vmatpush3.msra.mxu1 %v2571_v35  ;;  %7438 = vmatprep.mubr.msk.f32.mxu1 %vm8299_vm1, %v8298_v8  ;;  %v2407_v37 = vsel %vm929_vm3, %v7912_v34, 0.0 }
 0x831   : > { %2408 = vadd.xlane.f32.xlu0 %v2407_v37  ;;  %v2416_v38 = vmul.f32 %v7914_v36, %v7906_v7  ;;  %v2789_v44 = vpop.permute.xlu1 %2788  ;;  %7712 = vmatprep.subr.msk.bf16.mxu1 %vm1951_vm4, %v2725_v51 }
 0x833   : > { %7439 = vmatmul.mubr.msk.f32.vlgmr.msra.gmra.mxu1 %vm929_vm3, %v2416_v38 }
 0x834   : > { %7447 = vmatpush3.bf16.msra.mxu1 %v2733_v52 }
 0x835   : > { %v2867_v49 = vpop.permute.xlu1 %2866  ;;  %7462 = vmatprep.subr.mxu1 %v8298_v8 }
 0x839   : > { %v3025_v21 = vpop.permute.xlu1 %3024 }
 0x83d   : > { %v3023_v22 = vpop.permute.xlu1 %3022 }
 0x847   : > { %2494 = vrot.lane.b32.xlu0 %v8562_v17, %s8307_s23  ;;  %s8320_s23 = smov 100  }
 0x84b   : > { %2790 = vrot.lane.b32.xlu0 %v8556_v13, %s8309_s27 }
 0x84f   : > { %2868 = vrot.lane.b32.xlu0 %v8562_v17, %s8309_s27 }
 0x853   : > { %2946 = vrot.lane.b32.xlu0 %v8554_v11, %s8309_s27  ;;  %s8322_s27 = smov 36  }
 0x857   : > { %2944 = vrot.lane.b32.xlu0 %v8554_v11, %s8308_s24  ;;  %s8321_s24 = smov 68  }
 0x8b6   : > { %v2403_v39 = vpop.xlane.xlu0 %2402 }
 0x8b7   : > { %7915 = vrcp.f32 %v2403_v39 }
 0x8ba   : > { %v2409_v40 = vpop.xlane.xlu0 %2408 }
 0x8bb   : > { %7917 = vrcp.f32 %v2409_v40 }
 0x8be   : > { %v2495_v42 = vpop.permute.xlu0 %2494 }
 0x8bf   : > { %7432 = vmatpush3.msra.mxu0 %v2495_v42 }
 0x8c0   : > { %7441 = vmatprep.subr.mxu0 %v8298_v8 }
 0x8c2   : > { %v2791_v47 = vpop.permute.xlu0 %2790 }
 0x8c4   : > { %v7916_v43 = vpop.eup %7915 }
 0x8c5   : > { %v2415_v45 = vmul.f32 %v7916_v43, %v7908_v28 }
 0x8c6   : > { %v2869_v19 = vpop.permute.xlu0 %2868 }
 0x8c7   : > { %7434 = vmatmul.mubr.msk.f32.vlgmr.msra.gmra.mxu0 %vm929_vm3, %v2415_v45 }
 0x8c8   : > { %v7918_v46 = vpop.eup %7917  ;;  %7442 = vmatpush3.msra.mxu0 %v2647_v41  ;;  %7443 = vmatprep.mubr.msk.f32.mxu0 %vm8299_vm1, %v8298_v8 }
 0x8c9   : > { %7452 = vmatprep.subr.mxu0 %v8298_v8  ;;  %v2417_v48 = vmul.f32 %v7918_v46, %v7912_v34 }
 0x8ca   : > { %v2947_v62 = vpop.permute.xlu0 %2946 }
 0x8cb   : > { %7444 = vmatmul.mubr.msk.f32.vlgmr.msra.gmra.mxu0 %vm929_vm3, %v2417_v48 }
 0x8cc   : > { %7453 = vmatpush3.xpose.msk.msra.mxu0 %vm623_vm2, %v2791_v47  ;;  %7454 = vmatprep.mubr.msk.f32.mxu0 %vm8299_vm1, %v8298_v8 }
 0x8cd   : > { %7457 = vmatprep.subr.mxu0 %v8298_v8 }
 0x8ce   : > { %v2945_v5 = vpop.permute.xlu0 %2944 }
 0x8cf   : > { %7455 = vmatmul.mubr.msk.f32.vlgmr.msra.gmra.mxu0 %vm623_vm2, %v2789_v44 }
 0x8d0   : > { %7458 = vmatpush3.xpose.msk.msra.mxu0 %vm623_vm2, %v2869_v19  ;;  %7459 = vmatprep.mubr.msk.f32.mxu0 %vm8299_vm1, %v8298_v8 }
 0x8d1   : > { %7467 = vmatprep.subr.mxu0 %v8298_v8 }
 0x8d3   : > { %7460 = vmatmul.mubr.msk.f32.vlgmr.msra.gmra.mxu0 %vm623_vm2, %v2867_v49 }
 0x8d4   : > { %7468 = vmatpush3.xpose.msk.msra.mxu0 %vm623_vm2, %v3025_v21  ;;  %7469 = vmatprep.mubr.msk.f32.mxu0 %vm8299_vm1, %v8298_v8 }
 0x8d5   : > { %7477 = vmatprep.subr.mxu0 %v8298_v8 }
 0x8d7   : > { %7470 = vmatmul.mubr.msk.f32.vlgmr.msra.gmra.mxu0 %vm623_vm2, %v3023_v22 }
 0x8d8   : > { %7479 = vmatprep.mubr.msk.f32.mxu0 %vm8299_vm1, %v8298_v8 }
 0x8ef   : > { %v2490_v24 = vpop.f32.mrf.mxu1 }
 0x8f1   : > { %v7430_v31 = vpop.f32.mrf.mxu1 }
 0x8f3   : > { %v2642_v32 = vpop.f32.mrf.mxu1 }
 0x8f5   : > { %v7440_v50 = vpop.f32.mrf.mxu1 }
 0x987   : > { %v2566_v53 = vpop.f32.mrf.mxu0 }
 0x988   : > { %v2722_v54 = vpack.c.bf16 %v2566_v53, %v2490_v24 }
 0x989   : > { %v7435_v55 = vpop.f32.mrf.mxu0 }
 0x98a   : > { %7448 = vmatprep.mubr.msk.bf16.mxu1 %vm623_vm2, %v2722_v54 }
 0x98b   : > { %v2718_v56 = vpop.f32.mrf.mxu0 }
 0x98c   : > { %v2723_v58 = vpack.c.bf16 %v2718_v56, %v2642_v32 }
 0x98d   : > { %v7445_v60 = vpop.f32.mrf.mxu0 }
 0x98e   : > { %7449 = vmatmul.mubr.msk.bf16.vlgmr.msra.gmra.mxu1 %vm623_vm2, %v2723_v58 }
 0x98f   : > { %7463 = vmatpush3.xpose.msk.msra.mxu1 %vm623_vm2, %v2947_v62  ;;  %v2862_v0 = vpop.f32.mrf.mxu0  ;;  %7464 = vmatprep.mubr.msk.f32.mxu1 %vm8299_vm1, %v8298_v8 }
 0x990   : > { %v3100_v1 = vsel %vm929_vm3, %v2862_v0, -inf  ;;  %7472 = vmatprep.subr.mxu1 %v8298_v8 }
 0x991   : > { %3101 = vmax.xlane.f32.xlu0 %v3100_v1  ;;  %v7456_v2 = vpop.f32.mrf.mxu0 }
 0x993   : > { %v2940_v3 = vpop.f32.mrf.mxu0 }
 0x994   : > { %v3103_v4 = vsel %vm929_vm3, %v2940_v3, -inf }
 0x995   : > { %3104 = vmax.xlane.f32.xlu1 %v3103_v4  ;;  %v7461_v6 = vpop.f32.mrf.mxu0 }
 0x996   : > { %7465 = vmatmul.mubr.msk.f32.vlgmr.msra.gmra.mxu1 %vm623_vm2, %v2945_v5  ;;  %v3451_v6 = vld [vmem:[#allocation5 + $0x6] sm:$0x3] }
 0x997   : > { %v3096_v7 = vpop.f32.mrf.mxu0  ;;  %7474 = vmatprep.mubr.msk.f32.mxu1 %vm8299_vm1, %v8298_v8 }
 0x999   : > { %v7471_v9 = vpop.f32.mrf.mxu0 }
 0xa1a   : > { %v3102_v10 = vpop.xlane.xlu0 %3101 }
 0xa1b   : > { %v3112_v12 = vsub.f32 %v2862_v0, %v3102_v10 }
 0xa1d   : > { %v3116_v14 = vmul.f32 1.442695, %v3112_v12 }
 0xa1e   : > { %v3105_v20 = vpop.xlane.xlu1 %3104 }
 0xa1f   : > { %7919 = vpow2.f32 %v3116_v14  ;;  %v3113_v23 = vsub.f32 %v2940_v3, %v3105_v20 }
 0xa21   : > { %v3118_v25 = vmul.f32 1.442695, %v3113_v23 }
 0xa23   : > { %7921 = vpow2.f32 %v3118_v25 }
 0xa2c   : > { %v7920_v16 = vpop.eup %7919 }
 0xa2d   : > { %v3124_v18 = vsel %vm929_vm3, %v7920_v16, 0.0 }
 0xa2e   : > { %3125 = vadd.xlane.f32.xlu1 %v3124_v18 }
 0xa30   : > { %v7922_v39 = vpop.eup %7921 }
 0xa3f   : > { %3144 = vrot.lane.b32.xlu1 %v8556_v13, %s8310_s19 }
 0xa43   : > { %3296 = vrot.lane.b32.xlu1 %v8554_v11, %s8310_s19 }
 0xa4e   : > { %v7450_v26 = vpop.f32.mrf.mxu1 }
 0xa4f   : > { %v8824_v27 = vadd.f32 %v7450_v26, %v8738_v57  ;;  %v3109_v57 = vsel %vm929_vm3, %v3096_v7, -inf }
 0xa50   : > { %v2769_v28 = vpop.f32.mrf.mxu1 }
 0xa51   : > { %v8827_v29 = vadd.f32 %v2769_v28, %v8740_v59  ;;  %v3127_v59 = vsel %vm929_vm3, %v7922_v39, 0.0 }
 0xa52   : > { %v7451_v30 = vpop.f32.mrf.mxu1 }
 0xa53   : > { %v8830_v33 = vadd.f32 %v7451_v30, %v8742_v61 }
 0xa54   : > { %v2772_v34 = vpop.f32.mrf.mxu1 }
 0xa55   : > { %v8833_v35 = vadd.f32 %v2772_v34, %v8744_v63 }
 0xa56   : > { %v3018_v36 = vpop.f32.mrf.mxu1 }
 0xa57   : > { %v3106_v37 = vsel %vm929_vm3, %v3018_v36, -inf }
 0xa58   : > { %3107 = vmax.xlane.f32.xlu0 %v3106_v37  ;;  %v7466_v38 = vpop.f32.mrf.mxu1 }
 0xa5c   : > { %3110 = vmax.xlane.f32.xlu0 %v3109_v57 }
 0xa60   : > { %3128 = vadd.xlane.f32.xlu0 %v3127_v59 }
 0xab7   : > { %v3126_v40 = vpop.xlane.xlu1 %3125 }
 0xab8   : > { %7923 = vrcp.f32 %v3126_v40 }
 0xabb   : > { %v3145_v61 = vpop.permute.xlu1 %3144 }
 0xabc   : > { %7473 = vmatpush3.msra.mxu1 %v3145_v61 }
 0xabd   : > { %7482 = vmatprep.subr.mxu1 %v8298_v8 }
 0xabf   : > { %v3297_v42 = vpop.permute.xlu1 %3296 }
 0xac5   : > { %v7924_v63 = vpop.eup %7923 }
 0xac6   : > { %v3140_v41 = vmul.f32 %v7924_v63, %v7920_v16 }
 0xac8   : > { %7475 = vmatmul.mubr.msk.f32.vlgmr.msra.gmra.mxu1 %vm929_vm3, %v3140_v41 }
 0xac9   : > { %7483 = vmatpush3.msra.mxu1 %v3297_v42  ;;  %7484 = vmatprep.mubr.msk.f32.mxu1 %vm8299_vm1, %v8298_v8 }
 0xaca   : > { %7713 = vmatprep.subr.msk.bf16.mxu1 %vm1951_vm4, %v3451_v6 }
 0xae1   : > { %v3108_v43 = vpop.xlane.xlu0 %3107 }
 0xae2   : > { %v3114_v44 = vsub.f32 %v3018_v36, %v3108_v43 }
 0xae4   : > { %v3120_v45 = vmul.f32 1.442695, %v3114_v44 }
 0xae5   : > { %v3111_v46 = vpop.xlane.xlu0 %3110 }
 0xae6   : > { %7925 = vpow2.f32 %v3120_v45  ;;  %v3115_v47 = vsub.f32 %v3096_v7, %v3111_v46  ;;  %v3459_v7 = vsel %vm1951_vm4, %v3451_v6, 0 }
 0xae8   : > { %v3122_v48 = vmul.f32 1.442695, %v3115_v47 }
 0xae9   : > { %v3129_v24 = vpop.xlane.xlu0 %3128 }
 0xaea   : > { %7927 = vpow2.f32 %v3122_v48 }
 0xaeb   : > { %7929 = vrcp.f32 %v3129_v24 }
 0xaf3   : > { %v7926_v49 = vpop.eup %7925 }
 0xaf4   : > { %v3130_v19 = vsel %vm929_vm3, %v7926_v49, 0.0 }
 0xaf5   : > { %3131 = vadd.xlane.f32.xlu1 %v3130_v19 }
 0xaf7   : > { %v7928_v21 = vpop.eup %7927 }
 0xaf8   : > { %v3133_v22 = vsel %vm929_vm3, %v7928_v21, 0.0  ;;  %v7930_v50 = vpop.eup %7929 }
 0xaf9   : > { %3134 = vadd.xlane.f32.xlu0 %v3133_v22  ;;  %v3141_v53 = vmul.f32 %v7930_v50, %v7922_v39 }
 0xb06   : > { %3372 = vrot.lane.b32.xlu1 %v8559_v15, %s8310_s19 }
 0xb0a   : > { %3514 = vrot.lane.b32.xlu1 %v8556_v13, %s8311_s16 }
 0xb0e   : > { %3592 = vrot.lane.b32.xlu1 %v8562_v17, %s8311_s16 }
 0xb0f   : > { %3220 = vrot.lane.b32.xlu0 %v8562_v17, %s8310_s19 }
 0xb12   : > { %3750 = vrot.lane.b32.xlu1 %v8559_v15, %s8312_s25 }
 0xb13   : > { %3516 = vrot.lane.b32.xlu0 %v8556_v13, %s8312_s25 }
 0xb16   : > { %3748 = vrot.lane.b32.xlu1 %v8559_v15, %s8311_s16 }
 0xb17   : > { %3594 = vrot.lane.b32.xlu0 %v8562_v17, %s8312_s25 }
 0xb1b   : > { %3672 = vrot.lane.b32.xlu0 %v8554_v11, %s8312_s25  ;;  %s8323_s25 = smov [#allocation14]  }
 0xb1f   : > { %3670 = vrot.lane.b32.xlu0 %v8554_v11, %s8311_s16 }
 0xb7e   : > { %v3132_v31 = vpop.xlane.xlu1 %3131 }
 0xb7f   : > { %7931 = vrcp.f32 %v3132_v31 }
 0xb82   : > { %v3135_v32 = vpop.xlane.xlu0 %3134  ;;  %v3373_v51 = vpop.permute.xlu1 %3372 }
 0xb83   : > { %7933 = vrcp.f32 %v3135_v32 }
 0xb86   : > { %v3221_v52 = vpop.permute.xlu0 %3220  ;;  %v3515_v58 = vpop.permute.xlu1 %3514 }
 0xb87   : > { %7478 = vmatpush3.msra.mxu0 %v3221_v52 }
 0xb88   : > { %v3216_v54 = vpop.f32.mrf.mxu1  ;;  %7480 = vmatmul.mubr.msk.f32.vlgmr.msra.gmra.mxu0 %vm929_vm3, %v3141_v53  ;;  %7487 = vmatprep.subr.mxu0 %v8298_v8 }
 0xb89   : > { %7488 = vmatpush3.msra.mxu0 %v3373_v51  ;;  %7489 = vmatprep.mubr.msk.f32.mxu0 %vm8299_vm1, %v8298_v8 }
 0xb8a   : > { %v7476_v55 = vpop.f32.mrf.mxu1  ;;  %7498 = vmatprep.subr.mxu0 %v8298_v8  ;;  %v3517_v0 = vpop.permute.xlu0 %3516 }
 0xb8b   : > { %v3593_v2 = vpop.permute.xlu1 %3592 }
 0xb8c   : > { %v7932_v56 = vpop.eup %7931 }
 0xb8d   : > { %v3142_v60 = vmul.f32 %v7932_v56, %v7926_v49 }
 0xb8e   : > { %v3595_v3 = vpop.permute.xlu0 %3594 }
 0xb8f   : > { %7485 = vmatmul.mubr.msk.f32.vlgmr.msra.gmra.mxu1 %vm929_vm3, %v3142_v60  ;;  %v3751_v4 = vpop.permute.xlu1 %3750 }
 0xb90   : > { %v7934_v62 = vpop.eup %7933  ;;  %7493 = vmatpush3.bf16.msra.mxu1 %v3459_v7 }
 0xb91   : > { %v3143_v1 = vmul.f32 %v7934_v62, %v7928_v21  ;;  %7508 = vmatprep.subr.mxu1 %v8298_v8 }
 0xb92   : > { %v3673_v25 = vpop.permute.xlu0 %3672 }
 0xb93   : > { %7490 = vmatmul.mubr.msk.f32.vlgmr.msra.gmra.mxu0 %vm929_vm3, %v3143_v1  ;;  %v3749_v5 = vpop.permute.xlu1 %3748 }
 0xb94   : > { %7499 = vmatpush3.xpose.msk.msra.mxu0 %vm623_vm2, %v3517_v0  ;;  %7500 = vmatprep.mubr.msk.f32.mxu0 %vm8299_vm1, %v8298_v8 }
 0xb95   : > { %7503 = vmatprep.subr.mxu0 %v8298_v8 }
 0xb96   : > { %v3671_v37 = vpop.permute.xlu0 %3670 }
 0xb97   : > { %7501 = vmatmul.mubr.msk.f32.vlgmr.msra.gmra.mxu0 %vm623_vm2, %v3515_v58 }
 0xb98   : > { %7504 = vmatpush3.xpose.msk.msra.mxu0 %vm623_vm2, %v3595_v3  ;;  %7505 = vmatprep.mubr.msk.f32.mxu0 %vm8299_vm1, %v8298_v8 }
 0xb99   : > { %7513 = vmatprep.subr.mxu0 %v8298_v8 }
 0xb9b   : > { %7506 = vmatmul.mubr.msk.f32.vlgmr.msra.gmra.mxu0 %vm623_vm2, %v3593_v2 }
 0xb9c   : > { %7514 = vmatpush3.xpose.msk.msra.mxu0 %vm623_vm2, %v3751_v4  ;;  %7515 = vmatprep.mubr.msk.f32.mxu0 %vm8299_vm1, %v8298_v8 }
 0xb9d   : > { %7523 = vmatprep.subr.mxu0 %v8298_v8 }
 0xb9f   : > { %7516 = vmatmul.mubr.msk.f32.vlgmr.msra.gmra.mxu0 %vm623_vm2, %v3749_v5 }
 0xba0   : > { %7525 = vmatprep.mubr.msk.f32.mxu0 %vm8299_vm1, %v8298_v8 }
 0xc48   : > { %v3292_v9 = vpop.f32.mrf.mxu0 }
 0xc49   : > { %v3448_v10 = vpack.c.bf16 %v3292_v9, %v3216_v54 }
 0xc4a   : > { %v7481_v12 = vpop.f32.mrf.mxu0 }
 0xc4b   : > { %7494 = vmatprep.mubr.msk.bf16.mxu1 %vm623_vm2, %v3448_v10 }
 0xc4f   : > { %v3368_v14 = vpop.f32.mrf.mxu1 }
 0xc51   : > { %v7486_v16 = vpop.f32.mrf.mxu1 }
 0xc53   : > { %v3444_v18 = vpop.f32.mrf.mxu0 }
 0xc54   : > { %v3449_v20 = vpack.c.bf16 %v3444_v18, %v3368_v14 }
 0xc55   : > { %v7491_v23 = vpop.f32.mrf.mxu0 }
 0xc56   : > { %7495 = vmatmul.mubr.msk.bf16.vlgmr.msra.gmra.mxu1 %vm623_vm2, %v3449_v20 }
 0xc57   : > { %7509 = vmatpush3.xpose.msk.msra.mxu1 %vm623_vm2, %v3673_v25  ;;  %v3588_v26 = vpop.f32.mrf.mxu0  ;;  %7510 = vmatprep.mubr.msk.f32.mxu1 %vm8299_vm1, %v8298_v8 }
 0xc58   : > { %v3826_v28 = vsel %vm929_vm3, %v3588_v26, -inf  ;;  %7518 = vmatprep.subr.mxu1 %v8298_v8 }
 0xc59   : > { %3827 = vmax.xlane.f32.xlu0 %v3826_v28  ;;  %v7502_v30 = vpop.f32.mrf.mxu0 }
 0xc5b   : > { %v3666_v34 = vpop.f32.mrf.mxu0 }
 0xc5c   : > { %v3829_v36 = vsel %vm929_vm3, %v3666_v34, -inf }
 0xc5d   : > { %3830 = vmax.xlane.f32.xlu1 %v3829_v36  ;;  %v7507_v38 = vpop.f32.mrf.mxu0 }
 0xc5e   : > { %7511 = vmatmul.mubr.msk.f32.vlgmr.msra.gmra.mxu1 %vm623_vm2, %v3671_v37  ;;  %v4177_v38 = vld [vmem:[#allocation5 + $0x8] sm:$0x3] }
 0xc5f   : > { %v3822_v57 = vpop.f32.mrf.mxu0  ;;  %7520 = vmatprep.mubr.msk.f32.mxu1 %vm8299_vm1, %v8298_v8 }
 0xc61   : > { %v7517_v39 = vpop.f32.mrf.mxu0 }
 0xce2   : > { %v3828_v59 = vpop.xlane.xlu0 %3827 }
 0xce3   : > { %v3838_v40 = vsub.f32 %v3588_v26, %v3828_v59 }
 0xce5   : > { %v3842_v61 = vmul.f32 1.442695, %v3838_v40 }
 0xce6   : > { %v3831_v42 = vpop.xlane.xlu1 %3830 }
 0xce7   : > { %7935 = vpow2.f32 %v3842_v61  ;;  %v3839_v43 = vsub.f32 %v3666_v34, %v3831_v42 }
 0xce9   : > { %v3844_v44 = vmul.f32 1.442695, %v3839_v43 }
 0xceb   : > { %7937 = vpow2.f32 %v3844_v44 }
 0xcf4   : > { %v7936_v63 = vpop.eup %7935 }
 0xcf5   : > { %v3850_v41 = vsel %vm929_vm3, %v7936_v63, 0.0 }
 0xcf6   : > { %3851 = vadd.xlane.f32.xlu1 %v3850_v41 }
 0xcf8   : > { %v7938_v50 = vpop.eup %7937 }
 0xd07   : > { %3870 = vrot.lane.b32.xlu1 %v8556_v13, %s8313_s15 }
 0xd0b   : > { %4022 = vrot.lane.b32.xlu1 %v8554_v11, %s8313_s15 }
 0xd16   : > { %v7496_v45 = vpop.f32.mrf.mxu1 }
 0xd17   : > { %v8900_v46 = vadd.f32 %v7496_v45, %v8824_v27  ;;  %v3835_v27 = vsel %vm929_vm3, %v3822_v57, -inf }
 0xd18   : > { %v3495_v47 = vpop.f32.mrf.mxu1 }
 0xd19   : > { %v8903_v48 = vadd.f32 %v3495_v47, %v8827_v29  ;;  %v3853_v29 = vsel %vm929_vm3, %v7938_v50, 0.0 }
 0xd1a   : > { %v7497_v49 = vpop.f32.mrf.mxu1 }
 0xd1b   : > { %v8906_v19 = vadd.f32 %v7497_v49, %v8830_v33 }
 0xd1c   : > { %v3498_v21 = vpop.f32.mrf.mxu1 }
 0xd1d   : > { %v8909_v22 = vadd.f32 %v3498_v21, %v8833_v35 }
 0xd1e   : > { %v3744_v24 = vpop.f32.mrf.mxu1 }
 0xd1f   : > { %v3832_v31 = vsel %vm929_vm3, %v3744_v24, -inf }
 0xd20   : > { %3833 = vmax.xlane.f32.xlu0 %v3832_v31  ;;  %v7512_v32 = vpop.f32.mrf.mxu1 }
 0xd24   : > { %3836 = vmax.xlane.f32.xlu0 %v3835_v27 }
 0xd28   : > { %3854 = vadd.xlane.f32.xlu0 %v3853_v29 }
 0xd7f   : > { %v3852_v51 = vpop.xlane.xlu1 %3851 }
 0xd80   : > { %7939 = vrcp.f32 %v3852_v51 }
 0xd83   : > { %v3871_v33 = vpop.permute.xlu1 %3870 }
 0xd84   : > { %7519 = vmatpush3.msra.mxu1 %v3871_v33 }
 0xd85   : > { %7528 = vmatprep.subr.mxu1 %v8298_v8 }
 0xd87   : > { %v4023_v53 = vpop.permute.xlu1 %4022 }
 0xd8d   : > { %v7940_v35 = vpop.eup %7939 }
 0xd8e   : > { %v3866_v52 = vmul.f32 %v7940_v35, %v7936_v63 }
 0xd90   : > { %7521 = vmatmul.mubr.msk.f32.vlgmr.msra.gmra.mxu1 %vm929_vm3, %v3866_v52 }
 0xd91   : > { %7529 = vmatpush3.msra.mxu1 %v4023_v53  ;;  %7530 = vmatprep.mubr.msk.f32.mxu1 %vm8299_vm1, %v8298_v8 }
 0xd92   : > { %7714 = vmatprep.subr.msk.bf16.mxu1 %vm1951_vm4, %v4177_v38 }
 0xda9   : > { %v3834_v54 = vpop.xlane.xlu0 %3833 }
 0xdaa   : > { %v3840_v55 = vsub.f32 %v3744_v24, %v3834_v54 }
 0xdac   : > { %v3846_v56 = vmul.f32 1.442695, %v3840_v55 }
 0xdad   : > { %v3837_v58 = vpop.xlane.xlu0 %3836 }
 0xdae   : > { %7941 = vpow2.f32 %v3846_v56  ;;  %v3841_v60 = vsub.f32 %v3822_v57, %v3837_v58  ;;  %v4185_v57 = vsel %vm1951_vm4, %v4177_v38, 0 }
 0xdb0   : > { %v3848_v62 = vmul.f32 1.442695, %v3841_v60 }
 0xdb1   : > { %v3855_v4 = vpop.xlane.xlu0 %3854 }
 0xdb2   : > { %7943 = vpow2.f32 %v3848_v62 }
 0xdb3   : > { %7945 = vrcp.f32 %v3855_v4 }
 0xdbb   : > { %v7942_v0 = vpop.eup %7941 }
 0xdbc   : > { %v3856_v1 = vsel %vm929_vm3, %v7942_v0, 0.0 }
 0xdbd   : > { %3857 = vadd.xlane.f32.xlu1 %v3856_v1 }
 0xdbf   : > { %v7944_v2 = vpop.eup %7943 }
 0xdc0   : > { %v3859_v3 = vsel %vm929_vm3, %v7944_v2, 0.0  ;;  %v7946_v7 = vpop.eup %7945 }
 0xdc1   : > { %3860 = vadd.xlane.f32.xlu0 %v3859_v3  ;;  %v3867_v12 = vmul.f32 %v7946_v7, %v7938_v50 }
 0xdce   : > { %4098 = vrot.lane.b32.xlu1 %v8559_v15, %s8313_s15 }
 0xdd2   : > { %4240 = vrot.lane.b32.xlu1 %v8556_v13, %s8314_s14 }
 0xdd6   : > { %4318 = vrot.lane.b32.xlu1 %v8562_v17, %s8314_s14 }
 0xdd7   : > { %3946 = vrot.lane.b32.xlu0 %v8562_v17, %s8313_s15  ;;  %s524_s15 = sand.u32 1, %s8277_s26  }
 0xdda   : > { %4476 = vrot.lane.b32.xlu1 %v8559_v15, %s8315_s28 }
 0xddb   : > { %4242 = vrot.lane.b32.xlu0 %v8556_v13, %s8315_s28 }
 0xdde   : > { %4474 = vrot.lane.b32.xlu1 %v8559_v15, %s8314_s14 }
 0xddf   : > { %4320 = vrot.lane.b32.xlu0 %v8562_v17, %s8315_s28 }
 0xde3   : > { %4398 = vrot.lane.b32.xlu0 %v8554_v11, %s8315_s28 }
 0xde7   : > { %4396 = vrot.lane.b32.xlu0 %v8554_v11, %s8314_s14  ;;  %s8213_s14 = sshll.u32 %s8323_s25, 4  ;;  %s8214_s14 = int_to_ptr.vmem [resolvable:$false] %s8213_s14 }
 0xde8   : > { %s8215_s28 = scalar_lea.vmem %s8214_s14, 1024 }
 0xe46   : > { %v3858_v5 = vpop.xlane.xlu1 %3857 }
 0xe47   : > { %7947 = vrcp.f32 %v3858_v5 }
 0xe4a   : > { %v3861_v6 = vpop.xlane.xlu0 %3860  ;;  %v4099_v9 = vpop.permute.xlu1 %4098 }
 0xe4b   : > { %7949 = vrcp.f32 %v3861_v6 }
 0xe4e   : > { %v3947_v10 = vpop.permute.xlu0 %3946  ;;  %v4241_v20 = vpop.permute.xlu1 %4240 }
 0xe4f   : > { %7524 = vmatpush3.msra.mxu0 %v3947_v10 }
 0xe50   : > { %v3942_v14 = vpop.f32.mrf.mxu1  ;;  %7526 = vmatmul.mubr.msk.f32.vlgmr.msra.gmra.mxu0 %vm929_vm3, %v3867_v12  ;;  %7533 = vmatprep.subr.mxu0 %v8298_v8 }
 0xe51   : > { %7534 = vmatpush3.msra.mxu0 %v4099_v9  ;;  %7535 = vmatprep.mubr.msk.f32.mxu0 %vm8299_vm1, %v8298_v8 }
 0xe52   : > { %v7522_v16 = vpop.f32.mrf.mxu1  ;;  %7544 = vmatprep.subr.mxu0 %v8298_v8  ;;  %v4243_v26 = vpop.permute.xlu0 %4242 }
 0xe53   : > { %v4319_v30 = vpop.permute.xlu1 %4318 }
 0xe54   : > { %v7948_v18 = vpop.eup %7947 }
 0xe55   : > { %v3868_v23 = vmul.f32 %v7948_v18, %v7942_v0 }
 0xe56   : > { %v4321_v34 = vpop.permute.xlu0 %4320 }
 0xe57   : > { %7531 = vmatmul.mubr.msk.f32.vlgmr.msra.gmra.mxu1 %vm929_vm3, %v3868_v23  ;;  %v4477_v36 = vpop.permute.xlu1 %4476 }
 0xe58   : > { %v7950_v25 = vpop.eup %7949  ;;  %7539 = vmatpush3.bf16.msra.mxu1 %v4185_v57 }
 0xe59   : > { %v3869_v28 = vmul.f32 %v7950_v25, %v7944_v2  ;;  %7554 = vmatprep.subr.mxu1 %v8298_v8 }
 0xe5a   : > { %v4399_v44 = vpop.permute.xlu0 %4398 }
 0xe5b   : > { %7536 = vmatmul.mubr.msk.f32.vlgmr.msra.gmra.mxu0 %vm929_vm3, %v3869_v28  ;;  %v4475_v37 = vpop.permute.xlu1 %4474 }
 0xe5c   : > { %7545 = vmatpush3.xpose.msk.msra.mxu0 %vm623_vm2, %v4243_v26  ;;  %7546 = vmatprep.mubr.msk.f32.mxu0 %vm8299_vm1, %v8298_v8 }
 0xe5d   : > { %7549 = vmatprep.subr.mxu0 %v8298_v8 }
 0xe5e   : > { %v4397_v31 = vpop.permute.xlu0 %4396 }
 0xe5f   : > { %7547 = vmatmul.mubr.msk.f32.vlgmr.msra.gmra.mxu0 %vm623_vm2, %v4241_v20 }
 0xe60   : > { %7550 = vmatpush3.xpose.msk.msra.mxu0 %vm623_vm2, %v4321_v34  ;;  %7551 = vmatprep.mubr.msk.f32.mxu0 %vm8299_vm1, %v8298_v8 }
 0xe61   : > { %7559 = vmatprep.subr.mxu0 %v8298_v8 }
 0xe63   : > { %7552 = vmatmul.mubr.msk.f32.vlgmr.msra.gmra.mxu0 %vm623_vm2, %v4319_v30 }
 0xe64   : > { %7560 = vmatpush3.xpose.msk.msra.mxu0 %vm623_vm2, %v4477_v36  ;;  %7561 = vmatprep.mubr.msk.f32.mxu0 %vm8299_vm1, %v8298_v8 }
 0xe65   : > { %7569 = vmatprep.subr.mxu0 %v8298_v8 }
 0xe67   : > { %7562 = vmatmul.mubr.msk.f32.vlgmr.msra.gmra.mxu0 %vm623_vm2, %v4475_v37 }
 0xe68   : > { %7571 = vmatprep.mubr.msk.f32.mxu0 %vm8299_vm1, %v8298_v8 }
 0xf10   : > { %v4018_v39 = vpop.f32.mrf.mxu0 }
 0xf11   : > { %v4174_v59 = vpack.c.bf16 %v4018_v39, %v3942_v14 }
 0xf12   : > { %v7527_v40 = vpop.f32.mrf.mxu0 }
 0xf13   : > { %7540 = vmatprep.mubr.msk.bf16.mxu1 %vm623_vm2, %v4174_v59 }
 0xf17   : > { %v4094_v61 = vpop.f32.mrf.mxu1 }
 0xf19   : > { %v7532_v63 = vpop.f32.mrf.mxu1 }
 0xf1b   : > { %v4170_v41 = vpop.f32.mrf.mxu0 }
 0xf1c   : > { %v4175_v42 = vpack.c.bf16 %v4170_v41, %v4094_v61 }
 0xf1d   : > { %v7537_v43 = vpop.f32.mrf.mxu0 }
 0xf1e   : > { %7541 = vmatmul.mubr.msk.bf16.vlgmr.msra.gmra.mxu1 %vm623_vm2, %v4175_v42 }
 0xf1f   : > { %7555 = vmatpush3.xpose.msk.msra.mxu1 %vm623_vm2, %v4399_v44  ;;  %v4314_v45 = vpop.f32.mrf.mxu0  ;;  %7556 = vmatprep.mubr.msk.f32.mxu1 %vm8299_vm1, %v8298_v8 }
 0xf20   : > { %v4552_v47 = vsel %vm929_vm3, %v4314_v45, -inf  ;;  %7564 = vmatprep.subr.mxu1 %v8298_v8 }
 0xf21   : > { %4553 = vmax.xlane.f32.xlu0 %v4552_v47  ;;  %v7548_v49 = vpop.f32.mrf.mxu0 }
 0xf23   : > { %v4392_v21 = vpop.f32.mrf.mxu0 }
 0xf24   : > { %v4555_v24 = vsel %vm929_vm3, %v4392_v21, -inf }
 0xf25   : > { %4556 = vmax.xlane.f32.xlu1 %v4555_v24  ;;  %v7553_v32 = vpop.f32.mrf.mxu0 }
 0xf26   : > { %7557 = vmatmul.mubr.msk.f32.vlgmr.msra.gmra.mxu1 %vm623_vm2, %v4397_v31  ;;  %v4903_v32 = vld [vmem:[#allocation5 + $0xa] sm:$0x3] }
 0xf27   : > { %v4548_v27 = vpop.f32.mrf.mxu0  ;;  %7566 = vmatprep.mubr.msk.f32.mxu1 %vm8299_vm1, %v8298_v8 }
 0xf29   : > { %v7563_v50 = vpop.f32.mrf.mxu0 }
 0xfaa   : > { %v4554_v29 = vpop.xlane.xlu0 %4553 }
 0xfab   : > { %v4564_v51 = vsub.f32 %v4314_v45, %v4554_v29 }
 0xfad   : > { %v4568_v33 = vmul.f32 1.442695, %v4564_v51 }
 0xfae   : > { %v4557_v53 = vpop.xlane.xlu1 %4556 }
 0xfaf   : > { %7951 = vpow2.f32 %v4568_v33  ;;  %v4565_v54 = vsub.f32 %v4392_v21, %v4557_v53 }
 0xfb1   : > { %v4570_v55 = vmul.f32 1.442695, %v4565_v54 }
 0xfb3   : > { %7953 = vpow2.f32 %v4570_v55 }
 0xfbc   : > { %v7952_v35 = vpop.eup %7951 }
 0xfbd   : > { %v4576_v52 = vsel %vm929_vm3, %v7952_v35, 0.0 }
 0xfbe   : > { %4577 = vadd.xlane.f32.xlu1 %v4576_v52 }
 0xfc0   : > { %v7954_v7 = vpop.eup %7953 }
 0xfcf   : > { %4596 = vrot.lane.b32.xlu1 %v8556_v13, %s8316_s22 }
 0xfd3   : > { %4748 = vrot.lane.b32.xlu1 %v8554_v11, %s8316_s22 }
 0xfde   : > { %v7542_v56 = vpop.f32.mrf.mxu1 }
 0xfdf   : > { %v8976_v58 = vadd.f32 %v7542_v56, %v8900_v46  ;;  %v4561_v46 = vsel %vm929_vm3, %v4548_v27, -inf }
 0xfe0   : > { %v4221_v60 = vpop.f32.mrf.mxu1 }
 0xfe1   : > { %v8979_v62 = vadd.f32 %v4221_v60, %v8903_v48  ;;  %v4579_v48 = vsel %vm929_vm3, %v7954_v7, 0.0 }
 0xfe2   : > { %v7543_v0 = vpop.f32.mrf.mxu1 }
 0xfe3   : > { %v8982_v1 = vadd.f32 %v7543_v0, %v8906_v19 }
 0xfe4   : > { %v4224_v2 = vpop.f32.mrf.mxu1 }
 0xfe5   : > { %v8985_v3 = vadd.f32 %v4224_v2, %v8909_v22 }
 0xfe6   : > { %v4470_v4 = vpop.f32.mrf.mxu1 }
 0xfe7   : > { %v4558_v5 = vsel %vm929_vm3, %v4470_v4, -inf }
 0xfe8   : > { %4559 = vmax.xlane.f32.xlu0 %v4558_v5  ;;  %v7558_v6 = vpop.f32.mrf.mxu1 }
 0xfec   : > { %4562 = vmax.xlane.f32.xlu0 %v4561_v46 }
 0xff0   : > { %4580 = vadd.xlane.f32.xlu0 %v4579_v48 }
0x1047   : > { %v4578_v9 = vpop.xlane.xlu1 %4577 }
0x1048   : > { %7955 = vrcp.f32 %v4578_v9 }
0x104b   : > { %v4597_v19 = vpop.permute.xlu1 %4596 }
0x104c   : > { %7565 = vmatpush3.msra.mxu1 %v4597_v19 }
0x104d   : > { %7574 = vmatprep.subr.mxu1 %v8298_v8 }
0x104f   : > { %v4749_v12 = vpop.permute.xlu1 %4748 }
0x1055   : > { %v7956_v22 = vpop.eup %7955 }
0x1056   : > { %v4592_v10 = vmul.f32 %v7956_v22, %v7952_v35 }
0x1058   : > { %7567 = vmatmul.mubr.msk.f32.vlgmr.msra.gmra.mxu1 %vm929_vm3, %v4592_v10 }
0x1059   : > { %7575 = vmatpush3.msra.mxu1 %v4749_v12  ;;  %7576 = vmatprep.mubr.msk.f32.mxu1 %vm8299_vm1, %v8298_v8 }
0x105a   : > { %7715 = vmatprep.subr.msk.bf16.mxu1 %vm1951_vm4, %v4903_v32 }
0x1071   : > { %v4560_v14 = vpop.xlane.xlu0 %4559 }
0x1072   : > { %v4566_v16 = vsub.f32 %v4470_v4, %v4560_v14 }
0x1074   : > { %v4572_v18 = vmul.f32 1.442695, %v4566_v16 }
0x1075   : > { %v4563_v20 = vpop.xlane.xlu0 %4562 }
0x1076   : > { %7957 = vpow2.f32 %v4572_v18  ;;  %v4567_v23 = vsub.f32 %v4548_v27, %v4563_v20  ;;  %v4911_v27 = vsel %vm1951_vm4, %v4903_v32, 0 }
0x1078   : > { %v4574_v25 = vmul.f32 1.442695, %v4567_v23 }
0x1079   : > { %v4581_v36 = vpop.xlane.xlu0 %4580 }
0x107a   : > { %7959 = vpow2.f32 %v4574_v25 }
0x107b   : > { %7961 = vrcp.f32 %v4581_v36 }
0x1083   : > { %v7958_v26 = vpop.eup %7957 }
0x1084   : > { %v4582_v28 = vsel %vm929_vm3, %v7958_v26, 0.0 }
0x1085   : > { %4583 = vadd.xlane.f32.xlu1 %v4582_v28 }
0x1087   : > { %v7960_v30 = vpop.eup %7959 }
0x1088   : > { %v4585_v34 = vsel %vm929_vm3, %v7960_v30, 0.0  ;;  %v7962_v57 = vpop.eup %7961 }
0x1089   : > { %4586 = vadd.xlane.f32.xlu0 %v4585_v34  ;;  %v4593_v40 = vmul.f32 %v7962_v57, %v7954_v7 }
0x1096   : > { %4824 = vrot.lane.b32.xlu1 %v8559_v15, %s8316_s22 }
0x109a   : > { %4966 = vrot.lane.b32.xlu1 %v8556_v13, %s8317_s30 }
0x109e   : > { %5044 = vrot.lane.b32.xlu1 %v8562_v17, %s8317_s30 }
0x109f   : > { %4672 = vrot.lane.b32.xlu0 %v8562_v17, %s8316_s22  ;;  %s6991_s22 = sshll.u32 %s524_s15, 5 }
0x10a2   : > { %5202 = vrot.lane.b32.xlu1 %v8559_v15, %s8318_s17 }
0x10a3   : > { %4968 = vrot.lane.b32.xlu0 %v8556_v13, %s8318_s17 }
0x10a6   : > { %5200 = vrot.lane.b32.xlu1 %v8559_v15, %s8317_s30 }
0x10a7   : > { %5046 = vrot.lane.b32.xlu0 %v8562_v17, %s8318_s17 }
0x10ab   : > { %5124 = vrot.lane.b32.xlu0 %v8554_v11, %s8318_s17 }
0x10af   : > { %5122 = vrot.lane.b32.xlu0 %v8554_v11, %s8317_s30 }
0x110e   : > { %v4584_v37 = vpop.xlane.xlu1 %4583 }
0x110f   : > { %7963 = vrcp.f32 %v4584_v37 }
0x1112   : > { %v4587_v38 = vpop.xlane.xlu0 %4586  ;;  %v4825_v39 = vpop.permute.xlu1 %4824 }
0x1113   : > { %7965 = vrcp.f32 %v4587_v38 }
0x1116   : > { %v4673_v59 = vpop.permute.xlu0 %4672  ;;  %v4967_v42 = vpop.permute.xlu1 %4966 }
0x1117   : > { %7570 = vmatpush3.msra.mxu0 %v4673_v59 }
0x1118   : > { %v4668_v61 = vpop.f32.mrf.mxu1  ;;  %7572 = vmatmul.mubr.msk.f32.vlgmr.msra.gmra.mxu0 %vm929_vm3, %v4593_v40  ;;  %7579 = vmatprep.subr.mxu0 %v8298_v8 }
0x1119   : > { %7580 = vmatpush3.msra.mxu0 %v4825_v39  ;;  %7581 = vmatprep.mubr.msk.f32.mxu0 %vm8299_vm1, %v8298_v8 }
0x111a   : > { %v7568_v63 = vpop.f32.mrf.mxu1  ;;  %7590 = vmatprep.subr.mxu0 %v8298_v8  ;;  %v4969_v45 = vpop.permute.xlu0 %4968 }
0x111b   : > { %v5045_v49 = vpop.permute.xlu1 %5044 }
0x111c   : > { %v7964_v41 = vpop.eup %7963 }
0x111d   : > { %v4594_v43 = vmul.f32 %v7964_v41, %v7958_v26 }
0x111e   : > { %v5047_v21 = vpop.permute.xlu0 %5046 }
0x111f   : > { %7577 = vmatmul.mubr.msk.f32.vlgmr.msra.gmra.mxu1 %vm929_vm3, %v4594_v43  ;;  %v5203_v24 = vpop.permute.xlu1 %5202 }
0x1120   : > { %v7966_v44 = vpop.eup %7965  ;;  %7585 = vmatpush3.bf16.msra.mxu1 %v4911_v27 }
0x1121   : > { %v4595_v47 = vmul.f32 %v7966_v44, %v7960_v30  ;;  %7600 = vmatprep.subr.mxu1 %v8298_v8 }
0x1122   : > { %v5125_v55 = vpop.permute.xlu0 %5124 }
0x1123   : > { %7582 = vmatmul.mubr.msk.f32.vlgmr.msra.gmra.mxu0 %vm929_vm3, %v4595_v47  ;;  %v5201_v31 = vpop.permute.xlu1 %5200 }
0x1124   : > { %7591 = vmatpush3.xpose.msk.msra.mxu0 %vm623_vm2, %v4969_v45  ;;  %7592 = vmatprep.mubr.msk.f32.mxu0 %vm8299_vm1, %v8298_v8 }
0x1125   : > { %7595 = vmatprep.subr.mxu0 %v8298_v8 }
0x1126   : > { %v5123_v5 = vpop.permute.xlu0 %5122 }
0x1127   : > { %7593 = vmatmul.mubr.msk.f32.vlgmr.msra.gmra.mxu0 %vm623_vm2, %v4967_v42 }
0x1128   : > { %7596 = vmatpush3.xpose.msk.msra.mxu0 %vm623_vm2, %v5047_v21  ;;  %7597 = vmatprep.mubr.msk.f32.mxu0 %vm8299_vm1, %v8298_v8 }
0x1129   : > { %7605 = vmatprep.subr.mxu0 %v8298_v8 }
0x112b   : > { %7598 = vmatmul.mubr.msk.f32.vlgmr.msra.gmra.mxu0 %vm623_vm2, %v5045_v49 }
0x112c   : > { %7606 = vmatpush3.xpose.msk.msra.mxu0 %vm623_vm2, %v5203_v24  ;;  %7607 = vmatprep.mubr.msk.f32.mxu0 %vm8299_vm1, %v8298_v8 }
0x112d   : > { %7615 = vmatprep.subr.mxu0 %v8298_v8 }
0x112f   : > { %7608 = vmatmul.mubr.msk.f32.vlgmr.msra.gmra.mxu0 %vm623_vm2, %v5201_v31 }
0x1130   : > { %7617 = vmatprep.mubr.msk.f32.mxu0 %vm8299_vm1, %v8298_v8 }
0x11d8   : > { %v4744_v50 = vpop.f32.mrf.mxu0 }
0x11d9   : > { %v4900_v29 = vpack.c.bf16 %v4744_v50, %v4668_v61 }
0x11da   : > { %v7573_v51 = vpop.f32.mrf.mxu0 }
0x11db   : > { %7586 = vmatprep.mubr.msk.bf16.mxu1 %vm623_vm2, %v4900_v29 }
0x11df   : > { %v4820_v33 = vpop.f32.mrf.mxu1 }
0x11e1   : > { %v7578_v35 = vpop.f32.mrf.mxu1 }
0x11e3   : > { %v4896_v52 = vpop.f32.mrf.mxu0 }
0x11e4   : > { %v4901_v53 = vpack.c.bf16 %v4896_v52, %v4820_v33 }
0x11e5   : > { %v7583_v54 = vpop.f32.mrf.mxu0 }
0x11e6   : > { %7587 = vmatmul.mubr.msk.bf16.vlgmr.msra.gmra.mxu1 %vm623_vm2, %v4901_v53 }
0x11e7   : > { %7601 = vmatpush3.xpose.msk.msra.mxu1 %vm623_vm2, %v5125_v55  ;;  %v5040_v56 = vpop.f32.mrf.mxu0  ;;  %7602 = vmatprep.mubr.msk.f32.mxu1 %vm8299_vm1, %v8298_v8 }
0x11e8   : > { %v5278_v60 = vsel %vm929_vm3, %v5040_v56, -inf  ;;  %7610 = vmatprep.subr.mxu1 %v8298_v8 }
0x11e9   : > { %5279 = vmax.xlane.f32.xlu0 %v5278_v60  ;;  %v7594_v0 = vpop.f32.mrf.mxu0 }
0x11eb   : > { %v5118_v2 = vpop.f32.mrf.mxu0 }
0x11ec   : > { %v5281_v4 = vsel %vm929_vm3, %v5118_v2, -inf }
0x11ed   : > { %5282 = vmax.xlane.f32.xlu1 %v5281_v4  ;;  %v7599_v6 = vpop.f32.mrf.mxu0 }
0x11ee   : > { %7603 = vmatmul.mubr.msk.f32.vlgmr.msra.gmra.mxu1 %vm623_vm2, %v5123_v5  ;;  %v5629_v6 = vld [vmem:[#allocation5 + $0xc] sm:$0x3] }
0x11ef   : > { %v5274_v46 = vpop.f32.mrf.mxu0  ;;  %7612 = vmatprep.mubr.msk.f32.mxu1 %vm8299_vm1, %v8298_v8 }
0x11f1   : > { %v7609_v7 = vpop.f32.mrf.mxu0 }
0x1272   : > { %v5280_v48 = vpop.xlane.xlu0 %5279 }
0x1273   : > { %v5290_v9 = vsub.f32 %v5040_v56, %v5280_v48 }
0x1275   : > { %v5294_v19 = vmul.f32 1.442695, %v5290_v9 }
0x1276   : > { %v5283_v12 = vpop.xlane.xlu1 %5282 }
0x1277   : > { %7967 = vpow2.f32 %v5294_v19  ;;  %v5291_v14 = vsub.f32 %v5118_v2, %v5283_v12 }
0x1279   : > { %v5296_v16 = vmul.f32 1.442695, %v5291_v14 }
0x127b   : > { %7969 = vpow2.f32 %v5296_v16 }
0x1284   : > { %v7968_v22 = vpop.eup %7967 }
0x1285   : > { %v5302_v10 = vsel %vm929_vm3, %v7968_v22, 0.0 }
0x1286   : > { %5303 = vadd.xlane.f32.xlu1 %v5302_v10 }
0x1288   : > { %v7970_v57 = vpop.eup %7969 }
0x1297   : > { %5322 = vrot.lane.b32.xlu1 %v8556_v13, %s8319_s20 }
0x129b   : > { %5474 = vrot.lane.b32.xlu1 %v8554_v11, %s8319_s20 }
0x12a6   : > { %v7588_v18 = vpop.f32.mrf.mxu1 }
0x12a7   : > { %v9052_v20 = vadd.f32 %v7588_v18, %v8976_v58  ;;  %v5287_v58 = vsel %vm929_vm3, %v5274_v46, -inf }
0x12a8   : > { %v4947_v23 = vpop.f32.mrf.mxu1 }
0x12a9   : > { %v9055_v25 = vadd.f32 %v4947_v23, %v8979_v62  ;;  %v5305_v62 = vsel %vm929_vm3, %v7970_v57, 0.0 }
0x12aa   : > { %v7589_v26 = vpop.f32.mrf.mxu1 }
0x12ab   : > { %v9058_v28 = vadd.f32 %v7589_v26, %v8982_v1 }
0x12ac   : > { %v4950_v30 = vpop.f32.mrf.mxu1 }
0x12ad   : > { %v9061_v34 = vadd.f32 %v4950_v30, %v8985_v3 }
0x12ae   : > { %v5196_v36 = vpop.f32.mrf.mxu1 }
0x12af   : > { %v5284_v37 = vsel %vm929_vm3, %v5196_v36, -inf }
0x12b0   : > { %5285 = vmax.xlane.f32.xlu0 %v5284_v37  ;;  %v7604_v38 = vpop.f32.mrf.mxu1 }
0x12b4   : > { %5288 = vmax.xlane.f32.xlu0 %v5287_v58 }
0x12b8   : > { %5306 = vadd.xlane.f32.xlu0 %v5305_v62 }
0x130f   : > { %v5304_v39 = vpop.xlane.xlu1 %5303 }
0x1310   : > { %7971 = vrcp.f32 %v5304_v39 }
0x1313   : > { %v5323_v1 = vpop.permute.xlu1 %5322 }
0x1314   : > { %7611 = vmatpush3.msra.mxu1 %v5323_v1 }
0x1315   : > { %7620 = vmatprep.subr.mxu1 %v8298_v8 }
0x1317   : > { %v5475_v40 = vpop.permute.xlu1 %5474 }
0x131d   : > { %v7972_v3 = vpop.eup %7971 }
0x131e   : > { %v5318_v59 = vmul.f32 %v7972_v3, %v7968_v22 }
0x1320   : > { %7613 = vmatmul.mubr.msk.f32.vlgmr.msra.gmra.mxu1 %vm929_vm3, %v5318_v59 }
0x1321   : > { %7621 = vmatpush3.msra.mxu1 %v5475_v40  ;;  %7622 = vmatprep.mubr.msk.f32.mxu1 %vm8299_vm1, %v8298_v8 }
0x1322   : > { %7716 = vmatprep.subr.msk.bf16.mxu1 %vm1951_vm4, %v5629_v6 }
0x1339   : > { %v5286_v61 = vpop.xlane.xlu0 %5285 }
0x133a   : > { %v5292_v63 = vsub.f32 %v5196_v36, %v5286_v61 }
0x133c   : > { %v5298_v41 = vmul.f32 1.442695, %v5292_v63 }
0x133d   : > { %v5289_v42 = vpop.xlane.xlu0 %5288 }
0x133e   : > { %7973 = vpow2.f32 %v5298_v41  ;;  %v5293_v43 = vsub.f32 %v5274_v46, %v5289_v42  ;;  %v5637_v46 = vsel %vm1951_vm4, %v5629_v6, 0 }
0x1340   : > { %v5300_v44 = vmul.f32 1.442695, %v5293_v43 }
0x1341   : > { %v5307_v24 = vpop.xlane.xlu0 %5306 }
0x1342   : > { %7975 = vpow2.f32 %v5300_v44 }
0x1343   : > { %7977 = vrcp.f32 %v5307_v24 }
0x134b   : > { %v7974_v45 = vpop.eup %7973 }
0x134c   : > { %v5308_v47 = vsel %vm929_vm3, %v7974_v45, 0.0 }
0x134d   : > { %5309 = vadd.xlane.f32.xlu1 %v5308_v47 }
0x134f   : > { %v7976_v49 = vpop.eup %7975 }
0x1350   : > { %v5311_v21 = vsel %vm929_vm3, %v7976_v49, 0.0  ;;  %v7978_v27 = vpop.eup %7977 }
0x1351   : > { %5312 = vadd.xlane.f32.xlu0 %v5311_v21  ;;  %v5319_v51 = vmul.f32 %v7978_v27, %v7970_v57 }
0x135e   : > { %5550 = vrot.lane.b32.xlu1 %v8559_v15, %s8319_s20 }
0x1362   : > { %5692 = vrot.lane.b32.xlu1 %v8556_v13, %s8320_s23 }
0x1366   : > { %5770 = vrot.lane.b32.xlu1 %v8562_v17, %s8320_s23 }
0x1367   : > { %5398 = vrot.lane.b32.xlu0 %v8562_v17, %s8319_s20  ;;  %s526_s20 = scalar_lea.vmem [#allocation14], %s6991_s22 }
0x136a   : > { %5928 = vrot.lane.b32.xlu1 %v8559_v15, %s8321_s24 }
0x136b   : > { %5694 = vrot.lane.b32.xlu0 %v8556_v13, %s8321_s24 }
0x136e   : > { %5926 = vrot.lane.b32.xlu1 %v8559_v15, %s8320_s23 }
0x136f   : > { %5772 = vrot.lane.b32.xlu0 %v8562_v17, %s8321_s24 }
0x1373   : > { %5850 = vrot.lane.b32.xlu0 %v8554_v11, %s8321_s24  ;;  %s6842_s24 = sshll.u32 %s526_s20, 4  ;;  %s9247_s24 = int_to_ptr.vmem [resolvable:$true] %s6842_s24 }
0x1374   : > { %s8209_s16 = scalar_lea.vmem %s9247_s24, 512  ;;  %p8216_p1 = scmp.lt.s32.totalorder %s9247_s24, %s8214_s14 }
0x1375   : > { %p8210_p6 = scmp.ne.s32.totalorder %s9247_s24, %s8209_s16  ;;  %p8217_p3 = scmp.lt.s32.totalorder %s8215_s28, %s8209_s16 }
0x1377   : > { %5848 = vrot.lane.b32.xlu0 %v8554_v11, %s8320_s23  ;;  %s7135_s23 = sshll.u32 %s8417_s29, 9  ;;  %s9250_s29 = scalar_lea.sflag [#allocation4], %s524_s15 }
0x1378   : > { %s9245_s19 = scalar_lea.hbm %s9303_s13, %s7135_s23  ;;  %p8211_p5 = pnand %p8210_p6, %p9333_p0 }
0x1379   : > { %p8218_p13 = por %p8217_p3, %p8216_p1 }
0x137a   : > { %p8212_p10 = pneg %p8211_p5 }
0x137c   : > { %p8219_p2 = pnand %p8218_p13, %p8212_p10 }
0x13d6   : > { %v5310_v31 = vpop.xlane.xlu1 %5309 }
0x13d7   : > { %7979 = vrcp.f32 %v5310_v31 }
0x13da   : > { %v5313_v32 = vpop.xlane.xlu0 %5312  ;;  %v5551_v50 = vpop.permute.xlu1 %5550 }
0x13db   : > { %7981 = vrcp.f32 %v5313_v32 }
0x13de   : > { %v5399_v29 = vpop.permute.xlu0 %5398  ;;  %v5693_v53 = vpop.permute.xlu1 %5692 }
0x13df   : > { %7616 = vmatpush3.msra.mxu0 %v5399_v29 }
0x13e0   : > { %v5394_v33 = vpop.f32.mrf.mxu1  ;;  %7618 = vmatmul.mubr.msk.f32.vlgmr.msra.gmra.mxu0 %vm929_vm3, %v5319_v51  ;;  %7625 = vmatprep.subr.mxu0 %v8298_v8 }
0x13e1   : > { %7626 = vmatpush3.msra.mxu0 %v5551_v50  ;;  %7627 = vmatprep.mubr.msk.f32.mxu0 %vm8299_vm1, %v8298_v8 }
0x13e2   : > { %v7614_v35 = vpop.f32.mrf.mxu1  ;;  %7636 = vmatprep.subr.mxu0 %v8298_v8  ;;  %v5695_v56 = vpop.permute.xlu0 %5694 }
0x13e3   : > { %v5771_v0 = vpop.permute.xlu1 %5770 }
0x13e4   : > { %v7980_v52 = vpop.eup %7979 }
0x13e5   : > { %v5320_v54 = vmul.f32 %v7980_v52, %v7974_v45 }
0x13e6   : > { %v5773_v2 = vpop.permute.xlu0 %5772 }
0x13e7   : > { %7623 = vmatmul.mubr.msk.f32.vlgmr.msra.gmra.mxu1 %vm929_vm3, %v5320_v54  ;;  %v5929_v4 = vpop.permute.xlu1 %5928 }
0x13e8   : > { %v7982_v55 = vpop.eup %7981  ;;  %7631 = vmatpush3.bf16.msra.mxu1 %v5637_v46 }
0x13e9   : > { %v5321_v60 = vmul.f32 %v7982_v55, %v7976_v49  ;;  %7646 = vmatprep.subr.mxu1 %v8298_v8 }
0x13ea   : > { %v5851_v16 = vpop.permute.xlu0 %5850 }
0x13eb   : > { %7628 = vmatmul.mubr.msk.f32.vlgmr.msra.gmra.mxu0 %vm929_vm3, %v5321_v60  ;;  %v5927_v5 = vpop.permute.xlu1 %5926 }
0x13ec   : > { %7637 = vmatpush3.xpose.msk.msra.mxu0 %vm623_vm2, %v5695_v56  ;;  %7638 = vmatprep.mubr.msk.f32.mxu0 %vm8299_vm1, %v8298_v8 }
0x13ed   : > { %7641 = vmatprep.subr.mxu0 %v8298_v8 }
0x13ee   : > { %v5849_v37 = vpop.permute.xlu0 %5848 }
0x13ef   : > { %7639 = vmatmul.mubr.msk.f32.vlgmr.msra.gmra.mxu0 %vm623_vm2, %v5693_v53 }
0x13f0   : > { %7642 = vmatpush3.xpose.msk.msra.mxu0 %vm623_vm2, %v5773_v2  ;;  %7643 = vmatprep.mubr.msk.f32.mxu0 %vm8299_vm1, %v8298_v8 }
0x13f1   : > { %7651 = vmatprep.subr.mxu0 %v8298_v8 }
0x13f3   : > { %7644 = vmatmul.mubr.msk.f32.vlgmr.msra.gmra.mxu0 %vm623_vm2, %v5771_v0 }
0x13f4   : > { %7652 = vmatpush3.xpose.msk.msra.mxu0 %vm623_vm2, %v5929_v4  ;;  %7653 = vmatprep.mubr.msk.f32.mxu0 %vm8299_vm1, %v8298_v8 }
0x13f5   : > { %7661 = vmatprep.subr.mxu0 %v8298_v8 }
0x13f7   : > { %7654 = vmatmul.mubr.msk.f32.vlgmr.msra.gmra.mxu0 %vm623_vm2, %v5927_v5 }
0x13f8   : > { %7663 = vmatprep.mubr.msk.f32.mxu0 %vm8299_vm1, %v8298_v8 }
0x14a0   : > { %v5470_v7 = vpop.f32.mrf.mxu0 }
0x14a1   : > { %v5626_v48 = vpack.c.bf16 %v5470_v7, %v5394_v33 }
0x14a2   : > { %v7619_v9 = vpop.f32.mrf.mxu0 }
0x14a3   : > { %7632 = vmatprep.mubr.msk.bf16.mxu1 %vm623_vm2, %v5626_v48 }
0x14a7   : > { %v5546_v19 = vpop.f32.mrf.mxu1 }
0x14a9   : > { %v7624_v22 = vpop.f32.mrf.mxu1 }
0x14ab   : > { %v5622_v10 = vpop.f32.mrf.mxu0 }
0x14ac   : > { %v5627_v12 = vpack.c.bf16 %v5622_v10, %v5546_v19  ;;  %v6355_v10 = vld [vmem:[#allocation5 + $0xe] sm:$0x3] }
0x14ad   : > { %v7629_v14 = vpop.f32.mrf.mxu0 }
0x14ae   : > { %7633 = vmatmul.mubr.msk.bf16.vlgmr.msra.gmra.mxu1 %vm623_vm2, %v5627_v12  ;;  %v6363_v12 = vsel %vm1951_vm4, %v6355_v10, 0 }
0x14af   : > { %7647 = vmatpush3.xpose.msk.msra.mxu1 %vm623_vm2, %v5851_v16  ;;  %v5766_v18 = vpop.f32.mrf.mxu0  ;;  %7648 = vmatprep.mubr.msk.f32.mxu1 %vm8299_vm1, %v8298_v8 }
0x14b0   : > { %v6004_v23 = vsel %vm929_vm3, %v5766_v18, -inf  ;;  %7656 = vmatprep.subr.mxu1 %v8298_v8 }
0x14b1   : > { %6005 = vmax.xlane.f32.xlu0 %v6004_v23  ;;  %v7640_v26 = vpop.f32.mrf.mxu0 }
0x14b3   : > { %v5844_v30 = vpop.f32.mrf.mxu0 }
0x14b4   : > { %v6007_v36 = vsel %vm929_vm3, %v5844_v30, -inf }
0x14b5   : > { %6008 = vmax.xlane.f32.xlu1 %v6007_v36  ;;  %v7645_v38 = vpop.f32.mrf.mxu0 }
0x14b6   : > { %7649 = vmatmul.mubr.msk.f32.vlgmr.msra.gmra.mxu1 %vm623_vm2, %v5849_v37 }
0x14b7   : > { %v6000_v58 = vpop.f32.mrf.mxu0  ;;  %7658 = vmatprep.mubr.msk.f32.mxu1 %vm8299_vm1, %v8298_v8 }
0x14b9   : > { %v7655_v57 = vpop.f32.mrf.mxu0 }
0x153a   : > { %v6006_v62 = vpop.xlane.xlu0 %6005 }
0x153b   : > { %v6016_v39 = vsub.f32 %v5766_v18, %v6006_v62 }
0x153d   : > { %v6020_v1 = vmul.f32 1.442695, %v6016_v39 }
0x153e   : > { %v6009_v40 = vpop.xlane.xlu1 %6008 }
0x153f   : > { %7983 = vpow2.f32 %v6020_v1  ;;  %v6017_v61 = vsub.f32 %v5844_v30, %v6009_v40 }
0x1541   : > { %v6022_v63 = vmul.f32 1.442695, %v6017_v61 }
0x1543   : > { %7985 = vpow2.f32 %v6022_v63  ;;  %v8023_v63 = vld [vmem:[%s8534_s21] sm:$0xff] }
0x154c   : > { %v7984_v3 = vpop.eup %7983 }
0x154d   : > { %v6028_v59 = vsel %vm929_vm3, %v7984_v3, 0.0 }
0x154e   : > { %6029 = vadd.xlane.f32.xlu1 %v6028_v59 }
0x1550   : > { %v7986_v31 = vpop.eup %7985 }
0x155f   : > { %6048 = vrot.lane.b32.xlu1 %v8556_v13, %s8322_s27 }
0x1563   : > { %6200 = vrot.lane.b32.xlu1 %v8554_v11, %s8322_s27 }
0x156e   : > { %v7634_v41 = vpop.f32.mrf.mxu1 }
0x156f   : > { %v9128_v42 = vadd.f32 %v7634_v41, %v9052_v20  ;;  %v6013_v20 = vsel %vm929_vm3, %v6000_v58, -inf }
0x1570   : > { %v5673_v43 = vpop.f32.mrf.mxu1 }
0x1571   : > { %v9131_v44 = vadd.f32 %v5673_v43, %v9055_v25  ;;  %v6031_v25 = vsel %vm929_vm3, %v7986_v31, 0.0 }
0x1572   : > { %v7635_v45 = vpop.f32.mrf.mxu1 }
0x1573   : > { %v9134_v47 = vadd.f32 %v7635_v45, %v9058_v28 }
0x1574   : > { %v5676_v13 = vpop.f32.mrf.mxu1 }
0x1575   : > { %v9137_v49 = vadd.f32 %v5676_v13, %v9061_v34  ;;  %v8024_v13 = vld [vmem:[%s8534_s21 + $0x10] sm:$0xff] }
0x1576   : > { %v5922_v11 = vpop.f32.mrf.mxu1 }
0x1577   : > { %v6010_v21 = vsel %vm929_vm3, %v5922_v11, -inf }
0x1578   : > { %6011 = vmax.xlane.f32.xlu0 %v6010_v21  ;;  %v7650_v24 = vpop.f32.mrf.mxu1  ;;  %v8025_v21 = vld [vmem:[%s8534_s21 + $0x8] sm:$0xff] }
0x157c   : > { %6014 = vmax.xlane.f32.xlu0 %v6013_v20 }
0x1580   : > { %6032 = vadd.xlane.f32.xlu0 %v6031_v25 }
0x15d7   : > { %v6030_v32 = vpop.xlane.xlu1 %6029 }
0x15d8   : > { %7987 = vrcp.f32 %v6030_v32 }
0x15db   : > { %v6049_v28 = vpop.permute.xlu1 %6048 }
0x15dc   : > { %7657 = vmatpush3.msra.mxu1 %v6049_v28 }
0x15dd   : > { %7666 = vmatprep.subr.mxu1 %v8298_v8 }
0x15df   : > { %v6201_v50 = vpop.permute.xlu1 %6200 }
0x15e5   : > { %v7988_v34 = vpop.eup %7987 }
0x15e6   : > { %v6044_v27 = vmul.f32 %v7988_v34, %v7984_v3 }
0x15e8   : > { %7659 = vmatmul.mubr.msk.f32.vlgmr.msra.gmra.mxu1 %vm929_vm3, %v6044_v27 }
0x15e9   : > { %7667 = vmatpush3.msra.mxu1 %v6201_v50  ;;  %7668 = vmatprep.mubr.msk.f32.mxu1 %vm8299_vm1, %v8298_v8 }
0x15ea   : > { %7717 = vmatprep.subr.msk.bf16.mxu1 %vm1951_vm4, %v6355_v10 }
0x1601   : > { %v6012_v29 = vpop.xlane.xlu0 %6011 }
0x1602   : > { %v6018_v51 = vsub.f32 %v5922_v11, %v6012_v29 }
0x1604   : > { %v6024_v33 = vmul.f32 1.442695, %v6018_v51 }
0x1605   : > { %v6015_v35 = vpop.xlane.xlu0 %6014 }
0x1606   : > { %7989 = vpow2.f32 %v6024_v33  ;;  %v6019_v52 = vsub.f32 %v6000_v58, %v6015_v35  ;;  %v7111_v58 = vld [vmem:[#allocation7] ss:$0 sm:$0xff] }
0x1608   : > { %v6026_v53 = vmul.f32 1.442695, %v6019_v52 }
0x1609   : > { %v6033_v0 = vpop.xlane.xlu0 %6032 }
0x160a   : > { %7991 = vpow2.f32 %v6026_v53 }
0x160b   : > { %7993 = vrcp.f32 %v6033_v0 }
0x1613   : > { %v7990_v54 = vpop.eup %7989 }
0x1614   : > { %v6034_v55 = vsel %vm929_vm3, %v7990_v54, 0.0 }
0x1615   : > { %6035 = vadd.xlane.f32.xlu1 %v6034_v55 }
0x1617   : > { %v7992_v56 = vpop.eup %7991 }
0x1618   : > { %v6037_v60 = vsel %vm929_vm3, %v7992_v56, 0.0  ;;  %v7994_v5 = vpop.eup %7993 }
0x1619   : > { %6038 = vadd.xlane.f32.xlu0 %v6037_v60  ;;  %v6045_v46 = vmul.f32 %v7994_v5, %v7986_v31  ;;  %v8026_v31 = vld [vmem:[%s8534_s21 + $0x18] sm:$0xff] }
0x1626   : > { %6276 = vrot.lane.b32.xlu1 %v8559_v15, %s8322_s27 }
0x162f   : > { %6124 = vrot.lane.b32.xlu0 %v8562_v17, %s8322_s27 }
0x169e   : > { %v6036_v2 = vpop.xlane.xlu1 %6035 }
0x169f   : > { %7995 = vrcp.f32 %v6036_v2 }
0x16a2   : > { %v6039_v4 = vpop.xlane.xlu0 %6038  ;;  %v6277_v7 = vpop.permute.xlu1 %6276 }
0x16a3   : > { %7997 = vrcp.f32 %v6039_v4 }
0x16a6   : > { %v6125_v6 = vpop.permute.xlu0 %6124 }
0x16a7   : > { %7662 = vmatpush3.msra.mxu0 %v6125_v6  ;;  %v7861_v6 = vld [vmem:[#allocation11 + $0x8] sm:$0xff]  }
0x16a8   : > { %v6120_v48 = vpop.f32.mrf.mxu1  ;;  %7664 = vmatmul.mubr.msk.f32.vlgmr.msra.gmra.mxu0 %vm929_vm3, %v6045_v46  ;;  %7671 = vmatprep.subr.mxu0 %v8298_v8  ;;  %v7862_v46 = vld [vmem:[#allocation11] sm:$0xff]  }
0x16a9   : > { %7672 = vmatpush3.msra.mxu0 %v6277_v7  ;;  %7673 = vmatprep.mubr.msk.f32.mxu0 %vm8299_vm1, %v8298_v8 }
0x16aa   : > { %v7660_v15 = vpop.f32.mrf.mxu1  ;;  %7682 = vmatprep.subr.bf16.mxu0 %v7861_v6 }
0x16ac   : > { %v7996_v17 = vpop.eup %7995 }
0x16ad   : > { %v6046_v9 = vmul.f32 %v7996_v17, %v7990_v54 }
0x16af   : > { %7669 = vmatmul.mubr.msk.f32.vlgmr.msra.gmra.mxu1 %vm929_vm3, %v6046_v9 }
0x16b0   : > { %v7998_v19 = vpop.eup %7997  ;;  %7677 = vmatpush3.bf16.msra.mxu1 %v6363_v12 }
0x16b1   : > { %v6047_v22 = vmul.f32 %v7998_v19, %v7992_v56 }
0x16b3   : > { %7674 = vmatmul.mubr.msk.f32.vlgmr.msra.gmra.mxu0 %vm929_vm3, %v6047_v22 }
0x16b4   : > { %7683 = vmatpush3.bf16.msra.mxu0 %v7861_v6 }
0x16b5   : > { %7684 = vmatprep.subr.bf16.mxu0 %v7862_v46 }
0x16b8   : > { %7685 = vmatpush3.bf16.msra.mxu0 %v7862_v46 }
0x1768   : > { %v6196_v14 = vpop.f32.mrf.mxu0 }
0x1769   : > { %v6352_v16 = vpack.c.bf16 %v6196_v14, %v6120_v48 }
0x176a   : > { %v7665_v18 = vpop.f32.mrf.mxu0 }
0x176b   : > { %7678 = vmatprep.mubr.msk.bf16.mxu1 %vm623_vm2, %v6352_v16 }
0x176f   : > { %v6272_v8 = vpop.f32.mrf.mxu1 }
0x1771   : > { %v7670_v23 = vpop.f32.mrf.mxu1 }
0x1773   : > { %v6348_v26 = vpop.f32.mrf.mxu0 }
0x1774   : > { %v6353_v30 = vpack.c.bf16 %v6348_v26, %v6272_v8  ;;  %v7112_v26 = vld [vmem:[#allocation8] ss:$0 sm:$0xff] }
0x1775   : > { %v7675_v36 = vpop.f32.mrf.mxu0 }
0x1776   : > { %7679 = vmatmul.mubr.msk.bf16.vlgmr.msra.gmra.mxu1 %vm623_vm2, %v6353_v30 }
0x1836   : > { %v7680_v37 = vpop.f32.mrf.mxu1 }
0x1837   : > { %v6416_v38 = vadd.f32 %v7680_v37, %v9128_v42 }
0x1838   : > { %v6399_v57 = vpop.f32.mrf.mxu1 }
0x1839   : > { %v6414_v62 = vadd.f32 %v6399_v57, %v9131_v44  ;;  %v6427_v1 = vadd.f32 %v7111_v58, %v6416_v38  ;;  %v7113_v57 = vld [vmem:[#allocation10] ss:$0 sm:$0xff] }
0x183a   : > { %v7681_v39 = vpop.f32.mrf.mxu1 }
0x183b   : > { %v6425_v3 = vadd.f32 %v7111_v58, %v6414_v62  ;;  %v6417_v59 = vadd.f32 %v7681_v39, %v9134_v47  ;;  %v6431_v11 = vadd.f32 %v8024_v13, %v6427_v1  ;;  %v7864_v13 = vld [vmem:[%s9299_s9 + $0x30] sm:$0xff]  }
0x183c   : > { %v6402_v40 = vpop.f32.mrf.mxu1 }
0x183d   : > { %v6415_v61 = vadd.f32 %v6402_v40, %v9137_v49  ;;  %v6429_v41 = vadd.f32 %v8023_v63, %v6425_v3  ;;  %v6428_v43 = vadd.f32 %v7111_v58, %v6417_v59  ;;  %v6441_v24 = vsel %vm564_vm0, %v6431_v11, 0.0 }
0x183f   : > { %v6426_v45 = vadd.f32 %v7111_v58, %v6415_v61  ;;  %v6435_v42 = vsel %vm564_vm0, %v6429_v41, 0.0  ;;  %v6432_v47 = vadd.f32 %v8026_v31, %v6428_v43  ;;  %v7870_v31 = vld [vmem:[%s9299_s9] sm:$0xff]  }
0x1840   : > { %6436 = vadd.xlane.f32.xlu0 %v6435_v42  ;;  %v7863_v42 = vld [vmem:[%s9299_s9 + $0x38] sm:$0xff]  }
0x1841   : > { %v6430_v44 = vadd.f32 %v8025_v21, %v6426_v45  ;;  %v6444_v49 = vsel %vm564_vm0, %v6432_v47, 0.0  ;;  %7690 = vmatprep.subr.bf16.mxu1 %v7863_v42  ;;  %v7866_v21 = vld [vmem:[%s9299_s9 + $0x20] sm:$0xff]  }
0x1842   : > { %7691 = vmatpush3.bf16.msra.mxu1 %v7863_v42 }
0x1843   : > { %v6438_v20 = vsel %vm564_vm0, %v6430_v44, 0.0  ;;  %7692 = vmatprep.subr.bf16.mxu1 %v7864_v13 }
0x1844   : > { %6442 = vadd.xlane.f32.xlu0 %v6441_v24  ;;  %6439 = vadd.xlane.f32.xlu1 %v6438_v20  ;;  %v7868_v24 = vld [vmem:[%s9299_s9 + $0x10] sm:$0xff]   ;;  %v7869_v20 = vld [vmem:[%s9299_s9 + $0x8] sm:$0xff]  }
0x1846   : > { %7693 = vmatpush3.bf16.msra.mxu1 %v7864_v13 }
0x1848   : > { %6445 = vadd.xlane.f32.xlu0 %v6444_v49 }
0x18c9   : > { %v6437_v25 = vpop.xlane.xlu0 %6436 }
0x18ca   : > { %v6448_v32 = vmul.f32 0.03125, %v6437_v25 }
0x18cc   : > { %v6452_v28 = vsub.f32 %v6429_v41, %v6448_v32 }
0x18cd   : > { %v6443_v34 = vpop.xlane.xlu0 %6442  ;;  %v6440_v27 = vpop.xlane.xlu1 %6439 }
0x18ce   : > { %v6450_v50 = vmul.f32 0.03125, %v6443_v34  ;;  %v6449_v29 = vmul.f32 0.03125, %v6440_v27  ;;  %v6456_v51 = vmul.f32 %v6452_v28, %v6452_v28 }
0x18d0   : > { %v6454_v33 = vsub.f32 %v6431_v11, %v6450_v50  ;;  %v6453_v35 = vsub.f32 %v6430_v44, %v6449_v29  ;;  %v6460_v52 = vsel %vm564_vm0, %v6456_v51, 0.0  ;;  %v7865_v11 = vld [vmem:[%s9299_s9 + $0x28] sm:$0xff]   ;;  %v7867_v44 = vld [vmem:[%s9299_s9 + $0x18] sm:$0xff]  }
0x18d1   : > { %v6446_v53 = vpop.xlane.xlu0 %6445  ;;  %6461 = vadd.xlane.f32.xlu1 %v6460_v52  ;;  %7694 = vmatprep.subr.bf16.mxu1 %v7865_v11 }
0x18d2   : > { %v6451_v54 = vmul.f32 0.03125, %v6446_v53  ;;  %v6458_v55 = vmul.f32 %v6454_v33, %v6454_v33  ;;  %v6457_v56 = vmul.f32 %v6453_v35, %v6453_v35  ;;  %7695 = vmatpush3.bf16.msra.mxu1 %v7865_v11 }
0x18d3   : > { %7696 = vmatprep.subr.bf16.mxu1 %v7866_v21 }
0x18d4   : > { %v6455_v60 = vsub.f32 %v6432_v47, %v6451_v54  ;;  %v6466_v0 = vsel %vm564_vm0, %v6458_v55, 0.0  ;;  %v6463_v2 = vsel %vm564_vm0, %v6457_v56, 0.0  ;;  %v7114_v47 = vld [vmem:[#allocation13] ss:$0 sm:$0xff] }
0x18d5   : > { %6467 = vadd.xlane.f32.xlu1 %v6466_v0  ;;  %6464 = vadd.xlane.f32.xlu0 %v6463_v2 }
0x18d6   : > { %v6459_v4 = vmul.f32 %v6455_v60, %v6455_v60  ;;  %7697 = vmatpush3.bf16.msra.mxu1 %v7866_v21 }
0x18d7   : > { %7698 = vmatprep.subr.bf16.mxu1 %v7867_v44 }
0x18d8   : > { %v6469_v5 = vsel %vm564_vm0, %v6459_v4, 0.0 }
0x18d9   : > { %6470 = vadd.xlane.f32.xlu0 %v6469_v5 }
0x18da   : > { %7699 = vmatpush3.bf16.msra.mxu1 %v7867_v44 }
0x18db   : > { %7700 = vmatprep.subr.bf16.mxu1 %v7868_v24 }
0x18de   : > { %7701 = vmatpush3.bf16.msra.mxu1 %v7868_v24 }
0x18df   : > { %7702 = vmatprep.subr.bf16.mxu1 %v7869_v20 }
0x18e2   : > { %7703 = vmatpush3.bf16.msra.mxu1 %v7869_v20 }
0x18e3   : > { %7704 = vmatprep.subr.bf16.mxu1 %v7870_v31 }
0x18e6   : > { %7705 = vmatpush3.bf16.msra.mxu1 %v7870_v31 }
0x195a   : > { %v6462_v7 = vpop.xlane.xlu1 %6461 }
0x195b   : > { %v6472_v48 = vmul.f32 0.03125, %v6462_v7 }
0x195d   : > { %v6476_v15 = vadd.f32 1e-05, %v6472_v48 }
0x195e   : > { %v6465_v17 = vpop.xlane.xlu0 %6464  ;;  %v6468_v9 = vpop.xlane.xlu1 %6467 }
0x195f   : > { %7999 = vrsqrt.f32 %v6476_v15  ;;  %v6473_v19 = vmul.f32 0.03125, %v6465_v17  ;;  %v6474_v22 = vmul.f32 0.03125, %v6468_v9 }
0x1961   : > { %v6477_v10 = vadd.f32 1e-05, %v6473_v19  ;;  %v6478_v12 = vadd.f32 1e-05, %v6474_v22 }
0x1962   : > { %v6471_v14 = vpop.xlane.xlu0 %6470 }
0x1963   : > { %8001 = vrsqrt.f32 %v6477_v10  ;;  %v6475_v16 = vmul.f32 0.03125, %v6471_v14 }
0x1964   : > { %8003 = vrsqrt.f32 %v6478_v12 }
0x1965   : > { %v6479_v18 = vadd.f32 1e-05, %v6475_v16 }
0x1967   : > { %8005 = vrsqrt.f32 %v6479_v18 }
0x196c   : > { %v8000_v8 = vpop.eup %7999 }
0x196d   : > { %v6484_v23 = vmul.f32 %v8000_v8, %v6452_v28 }
0x196f   : > { %v6494_v38 = vmul.f32 %v7112_v26, %v6484_v23 }
0x1970   : > { %v8002_v30 = vpop.eup %8001 }
0x1971   : > { %v8004_v36 = vpop.eup %8003  ;;  %v6485_v37 = vmul.f32 %v8002_v30, %v6453_v35  ;;  %v9178_v3 = vadd.f32 %v7113_v57, %v6494_v38 }
0x1972   : > { %v6486_v58 = vmul.f32 %v8004_v36, %v6454_v33 }
0x1973   : > { %v6495_v62 = vmul.f32 %v7112_v26, %v6485_v37 }
0x1974   : > { %v8006_v39 = vpop.eup %8005  ;;  %v6496_v40 = vmul.f32 %v7112_v26, %v6486_v58 }
0x1975   : > { %v6487_v1 = vmul.f32 %v8006_v39, %v6455_v60  ;;  %v9180_v59 = vadd.f32 %v7113_v57, %v6495_v62 }
0x1976   : > { %v9185_v41 = vadd.f32 %v7113_v57, %v6496_v40  ;;  %v7119_v40 = vld [vmem:[%s9300_s10] ss:$0 sm:$0xff] }
0x1977   : > { %v6508_v61 = vpack.c.bf16 %v9180_v59, %v9178_v3  ;;  %v6497_v63 = vmul.f32 %v7112_v26, %v6487_v1 }
0x1979   : > { %7686 = vmatprep.mubr.msk.bf16.mxu0 %vm564_vm0, %v6508_v61  ;;  %v9187_v43 = vadd.f32 %v7113_v57, %v6497_v63 }
0x197b   : > { %v6509_v45 = vpack.c.bf16 %v9187_v43, %v9185_v41 }
0x197d   : > { %7687 = vmatmul.mubr.msk.bf16.vlgmr.msra.gmra.mxu0 %vm564_vm0, %v6509_v45 }
0x1a3d   : > { %v7688_v49 = vpop.f32.mrf.mxu0 }
0x1a3e   : > { %v6582_v25 = vadd.f32 %v7688_v49, %v7114_v47 }
0x1a3f   : > { %v6573_v32 = vpop.f32.mrf.mxu0 }
0x1a40   : > { %v6594_v28 = vmul.f32 0.044715, %v6582_v25  ;;  %v6574_v34 = vadd.f32 %v7114_v47, %v6573_v32  ;;  %v6590_v36 = vmul.f32 0.5, %v6582_v25 }
0x1a41   : > { %v7689_v27 = vpop.f32.mrf.mxu0 }
0x1a42   : > { %v6598_v50 = vmul.f32 %v6594_v28, %v6582_v25  ;;  %v6592_v29 = vmul.f32 0.044715, %v6574_v34  ;;  %v6585_v51 = vadd.f32 %v7689_v27, %v7114_v47  ;;  %v6588_v23 = vmul.f32 0.5, %v6574_v34 }
0x1a43   : > { %v6576_v33 = vpop.f32.mrf.mxu0 }
0x1a44   : > { %v6602_v35 = vmul.f32 %v6598_v50, %v6582_v25  ;;  %v6596_v52 = vmul.f32 %v6592_v29, %v6574_v34  ;;  %v6595_v53 = vmul.f32 0.044715, %v6585_v51  ;;  %v6577_v54 = vadd.f32 %v7114_v47, %v6576_v33 }
0x1a45   : > { %v6591_v18 = vmul.f32 0.5, %v6585_v51 }
0x1a46   : > { %v6606_v55 = vadd.f32 %v6602_v35, %v6582_v25  ;;  %v6600_v56 = vmul.f32 %v6596_v52, %v6574_v34  ;;  %v6599_v60 = vmul.f32 %v6595_v53, %v6585_v51  ;;  %v6593_v0 = vmul.f32 0.044715, %v6577_v54 }
0x1a47   : > { %v6589_v26 = vmul.f32 0.5, %v6577_v54 }
0x1a48   : > { %v6603_v2 = vmul.f32 %v6599_v60, %v6585_v51  ;;  %v6597_v4 = vmul.f32 %v6593_v0, %v6577_v54  ;;  %v6604_v5 = vadd.f32 %v6600_v56, %v6574_v34  ;;  %v6610_v6 = vmul.f32 0.7978846, %v6606_v55 }
0x1a4a   : > { %v6607_v46 = vadd.f32 %v6603_v2, %v6585_v51  ;;  %v6601_v7 = vmul.f32 %v6597_v4, %v6577_v54  ;;  %v6608_v48 = vmul.f32 0.7978846, %v6604_v5 }
0x1a4c   : > { %v6611_v15 = vmul.f32 0.7978846, %v6607_v46  ;;  %v6605_v17 = vadd.f32 %v6601_v7, %v6577_v54  ;;  %8007 = vtanh.f32 %v6608_v48 }
0x1a4d   : > { %8009 = vtanh.f32 %v6610_v6 }
0x1a4e   : > { %8011 = vtanh.f32 %v6611_v15  ;;  %v6609_v9 = vmul.f32 0.7978846, %v6605_v17 }
0x1a50   : > { %8013 = vtanh.f32 %v6609_v9 }
0x1a59   : > { %v8008_v19 = vpop.eup %8007 }
0x1a5a   : > { %v8010_v22 = vpop.eup %8009  ;;  %v6616_v12 = vadd.f32 1.0, %v8008_v19 }
0x1a5b   : > { %v8012_v10 = vpop.eup %8011  ;;  %v6618_v8 = vadd.f32 1.0, %v8010_v22 }
0x1a5c   : > { %v6619_v14 = vadd.f32 1.0, %v8012_v10  ;;  %v6620_v38 = vmul.f32 %v6616_v12, %v6588_v23 }
0x1a5d   : > { %v8014_v16 = vpop.eup %8013  ;;  %v6622_v57 = vmul.f32 %v6618_v8, %v6590_v36 }
0x1a5e   : > { %v6617_v30 = vadd.f32 1.0, %v8014_v16  ;;  %v6623_v37 = vmul.f32 %v6619_v14, %v6591_v18  ;;  %v7128_v14 = vld [vmem:[%s9301_s11] ss:$0 sm:$0xff] }
0x1a5f   : > { %v7129_v18 = vld [vmem:[%s9302_s12] ss:$0 sm:$0xff] }
0x1a60   : > { %v6621_v58 = vmul.f32 %v6617_v30, %v6589_v26  ;;  %v6625_v39 = vpack.c.bf16 %v6623_v37, %v6622_v57 }
0x1a62   : > { %v6624_v62 = vpack.c.bf16 %v6621_v58, %v6620_v38 }
0x1a64   : > { %7706 = vmatprep.mubr.bf16.mxu1 %v6624_v62 }
0x1a65   : > { %7707 = vmatmul.mubr.bf16.vlgmr.msra.gmra.mxu1 %v6625_v39 }
0x1b25   : > { %v7708_v1 = vpop.f32.mrf.mxu1 }
0x1b26   : > { %v6740_v63 = vadd.f32 %v7708_v1, %v7119_v40 }
0x1b27   : > { %v6731_v61 = vpop.f32.mrf.mxu1 }
0x1b28   : > { %v6732_v45 = vadd.f32 %v7119_v40, %v6731_v61  ;;  %v6748_v21 = vadd.f32 %v6740_v63, %v9185_v41 }
0x1b29   : > { %v7709_v42 = vpop.f32.mrf.mxu1 }
0x1b2a   : > { %v6746_v13 = vadd.f32 %v6732_v45, %v9178_v3  ;;  %v6743_v44 = vadd.f32 %v7709_v42, %v7119_v40  ;;  %v6758_v25 = vsel %vm564_vm0, %v6748_v21, 0.0 }
0x1b2b   : > { %v6734_v11 = vpop.f32.mrf.mxu1 }
0x1b2c   : > { %v6735_v24 = vadd.f32 %v7119_v40, %v6734_v11  ;;  %v6752_v20 = vsel %vm564_vm0, %v6746_v13, 0.0  ;;  %v6749_v47 = vadd.f32 %v6743_v44, %v9187_v43 }
0x1b2d   : > { %6753 = vadd.xlane.f32.xlu1 %v6752_v20 }
0x1b2e   : > { %v6747_v31 = vadd.f32 %v6735_v24, %v9180_v59  ;;  %v6761_v3 = vsel %vm564_vm0, %v6749_v47, 0.0 }
0x1b30   : > { %v6755_v49 = vsel %vm564_vm0, %v6747_v31, 0.0 }
0x1b31   : > { %6756 = vadd.xlane.f32.xlu0 %v6755_v49  ;;  %6759 = vadd.xlane.f32.xlu1 %v6758_v25 }
0x1b35   : > { %6762 = vadd.xlane.f32.xlu0 %v6761_v3 }
0x1bb6   : > { %v6754_v32 = vpop.xlane.xlu1 %6753 }
0x1bb7   : > { %v6764_v41 = vmul.f32 0.03125, %v6754_v32 }
0x1bb9   : > { %v6768_v28 = vsub.f32 %v6746_v13, %v6764_v41 }
0x1bba   : > { %v6757_v34 = vpop.xlane.xlu0 %6756  ;;  %v6760_v27 = vpop.xlane.xlu1 %6759 }
0x1bbb   : > { %v6765_v50 = vmul.f32 0.03125, %v6757_v34  ;;  %v6766_v29 = vmul.f32 0.03125, %v6760_v27  ;;  %v6772_v51 = vmul.f32 %v6768_v28, %v6768_v28 }
0x1bbd   : > { %v6769_v59 = vsub.f32 %v6747_v31, %v6765_v50  ;;  %v6770_v33 = vsub.f32 %v6748_v21, %v6766_v29  ;;  %v6776_v43 = vsel %vm564_vm0, %v6772_v51, 0.0 }
0x1bbe   : > { %v6763_v35 = vpop.xlane.xlu0 %6762  ;;  %6777 = vadd.xlane.f32.xlu1 %v6776_v43 }
0x1bbf   : > { %v6767_v52 = vmul.f32 0.03125, %v6763_v35  ;;  %v6773_v53 = vmul.f32 %v6769_v59, %v6769_v59  ;;  %v6774_v54 = vmul.f32 %v6770_v33, %v6770_v33 }
0x1bc1   : > { %v6771_v55 = vsub.f32 %v6749_v47, %v6767_v52  ;;  %v6779_v56 = vsel %vm564_vm0, %v6773_v53, 0.0  ;;  %v6782_v60 = vsel %vm564_vm0, %v6774_v54, 0.0 }
0x1bc2   : > { %6780 = vadd.xlane.f32.xlu0 %v6779_v56  ;;  %6783 = vadd.xlane.f32.xlu1 %v6782_v60 }
0x1bc3   : > { %v6775_v0 = vmul.f32 %v6771_v55, %v6771_v55 }
0x1bc5   : > { %v6785_v2 = vsel %vm564_vm0, %v6775_v0, 0.0 }
0x1bc6   : > { %6786 = vadd.xlane.f32.xlu0 %v6785_v2 }
0x1c47   : > { %v6778_v4 = vpop.xlane.xlu1 %6777 }
0x1c48   : > { %v6788_v5 = vmul.f32 0.03125, %v6778_v4 }
0x1c4a   : > { %v6792_v6 = vadd.f32 1e-05, %v6788_v5 }
0x1c4b   : > { %v6781_v46 = vpop.xlane.xlu0 %6780  ;;  %v6784_v7 = vpop.xlane.xlu1 %6783 }
0x1c4c   : > { %8015 = vrsqrt.f32 %v6792_v6  ;;  %v6789_v48 = vmul.f32 0.03125, %v6781_v46  ;;  %v6790_v15 = vmul.f32 0.03125, %v6784_v7 }
0x1c4e   : > { %v6793_v17 = vadd.f32 1e-05, %v6789_v48  ;;  %v6794_v9 = vadd.f32 1e-05, %v6790_v15 }
0x1c4f   : > { %v6787_v19 = vpop.xlane.xlu0 %6786 }
0x1c50   : > { %8017 = vrsqrt.f32 %v6793_v17  ;;  %v6791_v22 = vmul.f32 0.03125, %v6787_v19 }
0x1c51   : > { %8019 = vrsqrt.f32 %v6794_v9 }
0x1c52   : > { %v6795_v10 = vadd.f32 1e-05, %v6791_v22 }
0x1c54   : > { %8021 = vrsqrt.f32 %v6795_v10 }
0x1c59   : > { %v8016_v12 = vpop.eup %8015 }
0x1c5a   : > { %v6800_v16 = vmul.f32 %v8016_v12, %v6768_v28 }
0x1c5c   : > { %v6810_v8 = vmul.f32 %v7128_v14, %v6800_v16 }
0x1c5d   : > { %v8018_v23 = vpop.eup %8017 }
0x1c5e   : > { %v8020_v26 = vpop.eup %8019  ;;  %v6820_v30 = vadd.f32 %v7129_v18, %v6810_v8  ;;  %v6801_v36 = vmul.f32 %v8018_v23, %v6769_v59 }
0x1c5f   : > { %v6802_v37 = vmul.f32 %v8020_v26, %v6770_v33 }
0x1c60   : > { %v6811_v38 = vmul.f32 %v7128_v14, %v6801_v36  ;;  %6824 = vst.msk [vmem:[%s526_s20] sm:$0xff] %vm564_vm0, %v6820_v30 }
0x1c61   : > { %v8022_v58 = vpop.eup %8021  ;;  %v6812_v57 = vmul.f32 %v7128_v14, %v6802_v37 }
0x1c62   : > { %v6821_v62 = vadd.f32 %v7129_v18, %v6811_v38  ;;  %v6803_v39 = vmul.f32 %v8022_v58, %v6771_v55 }
0x1c63   : > { %v6822_v1 = vadd.f32 %v7129_v18, %v6812_v57 }
0x1c64   : > { %v6813_v40 = vmul.f32 %v7128_v14, %v6803_v39  ;;  %6825 = vst.msk [vmem:[%s526_s20 + $0x8] sm:$0xff] %vm564_vm0, %v6821_v62 }
0x1c65   : > { %6826 = vst.msk [vmem:[%s526_s20 + $0x10] sm:$0xff] %vm564_vm0, %v6822_v1 }
0x1c66   : > { %v6823_v61 = vadd.f32 %v7129_v18, %v6813_v40 }
0x1c68   : > { %6827 = vst.msk [vmem:[%s526_s20 + $0x18] sm:$0xff] %vm564_vm0, %v6823_v61 }
0x1c69   : > { %8222 = shalt.err (!%p8219_p2)
}
0x1c6a   : > { %s8223_s15 = scalar_lea.hbm %s9245_s19, 512  ;;  %s8227_s17 = scalar_lea.hbm %s9303_s13, 1024 }
0x1c6b   : > { %p8224_p4 = scmp.ne.s32.totalorder %s9245_s19, %s8223_s15  ;;  %p8228_p8 = scmp.lt.s32.totalorder %s9245_s19, %s9303_s13 }
0x1c6c   : > { %p8229_p9 = scmp.lt.s32.totalorder %s8227_s17, %s8223_s15 }
0x1c6d   : > { %p8225_p7 = pnand %p8224_p4, %p9333_p0 }
0x1c6e   : > { %p8230_p11 = por %p8229_p9, %p8228_p8 }
0x1c6f   : > { %p8226_p12 = pneg %p8225_p7 }
0x1c71   : > { %p8231_p6 = pnand %p8230_p11, %p8226_p12 }
0x1c73   : > { %8234 = shalt.err (!%p8231_p6)
}
0x1c74   : > { %s8324_s27 = smov 128   ;;  %s8325_s21 = smov 8  }
0x1c75   : > { %7746 = dma.vmem_to_hbm [thread:$0]  (%p9333_p0), %s9247_s24, 512, %s9245_s19, %s9250_s29, %s8324_s27, %s8324_s27, %s8325_s21  }
0x1c76 PF: > { %s9334_s16 = sld [smem:[#allocation22_spill]] }
0x1c77   : > { %s9335_s25 = sld [smem:[#allocation20_spill]] }
0x1c78   : > { %s9336_s14 = sld [smem:[#allocation25_spill]] }
0x1c7c   : > { %p7788_p5 = scmp.ge.s32.totalorder %s9334_s16, 2 }
0x1c7d   : > { %s6857_s28 = sand.u32 1, %s9335_s25  }
0x1c7e   : > { %p9337_p10 = scmp.ne.s32.totalorder %s9336_s14, 0  ;;  %s6858_s15 = scalar_lea.sflag [#allocation4], %s6857_s28 }
0x1c80   : > { %p7771_p1 = pnand %p7788_p5, %p9337_p10 }
0x1c82   : > { %p7772_p3 = pneg %p7771_p1 }
0x1c84   : > { %8268 = dma.done.wait (%p7772_p3), %s6858_s15, 512  }
0x1c85   : > { %8270 = vsyncadd (%p7772_p3), %s6858_s15, 4294966784  ;;  %s9338_s28 = sld [smem:[#allocation23_spill]]  ;;  %s9341_s25 = smov %s8277_s26 }
0x1c86   : > { %s9339_s22 = sld [smem:[#allocation21_spill]] }
0x1c87   : > { %s9340_s27 = sld [smem:[#allocation24_spill]] }
0x1c8b   : > { %p27_p13 = scmp.ge.s32.totalorder %s9338_s28, 4  }
0x1c8c   : > { %s9342_s26 = smov %s9339_s22 }
0x1c8d   :  { %29 = sbr.rel (!%p27_p13) target bundleno = 7 (0x7), region = 143 }
0x1c92   :  { %6863 = vsyncpa [#allocation3], 1 }
0x1c93   :  { %6865 = vsyncpa [#allocation3 + $0x1], 1 }
0x1c94   :  { %6866 = vsyncpa [#allocation6], 1 }
0x1c95   :  { %6867 = vsyncpa [#allocation9], 1 }
0x1c96   :  { %6868 = vsyncpa [#allocation12], 1 }
0x1c97   :  { %6869 = vsyncpa [#allocation4], 1 }
0x1c98   :  { %6871 = vsyncpa [#allocation4 + $0x1], 1 }

</bundles_post_ra>
